<compile_context>
chip_gen: v7x
topology: tpu7x:2x2x1
jax: 0.10.0
libtpu: 0.0.40
codegen_flags: <defaults>
</compile_context>

<pallas_src>
import functools
import math

import jax
import jax.numpy as jnp
from jax.experimental import pallas as pl
from jax.experimental.pallas import tpu as pltpu

F32 = jnp.float32
BF16 = jnp.bfloat16


# ----------------------------------------------------------------------------
# TPU-generation gating (tile caps, VMEM limits, weight buffering)
# ----------------------------------------------------------------------------

def _device_kind():
    try:
        return jax.devices()[0].device_kind.lower()
    except Exception:
        return ""


_KIND = _device_kind()
_IS_V7 = ("v7" in _KIND) or ("tpu7" in _KIND)
_IS_V5V6 = (not _IS_V7) and any(t in _KIND for t in ("v5", "v6"))

if _IS_V5V6:                       # 128 MiB VMEM: bigger tiles, raised scoped limit
    _MM_CAPS = (512, 256, 1024)    # tm, tn, tk caps for the generic matmul
    _ROW_CAP = 512                 # row-tile cap for the fused FFN kernels
    _VMEM_LIMIT = 96 * 1024 * 1024
elif _IS_V7:                       # 64 MiB VMEM: conservative tiles
    _MM_CAPS = (256, 256, 512)
    _ROW_CAP = 256
    _VMEM_LIMIT = 48 * 1024 * 1024
else:                              # unknown generation: safe defaults, no limit override
    _MM_CAPS = (256, 256, 512)
    _ROW_CAP = 256
    _VMEM_LIMIT = None

_APPROX_RECIP = _IS_V5V6 or _IS_V7


def _cparams(*semantics):
    kw = dict(dimension_semantics=tuple(semantics))
    if _VMEM_LIMIT is not None:
        kw["vmem_limit_bytes"] = _VMEM_LIMIT
    return pltpu.CompilerParams(**kw)


def _const_spec(shape):
    """Grid-invariant (weight/bias) block; single-buffered on v7x to halve VMEM."""
    idx = lambda *args: (0,) * len(shape)
    if _IS_V7:
        try:
            return pl.BlockSpec(shape, idx, pipeline_mode=pl.Buffered(1))
        except Exception:
            pass
    return pl.BlockSpec(shape, idx)


# ----------------------------------------------------------------------------
# In-kernel helpers
# ----------------------------------------------------------------------------

def _mm(a, w):
    """MXU matmul: activation -> bf16, weight already bf16, f32 accumulate."""
    return jnp.dot(a.astype(BF16), w, preferred_element_type=F32)


def _layernorm(x, g, b, eps=1e-5):
    mu = jnp.mean(x, axis=-1, keepdims=True)
    var = jnp.mean(jnp.square(x - mu), axis=-1, keepdims=True)
    return (x - mu) * jax.lax.rsqrt(var + eps) * g + b


def _silu(x):
    return x * jax.nn.sigmoid(x)


def _row_iota(n):
    return jax.lax.broadcasted_iota(jnp.int32, (n, 1), 0)


# ----------------------------------------------------------------------------
# Fused Conformer sub-module kernels
# ----------------------------------------------------------------------------

def _ffn_pre_kernel(x_ref, map_ref, lng_ref, lnb_ref, w1_ref, b1_ref,
                    w2_ref, b2_ref, o_ref):
    """x' = (x + mapping) + 0.5 * FFN(x + mapping)   (row-tiled)."""
    x = x_ref[0] + map_ref[0]
    h = _layernorm(x, lng_ref[...], lnb_ref[...])
    h = _silu(_mm(h, w1_ref[...]) + b1_ref[...])
    h = _mm(h, w2_ref[...]) + b2_ref[...]
    o_ref[0] = x + 0.5 * h


def _ffn_post_kernel(x_ref, lng_ref, lnb_ref, w1_ref, b1_ref, w2_ref, b2_ref,
                     fg_ref, fb_ref, o_ref):
    """x' = FinalLN(x + 0.5 * FFN(x))   (row-tiled)."""
    x = x_ref[0]
    h = _layernorm(x, lng_ref[...], lnb_ref[...])
    h = _silu(_mm(h, w1_ref[...]) + b1_ref[...])
    h = _mm(h, w2_ref[...]) + b2_ref[...]
    y = x + 0.5 * h
    o_ref[0] = _layernorm(y, fg_ref[...], fb_ref[...])


def _mha_kernel(len_ref, x_ref, lng_ref, lnb_ref, wq_ref, wk_ref, wv_ref,
                bq_ref, bk_ref, bv_ref, wo_ref, bo_ref, o_ref,
                *, num_heads, scale):
    """LN -> lane-dense Q/K/V projections -> per-head attention written into one
    contiguous (T, D) buffer -> single (T,D)@(D,D) out-projection -> +x."""
    b = pl.program_id(0)
    valid_len = len_ref[b]                                       # scalar int32 (SMEM)
    x = x_ref[0]                                                 # (T, D) f32
    T, D = x.shape
    dh = D // num_heads

    hb = _layernorm(x, lng_ref[...], lnb_ref[...]).astype(BF16)
    q = jnp.dot(hb, wq_ref[...], preferred_element_type=F32) + bq_ref[...]
    k = jnp.dot(hb, wk_ref[...], preferred_element_type=F32) + bk_ref[...]
    v = jnp.dot(hb, wv_ref[...], preferred_element_type=F32) + bv_ref[...]

    # key-padding mask built in-kernel (no HBM mask tensor, no per-head copy)
    key_valid = jax.lax.broadcasted_iota(jnp.int32, (1, T), 1) < valid_len
    nt_dims = (((1,), (1,)), ((), ()))                           # q @ k^T

    heads = []
    for hh in range(num_heads):                                  # static unroll over heads
        sl = slice(hh * dh, (hh + 1) * dh)
        qh = q[:, sl].astype(BF16)
        kh = k[:, sl].astype(BF16)
        vh = v[:, sl].astype(BF16)
        s = jax.lax.dot_general(qh, kh, nt_dims,
                                preferred_element_type=F32) * scale      # (T, T) f32
        s = jnp.where(key_valid, s, -1e30)
        s = s - jnp.max(s, axis=-1, keepdims=True)
        p = jnp.exp(s)
        inv = pl.reciprocal(jnp.sum(p, axis=-1, keepdims=True),
                            approx=_APPROX_RECIP)                # EUP slot, folded into P@V
        heads.append(jnp.dot(p.astype(BF16), vh, preferred_element_type=F32) * inv)

    attn = jnp.concatenate(heads, axis=-1)                       # contiguous (T, D)
    y = jnp.dot(attn.astype(BF16), wo_ref[...], preferred_element_type=F32)
    o_ref[0] = x + y + bo_ref[...]
    # TODO(synk): for very long T, tile queries flash-style (online softmax) to bound
    # the (T, T) score tile under v7x's 64 MiB VMEM and add pipeline steps when B is tiny.


def _convmod_kernel(x_ref, lng_ref, lnb_ref, wpw1_ref, bpw1_ref, wdw_ref,
                    bdw_ref, gng_ref, gnb_ref, wpw2_ref, bpw2_ref, o_ref, *, ksize):
    """LN -> pw conv (D->2D) -> GLU -> depthwise conv (XLU rolls + edge masks)
    -> GroupNorm(1) -> SiLU -> pw conv -> +x."""
    x = x_ref[0]                                                 # (T, D)
    T, D = x.shape
    pad = (ksize - 1) // 2

    h = _layernorm(x, lng_ref[...], lnb_ref[...])
    h = _mm(h, wpw1_ref[...]) + bpw1_ref[...]                    # (T, 2D)
    h = h[:, :D] * jax.nn.sigmoid(h[:, D:])                      # GLU over channels

    # Depthwise temporal conv: each tap is an XLU roll of the in-register GLU
    # output plus an edge mask -- no padded VMEM scratch, no unaligned slices.
    w_dw = wdw_ref[...]                                          # (K, D) f32
    rows = _row_iota(T)
    acc = jnp.zeros((T, D), F32)
    for j in range(ksize):                                       # static unroll over taps
        r = j - pad
        if r == 0:
            tap = h
        else:
            tap = pltpu.roll(h, shift=(-r) % T, axis=0)          # tap[t] = h[t + r]
            tap = jnp.where(jnp.logical_and(rows + r >= 0, rows + r < T), tap, 0.0)
        acc = acc + tap * w_dw[j:j + 1, :]
    acc = acc + bdw_ref[...]

    # GroupNorm(num_groups=1): stats over the whole (T, D) tile of this sample.
    mu = jnp.mean(acc)
    var = jnp.mean(jnp.square(acc - mu))
    h = (acc - mu) * jax.lax.rsqrt(var + 1e-5) * gng_ref[...] + gnb_ref[...]
    h = _silu(h)
    h = _mm(h, wpw2_ref[...]) + bpw2_ref[...]
    o_ref[0] = x + h


# ----------------------------------------------------------------------------
# Conv1d(k=3, padding=1) projection kernels (in-kernel halo via pltpu.roll)
# ----------------------------------------------------------------------------

def _conv3_body(x, w_ref, b_ref):
    T = x.shape[0]
    rows = _row_iota(T)
    xm = jnp.where(rows >= 1, pltpu.roll(x, shift=1, axis=0), 0.0)             # x[t-1]
    xp = jnp.where(rows < T - 1, pltpu.roll(x, shift=(T - 1) % T, axis=0), 0.0)  # x[t+1]
    acc = _mm(xm, w_ref[0]) + _mm(x, w_ref[1]) + _mm(xp, w_ref[2])
    return acc + b_ref[...]


def _conv3_kernel(x_ref, w_ref, b_ref, o_ref):
    o_ref[0] = _conv3_body(x_ref[0], w_ref, b_ref)


def _conv3_pos_kernel(x_ref, w_ref, b_ref, pos_ref, o_ref):
    # Positional embedding is precomputed once outside the per-batch grid.
    o_ref[0] = _conv3_body(x_ref[0], w_ref, b_ref) + pos_ref[...]


# ----------------------------------------------------------------------------
# Generic tiled matmul (to_time MLP, positional embedding, output projection)
# ----------------------------------------------------------------------------

def _linear_kernel(a_ref, w_ref, b_ref, o_ref, acc_ref):
    @pl.when(pl.program_id(2) == 0)
    def _():
        acc_ref[...] = jnp.zeros_like(acc_ref)

    acc_ref[...] += jnp.dot(a_ref[...], w_ref[...], preferred_element_type=F32)

    @pl.when(pl.program_id(2) == pl.num_programs(2) - 1)
    def _():
        o_ref[...] = acc_ref[...] + b_ref[...]


def _pick_tile(dim, cap, align):
    """Largest divisor of `dim` that is <= cap and aligned; else the full dim."""
    if dim <= cap:
        return dim
    t = (cap // align) * align
    while t >= align:
        if dim % t == 0:
            return t
        t -= align
    return dim


def pallas_linear(x2d, w, b):
    """x2d: (M, K); w: (K, N) bf16 (pre-transposed); b: (N,) f32 -> (M, N) f32.
    Activation is cast to bf16 *before* the call (halved DMA / VMEM footprint)."""
    M, K = x2d.shape
    N = w.shape[1]
    tm = _pick_tile(M, _MM_CAPS[0], 16)
    tn = _pick_tile(N, _MM_CAPS[1], 128)
    tk = _pick_tile(K, _MM_CAPS[2], 128)
    grid = (M // tm, N // tn, K // tk)
    return pl.pallas_call(
        _linear_kernel,
        out_shape=jax.ShapeDtypeStruct((M, N), F32),
        grid=grid,
        in_specs=[
            pl.BlockSpec((tm, tk), lambda i, j, k: (i, k)),
            pl.BlockSpec((tk, tn), lambda i, j, k: (k, j)),
            pl.BlockSpec((1, tn), lambda i, j, k: (0, j)),
        ],
        out_specs=pl.BlockSpec((tm, tn), lambda i, j, k: (i, j)),
        scratch_shapes=[pltpu.VMEM((tm, tn), F32)],
        compiler_params=_cparams("parallel", "parallel", "arbitrary"),
    )(x2d.astype(BF16), w, b.reshape(1, N).astype(F32))


# ----------------------------------------------------------------------------
# pallas_call wrappers for the fused kernels
# ----------------------------------------------------------------------------

def fused_ffn_pre(x, mapping, p):
    B, T, D = x.shape
    F = p["w1"].shape[1]
    tt = _pick_tile(T, _ROW_CAP, 8)
    return pl.pallas_call(
        _ffn_pre_kernel,
        out_shape=jax.ShapeDtypeStruct((B, T, D), F32),
        grid=(B, T // tt),
        in_specs=[
            pl.BlockSpec((1, tt, D), lambda b, t: (b, t, 0)),
            pl.BlockSpec((1, 1, D), lambda b, t: (b, 0, 0)),
            _const_spec((1, D)), _const_spec((1, D)),
            _const_spec((D, F)), _const_spec((1, F)),
            _const_spec((F, D)), _const_spec((1, D)),
        ],
        out_specs=pl.BlockSpec((1, tt, D), lambda b, t: (b, t, 0)),
        compiler_params=_cparams("parallel", "parallel"),
    )(x, mapping, p["ln_g"], p["ln_b"], p["w1"], p["b1"], p["w2"], p["b2"])


def fused_ffn_post(x, p, final_g, final_b):
    B, T, D = x.shape
    F = p["w1"].shape[1]
    tt = _pick_tile(T, _ROW_CAP, 8)
    return pl.pallas_call(
        _ffn_post_kernel,
        out_shape=jax.ShapeDtypeStruct((B, T, D), F32),
        grid=(B, T // tt),
        in_specs=[
            pl.BlockSpec((1, tt, D), lambda b, t: (b, t, 0)),
            _const_spec((1, D)), _const_spec((1, D)),
            _const_spec((D, F)), _const_spec((1, F)),
            _const_spec((F, D)), _const_spec((1, D)),
            _const_spec((1, D)), _const_spec((1, D)),
        ],
        out_specs=pl.BlockSpec((1, tt, D), lambda b, t: (b, t, 0)),
        compiler_params=_cparams("parallel", "parallel"),
    )(x, p["ln_g"], p["ln_b"], p["w1"], p["b1"], p["w2"], p["b2"], final_g, final_b)


def fused_mha(x, lengths, ln_g, ln_b, p, num_heads):
    B, T, D = x.shape
    scale = 1.0 / math.sqrt(D // num_heads)
    kern = functools.partial(_mha_kernel, num_heads=num_heads, scale=scale)
    grid_spec = pltpu.PrefetchScalarGridSpec(
        num_scalar_prefetch=1,                        # lengths -> SMEM, mask built in-kernel
        grid=(B,),
        in_specs=[
            pl.BlockSpec((1, T, D), lambda i, lens: (i, 0, 0)),
            _const_spec((1, D)), _const_spec((1, D)),
            _const_spec((D, D)), _const_spec((D, D)), _const_spec((D, D)),
            _const_spec((1, D)), _const_spec((1, D)), _const_spec((1, D)),
            _const_spec((D, D)), _const_spec((1, D)),
        ],
        out_specs=pl.BlockSpec((1, T, D), lambda i, lens: (i, 0, 0)),
    )
    return pl.pallas_call(
        kern,
        out_shape=jax.ShapeDtypeStruct((B, T, D), F32),
        grid_spec=grid_spec,
        compiler_params=_cparams("parallel"),
    )(lengths, x, ln_g, ln_b, p["wq"], p["wk"], p["wv"],
      p["bq"], p["bk"], p["bv"], p["wo"], p["bo"])


def fused_conv_module(x, p, ksize):
    B, T, D = x.shape
    kern = functools.partial(_convmod_kernel, ksize=ksize)
    # TODO(synk): the depthwise conv + GroupNorm(1) stats couple rows, so this stays one
    # (T, D) tile per sample; the pointwise/GLU parts could be row-tiled if split out.
    return pl.pallas_call(
        kern,
        out_shape=jax.ShapeDtypeStruct((B, T, D), F32),
        grid=(B,),
        in_specs=[
            pl.BlockSpec((1, T, D), lambda i: (i, 0, 0)),
            _const_spec((1, D)), _const_spec((1, D)),
            _const_spec((D, 2 * D)), _const_spec((1, 2 * D)),
            _const_spec((ksize, D)), _const_spec((1, D)),
            _const_spec((1, D)), _const_spec((1, D)),
            _const_spec((D, D)), _const_spec((1, D)),
        ],
        out_specs=pl.BlockSpec((1, T, D), lambda i: (i, 0, 0)),
        compiler_params=_cparams("parallel"),
    )(x, p["ln_g"], p["ln_b"], p["pw1_w"], p["pw1_b"], p["dw_w"], p["dw_b"],
      p["gn_g"], p["gn_b"], p["pw2_w"], p["pw2_b"])


def conv1d_k3(x_btc, w, b, pos=None):
    """Conv1d(k=3, padding=1); halo handled in-kernel (no wrapper-side jnp.pad).
    `pos` is an optional precomputed (T, Cout) positional embedding to add."""
    B, T, Cin = x_btc.shape
    Cout = w.shape[2]
    in_specs = [
        pl.BlockSpec((1, T, Cin), lambda i: (i, 0, 0)),
        _const_spec((3, Cin, Cout)),
        _const_spec((1, Cout)),
    ]
    args = [x_btc.astype(F32), w, b]
    kern = _conv3_kernel
    if pos is not None:
        in_specs.append(_const_spec((T, Cout)))
        args.append(pos)
        kern = _conv3_pos_kernel
    return pl.pallas_call(
        kern,
        out_shape=jax.ShapeDtypeStruct((B, T, Cout), F32),
        grid=(B,),
        in_specs=in_specs,
        out_specs=pl.BlockSpec((1, T, Cout), lambda i: (i, 0, 0)),
        compiler_params=_cparams("parallel"),
    )(*args)


# ----------------------------------------------------------------------------
# JAX glue (cheap elementwise + layout plumbing)
# ----------------------------------------------------------------------------

def gelu(x):
    # TODO(synk): erf has no guaranteed Mosaic lowering; the to_time GELUs stay in
    # plain JAX (they run once per forward; the per-layer hot path has no GELU).
    return jax.nn.gelu(x, approximate=False)


def _fourier_features(t, freq):
    """LearnedPositionalEmbedding: [t, sin(2*pi*t*f), cos(2*pi*t*f)] -> (N, dim+1)."""
    t = t.astype(F32)[:, None]
    ang = t * freq[None, :] * (2.0 * math.pi)
    return jnp.concatenate([t, jnp.sin(ang), jnp.cos(ang)], axis=-1)


def to_time_mlp(t, p):
    f = _fourier_features(t, p["freq"])
    m = gelu(pallas_linear(f, p["w0"], p["b0"]))
    m = gelu(pallas_linear(m, p["w1"], p["b1"]))
    m = gelu(pallas_linear(m, p["w2"], p["b2"]))
    return m                                                     # (B, D)


def style_diffuser_run(params, x, time_t, embedding, features, input_lengths,
                       num_heads, dw_kernels, style_dim):
    """x: (B, mel_dim, T_mel) NCW; embedding: (B, L, D); features: (B, feat_dim, T_feat)."""
    B = x.shape[0]
    mapping = to_time_mlp(time_t, params["to_time"])             # (B, D)

    x_btc = jnp.transpose(x, (0, 2, 1))                          # (B, T_mel, mel_dim)
    T_mel = x_btc.shape[1]
    # Positional embedding hoisted out of the per-batch grid: computed once.
    pos_f = _fourier_features(jnp.arange(T_mel, dtype=F32), params["embedder"]["freq"])
    pos = pallas_linear(pos_f, params["embedder"]["w"], params["embedder"]["b"])
    mel = conv1d_k3(x_btc, params["mel_proj_w"], params["mel_proj_b"], pos=pos)

    feats = conv1d_k3(jnp.transpose(features, (0, 2, 1)),
                      params["feature_proj_w"], params["feature_proj_b"])
    T_feat = feats.shape[1]

    D = mel.shape[-1]
    x_sep = jnp.broadcast_to(params["sep"][1], (B, 1, D))
    feat_sep = jnp.broadcast_to(params["sep"][0], (B, 1, D))

    # torch: x = cat([mel, x_sep, cat([features, feat_sep, text])], -1).transpose(-1,-2)
    seq = jnp.concatenate([mel, x_sep, feats, feat_sep, embedding.astype(F32)], axis=1)
    lengths = input_lengths.astype(jnp.int32) + T_mel + T_feat + 2

    mapping3 = mapping[:, None, :]                               # (B, 1, D)
    h = seq
    for blk, ks in zip(params["blocks"], dw_kernels):
        h = fused_ffn_pre(h, mapping3, blk["ffn1"])              # + mapping, + 0.5*FFN1
        h = fused_mha(h, lengths, blk["attn_ln_g"], blk["attn_ln_b"],
                      blk["attn"], num_heads)                    # + MHA
        h = fused_conv_module(h, blk["conv"], ks)                # + conv module
        h = fused_ffn_post(h, blk["ffn2"], blk["final_ln_g"], blk["final_ln_b"])

    x_mel = h[:, :T_mel, :]
    # Output projection runs lane-dense (padded to a 128 multiple) and is sliced back.
    s = pallas_linear(x_mel.reshape(B * T_mel, D), params["out_w"], params["out_b"])
    s = s[:, :style_dim].reshape(B, T_mel, style_dim)
    return jnp.transpose(s, (0, 2, 1))                           # (B, style_dim, T_mel)


_run_jit = jax.jit(style_diffuser_run,
                   static_argnames=("num_heads", "dw_kernels", "style_dim"))


def style_diffuser_forward(params, x, time_t, input_lengths, embedding, features,
                           num_heads, dw_kernels, style_dim):
    # embedding_mask_proba=0.0 and embedding_scale=feature_scale=1.0 path.
    # TODO(synk): CFG branches (rand_bool masking / multi-run guidance) are not exercised,
    # so the fixed_embedding / fixed_feature tensors torch computes are unused here.
    lmax = int(jax.device_get(jnp.max(input_lengths)))           # host sync once, outside jit
    emb = embedding[:, :lmax, :]
    return _run_jit(params, x, time_t, emb, features, input_lengths,
                    num_heads=num_heads, dw_kernels=tuple(dw_kernels),
                    style_dim=style_dim)


# ----------------------------------------------------------------------------
# Deterministic synthetic params (torch-shaped) + conversion to kernel layout
# ----------------------------------------------------------------------------

class KeyGen:
    def __init__(self, key):
        self.key = key

    def __call__(self):
        self.key, sub = jax.random.split(self.key)
        return sub


def _dense(key, shape, scale=0.02):
    return scale * jax.random.normal(key, shape, dtype=F32)


def init_torch_params(kg, cfg):
    d, md, fd, sd = cfg["text_dim"], cfg["mel_dim"], cfg["feat_dim"], cfg["style_dim"]
    ned = cfg["number_emb_dim"]

    def block(ks):
        ffn_dim = 2 * d

        def ffn():
            return {"ln_g": jnp.ones((d,)), "ln_b": jnp.zeros((d,)),
                    "w1": _dense(kg(), (ffn_dim, d)), "b1": _dense(kg(), (ffn_dim,)),
                    "w2": _dense(kg(), (d, ffn_dim)), "b2": _dense(kg(), (d,))}

        return {
            "ffn1": ffn(), "ffn2": ffn(),
            "attn_ln_g": jnp.ones((d,)), "attn_ln_b": jnp.zeros((d,)),
            "attn": {"in_w": _dense(kg(), (3 * d, d)), "in_b": _dense(kg(), (3 * d,)),
                     "out_w": _dense(kg(), (d, d)), "out_b": _dense(kg(), (d,))},
            "conv": {"ln_g": jnp.ones((d,)), "ln_b": jnp.zeros((d,)),
                     "pw1_w": _dense(kg(), (2 * d, d, 1)), "pw1_b": _dense(kg(), (2 * d,)),
                     "dw_w": _dense(kg(), (d, 1, ks)), "dw_b": _dense(kg(), (d,)),
                     "gn_g": jnp.ones((d,)), "gn_b": jnp.zeros((d,)),
                     "pw2_w": _dense(kg(), (d, d, 1)), "pw2_b": _dense(kg(), (d,))},
            "final_ln_g": jnp.ones((d,)), "final_ln_b": jnp.zeros((d,)),
        }

    return {
        "mel_proj_w": _dense(kg(), (d, md, 3)), "mel_proj_b": _dense(kg(), (d,)),
        "feature_proj_w": _dense(kg(), (d, fd, 3)), "feature_proj_b": _dense(kg(), (d,)),
        "out_w": _dense(kg(), (sd, d, 1)), "out_b": _dense(kg(), (sd,)),
        "to_time": {"freq": _dense(kg(), (d // 2,), 1.0),
                    "w0": _dense(kg(), (d, d + 1)), "b0": _dense(kg(), (d,)),
                    "w1": _dense(kg(), (d, d)), "b1": _dense(kg(), (d,)),
                    "w2": _dense(kg(), (d, d)), "b2": _dense(kg(), (d,))},
        "embedder": {"freq": _dense(kg(), (ned // 2,), 1.0),
                     "w": _dense(kg(), (d, ned + 1)), "b": _dense(kg(), (d,))},
        "sep": _dense(kg(), (2, d), 1.0),
        "blocks": [block(k) for k in cfg["dw_kernels"]],
    }


def _row(v):
    return v.reshape(1, -1).astype(F32)


def prepare_params(tp, style_dim):
    """Torch-shaped f32 weights -> kernel layout (matmul weights transposed + bf16,
    attention in_proj split into lane-dense Q/K/V, output proj padded to 128 lanes)."""
    def ffn(p):
        return {"ln_g": _row(p["ln_g"]), "ln_b": _row(p["ln_b"]),
                "w1": jnp.transpose(p["w1"]).astype(BF16), "b1": _row(p["b1"]),
                "w2": jnp.transpose(p["w2"]).astype(BF16), "b2": _row(p["b2"])}

    def conv3_w(w):                       # torch (Cout, Cin, 3) -> (3, Cin, Cout)
        return jnp.transpose(w, (2, 1, 0)).astype(BF16)

    blocks = []
    for bp in tp["blocks"]:
        cv = bp["conv"]
        in_w = bp["attn"]["in_w"]                                # (3D, D)
        in_b = bp["attn"]["in_b"]
        d = in_w.shape[1]
        blocks.append({
            "ffn1": ffn(bp["ffn1"]), "ffn2": ffn(bp["ffn2"]),
            "attn_ln_g": _row(bp["attn_ln_g"]), "attn_ln_b": _row(bp["attn_ln_b"]),
            "attn": {"wq": jnp.transpose(in_w[:d]).astype(BF16),
                     "wk": jnp.transpose(in_w[d:2 * d]).astype(BF16),
                     "wv": jnp.transpose(in_w[2 * d:]).astype(BF16),
                     "bq": _row(in_b[:d]), "bk": _row(in_b[d:2 * d]),
                     "bv": _row(in_b[2 * d:]),
                     "wo": jnp.transpose(bp["attn"]["out_w"]).astype(BF16),
                     "bo": _row(bp["attn"]["out_b"])},
            "conv": {"ln_g": _row(cv["ln_g"]), "ln_b": _row(cv["ln_b"]),
                     "pw1_w": jnp.transpose(cv["pw1_w"][:, :, 0]).astype(BF16),
                     "pw1_b": _row(cv["pw1_b"]),
                     "dw_w": jnp.transpose(cv["dw_w"][:, 0, :]).astype(F32),   # (K, D)
                     "dw_b": _row(cv["dw_b"]),
                     "gn_g": _row(cv["gn_g"]), "gn_b": _row(cv["gn_b"]),
                     "pw2_w": jnp.transpose(cv["pw2_w"][:, :, 0]).astype(BF16),
                     "pw2_b": _row(cv["pw2_b"])},
            "final_ln_g": _row(bp["final_ln_g"]), "final_ln_b": _row(bp["final_ln_b"]),
        })

    out_w = jnp.transpose(tp["out_w"][:, :, 0]).astype(F32)     # (D, style_dim)
    out_b = tp["out_b"].astype(F32)
    n_pad = ((style_dim + 127) // 128) * 128                     # lane-dense output store
    if n_pad != style_dim:
        out_w = jnp.pad(out_w, ((0, 0), (0, n_pad - style_dim)))
        out_b = jnp.pad(out_b, (0, n_pad - style_dim))

    return {
        "mel_proj_w": conv3_w(tp["mel_proj_w"]), "mel_proj_b": _row(tp["mel_proj_b"]),
        "feature_proj_w": conv3_w(tp["feature_proj_w"]),
        "feature_proj_b": _row(tp["feature_proj_b"]),
        "out_w": out_w.astype(BF16), "out_b": out_b,
        "to_time": {"freq": tp["to_time"]["freq"].astype(F32),
                    "w0": jnp.transpose(tp["to_time"]["w0"]).astype(BF16),
                    "b0": tp["to_time"]["b0"].astype(F32),
                    "w1": jnp.transpose(tp["to_time"]["w1"]).astype(BF16),
                    "b1": tp["to_time"]["b1"].astype(F32),
                    "w2": jnp.transpose(tp["to_time"]["w2"]).astype(BF16),
                    "b2": tp["to_time"]["b2"].astype(F32)},
        "embedder": {"freq": tp["embedder"]["freq"].astype(F32),
                     "w": jnp.transpose(tp["embedder"]["w"]).astype(BF16),
                     "b": tp["embedder"]["b"].astype(F32)},
        "sep": tp["sep"].astype(F32),
        "blocks": blocks,
    }


# ----------------------------------------------------------------------------
# Main
# ----------------------------------------------------------------------------

if __name__ == "__main__":
    num_layers = 2
    cfg = dict(
        mel_dim=16, text_dim=32, style_dim=16, num_heads=4,
        feat_dim=18, number_emb_dim=256,
        dw_kernels=(15,) + (7,) * (num_layers - 1),    # first Conformer k=15, rest k=7
    )

    kg = KeyGen(jax.random.PRNGKey(0))
    torch_params = init_torch_params(kg, cfg)
    params = prepare_params(torch_params, cfg["style_dim"])

    B, T_mel, T_feat, L = 2, 8, 8, 6                   # sequence length 8+1+8+1+6 = 24
    x = jax.random.normal(kg(), (B, cfg["mel_dim"], T_mel), F32)           # NCW mel
    time_t = jax.random.uniform(kg(), (B,), F32)
    embedding = jax.random.normal(kg(), (B, L, cfg["text_dim"]), F32)
    features = jax.random.normal(kg(), (B, cfg["feat_dim"], T_feat), F32)
    input_lengths = jnp.array([6, 4], dtype=jnp.int32)

    out = style_diffuser_forward(params, x, time_t, input_lengths, embedding,
                                 features, cfg["num_heads"], cfg["dw_kernels"],
                                 cfg["style_dim"])
    out = jax.block_until_ready(out)
    assert out.shape == (B, cfg["style_dim"], T_mel), out.shape
    assert bool(jnp.all(jnp.isfinite(out)))
    print("KERNEL_OK")
</pallas_src>

<mosaic_0001>
module attributes {stable_mosaic.version = 11 : i64} {
  func.func @_linear_kernel(%arg0: i32, %arg1: i32, %arg2: i32, %arg3: memref<8x257xbf16, #tpu.memory_space<vmem>>, %arg4: memref<257x32xbf16, #tpu.memory_space<vmem>>, %arg5: memref<1x32xf32, #tpu.memory_space<vmem>>, %arg6: memref<8x32xf32, #tpu.memory_space<vmem>>, %arg7: memref<8x32xf32, #tpu.memory_space<vmem>>) attributes {dimension_semantics = [#tpu.dimension_semantics<parallel>, #tpu.dimension_semantics<parallel>, #tpu.dimension_semantics<arbitrary>], iteration_bounds = array<i64: 1, 1, 1>, scalar_prefetch = 0 : i64, scratch_operands = 1 : i64, tpu.core_type = #tpu.core_type<tc>, window_params = [{transform_indices = @transform_0, window_bounds = array<i64: 8, 257>}, {transform_indices = @transform_1, window_bounds = array<i64: 257, 32>}, {transform_indices = @transform_2, window_bounds = array<i64: 1, 32>}, {transform_indices = @transform_3, window_bounds = array<i64: 8, 32>}]} {
    %c0_i32 = arith.constant 0 : i32
    %0 = arith.cmpi eq, %arg2, %c0_i32 : i32
    %1 = arith.extui %0 : i1 to i32
    %c0_i32_0 = arith.constant 0 : i32
    %2 = arith.cmpi ne, %1, %c0_i32_0 : i32
    scf.if %2 {
      %cst_10 = arith.constant 0.000000e+00 : f32
      %12 = vector.broadcast %cst_10 : f32 to vector<8x32xf32>
      %c0_11 = arith.constant 0 : index
      %c0_12 = arith.constant 0 : index
      %13 = vector.load %arg7[%c0_11, %c0_12] : memref<8x32xf32, #tpu.memory_space<vmem>>, vector<8x32xf32>
      tpu.vector_store %arg7[%c0_11, %c0_12], %12 {strides = array<i32>} : memref<8x32xf32, #tpu.memory_space<vmem>>, vector<8x32xf32>,
    } else {
    }
    %c0 = arith.constant 0 : index
    %c0_1 = arith.constant 0 : index
    %3 = vector.load %arg7[%c0, %c0_1] : memref<8x32xf32, #tpu.memory_space<vmem>>, vector<8x32xf32>
    %c0_2 = arith.constant 0 : index
    %c0_3 = arith.constant 0 : index
    %4 = vector.load %arg3[%c0_2, %c0_3] : memref<8x257xbf16, #tpu.memory_space<vmem>>, vector<8x257xbf16>
    %c0_4 = arith.constant 0 : index
    %c0_5 = arith.constant 0 : index
    %5 = vector.load %arg4[%c0_4, %c0_5] : memref<257x32xbf16, #tpu.memory_space<vmem>>, vector<257x32xbf16>
    %cst = arith.constant dense<0.000000e+00> : vector<8x32xf32>
    %6 = tpu.matmul %4, %5, %cst {dimension_numbers = #tpu.dot_dimension_numbers<[1], [0], [0], [1], [0, 0, 1, 1], [], []>} : vector<8x257xbf16>, vector<257x32xbf16>, vector<8x32xf32> -> vector<8x32xf32>
    %7 = arith.addf %3, %6 : vector<8x32xf32>
    %c0_6 = arith.constant 0 : index
    %c0_7 = arith.constant 0 : index
    %8 = vector.load %arg7[%c0_6, %c0_7] : memref<8x32xf32, #tpu.memory_space<vmem>>, vector<8x32xf32>
    tpu.vector_store %arg7[%c0_6, %c0_7], %7 {strides = array<i32>} : memref<8x32xf32, #tpu.memory_space<vmem>>, vector<8x32xf32>,
    %c0_i32_8 = arith.constant 0 : i32
    %9 = arith.cmpi eq, %arg2, %c0_i32_8 : i32
    %10 = arith.extui %9 : i1 to i32
    %c0_i32_9 = arith.constant 0 : i32
    %11 = arith.cmpi ne, %10, %c0_i32_9 : i32
    scf.if %11 {
      %c0_10 = arith.constant 0 : index
      %c0_11 = arith.constant 0 : index
      %12 = vector.load %arg7[%c0_10, %c0_11] : memref<8x32xf32, #tpu.memory_space<vmem>>, vector<8x32xf32>
      %c0_12 = arith.constant 0 : index
      %c0_13 = arith.constant 0 : index
      %13 = vector.load %arg5[%c0_12, %c0_13] : memref<1x32xf32, #tpu.memory_space<vmem>>, vector<1x32xf32>
      %14 = vector.broadcast %13 : vector<1x32xf32> to vector<8x32xf32>
      %15 = arith.addf %12, %14 : vector<8x32xf32>
      %c0_14 = arith.constant 0 : index
      %c0_15 = arith.constant 0 : index
      %16 = vector.load %arg6[%c0_14, %c0_15] : memref<8x32xf32, #tpu.memory_space<vmem>>, vector<8x32xf32>
      tpu.vector_store %arg6[%c0_14, %c0_15], %15 {strides = array<i32>} : memref<8x32xf32, #tpu.memory_space<vmem>>, vector<8x32xf32>,
    } else {
    }
    return
  }
  func.func @transform_0(%arg0: i32, %arg1: i32, %arg2: i32) -> (i32, i32) {
    %c0_i32 = arith.constant 0 : i32
    return %arg0, %arg2 : i32, i32
  }
  func.func @transform_1(%arg0: i32, %arg1: i32, %arg2: i32) -> (i32, i32) {
    %c0_i32 = arith.constant 0 : i32
    return %arg2, %arg1 : i32, i32
  }
  func.func @transform_2(%arg0: i32, %arg1: i32, %arg2: i32) -> (i32, i32) {
    %c0_i32 = arith.constant 0 : i32
    %c0_i32_0 = arith.constant 0 : i32
    return %c0_i32, %arg1 : i32, i32
  }
  func.func @transform_3(%arg0: i32, %arg1: i32, %arg2: i32) -> (i32, i32) {
    %c0_i32 = arith.constant 0 : i32
    return %arg0, %arg1 : i32, i32
  }
}

module attributes {stable_mosaic.version = 11 : i64} {
  func.func @_conv3_pos_kernel(%arg0: i32, %arg1: memref<1x8x16xf32, #tpu.memory_space<vmem>>, %arg2: memref<3x16x32xbf16, #tpu.memory_space<vmem>>, %arg3: memref<1x32xf32, #tpu.memory_space<vmem>>, %arg4: memref<8x32xf32, #tpu.memory_space<vmem>>, %arg5: memref<1x8x32xf32, #tpu.memory_space<vmem>>) attributes {dimension_semantics = [#tpu.dimension_semantics<parallel>], iteration_bounds = array<i64: 2>, scalar_prefetch = 0 : i64, scratch_operands = 0 : i64, tpu.core_type = #tpu.core_type<tc>, window_params = [{transform_indices = @transform_0, window_bounds = array<i64: 1, 8, 16>}, {pipeline_mode = #tpu.pipeline_mode<synchronous>, transform_indices = @transform_1, window_bounds = array<i64: 3, 16, 32>}, {pipeline_mode = #tpu.pipeline_mode<synchronous>, transform_indices = @transform_2, window_bounds = array<i64: 1, 32>}, {pipeline_mode = #tpu.pipeline_mode<synchronous>, transform_indices = @transform_3, window_bounds = array<i64: 8, 32>}, {transform_indices = @transform_4, window_bounds = array<i64: 1, 8, 32>}]} {
    %c0 = arith.constant 0 : index
    %c0_0 = arith.constant 0 : index
    %c0_1 = arith.constant 0 : index
    %0 = vector.load %arg1[%c0, %c0_0, %c0_1] : memref<1x8x16xf32, #tpu.memory_space<vmem>>, vector<1x8x16xf32>
    %1 = vector.shape_cast %0 : vector<1x8x16xf32> to vector<8x16xf32>
    %2 = tpu.iota {dimensions = array<i32: 0>} : vector<8x1xi32>
    %c1_i32 = arith.constant 1 : i32
    %3 = vector.broadcast %c1_i32 : i32 to vector<8x1xi32>
    %4 = arith.cmpi sge, %2, %3 : vector<8x1xi32>
    %c1_i32_2 = arith.constant 1 : i32
    %5 = tpu.dynamic_rotate %1 by %c1_i32_2 dim 0 : vector<8x16xf32>, i32 -> vector<8x16xf32>
    %cst = arith.constant 0.000000e+00 : f32
    %6 = vector.shape_cast %4 : vector<8x1xi1> to vector<8x1xi1>
    %7 = vector.broadcast %6 : vector<8x1xi1> to vector<8x16xi1>
    %8 = vector.broadcast %cst : f32 to vector<8x16xf32>
    %9 = arith.select %7, %5, %8 : vector<8x16xi1>, vector<8x16xf32>
    %c7_i32 = arith.constant 7 : i32
    %10 = vector.broadcast %c7_i32 : i32 to vector<8x1xi32>
    %11 = arith.cmpi slt, %2, %10 : vector<8x1xi32>
    %c7_i32_3 = arith.constant 7 : i32
    %12 = tpu.dynamic_rotate %1 by %c7_i32_3 dim 0 : vector<8x16xf32>, i32 -> vector<8x16xf32>
    %cst_4 = arith.constant 0.000000e+00 : f32
    %13 = vector.shape_cast %11 : vector<8x1xi1> to vector<8x1xi1>
    %14 = vector.broadcast %13 : vector<8x1xi1> to vector<8x16xi1>
    %15 = vector.broadcast %cst_4 : f32 to vector<8x16xf32>
    %16 = arith.select %14, %12, %15 : vector<8x16xi1>, vector<8x16xf32>
    %c0_5 = arith.constant 0 : index
    %c0_6 = arith.constant 0 : index
    %c0_7 = arith.constant 0 : index
    %17 = vector.load %arg2[%c0_5, %c0_6, %c0_7] : memref<3x16x32xbf16, #tpu.memory_space<vmem>>, vector<1x16x32xbf16>
    %18 = vector.shape_cast %17 : vector<1x16x32xbf16> to vector<16x32xbf16>
    %19 = arith.truncf %9 : vector<8x16xf32> to vector<8x16xbf16>
    %cst_8 = arith.constant dense<0.000000e+00> : vector<8x32xf32>
    %20 = tpu.matmul %19, %18, %cst_8 {dimension_numbers = #tpu.dot_dimension_numbers<[1], [0], [0], [1], [0, 0, 1, 1], [], []>} : vector<8x16xbf16>, vector<16x32xbf16>, vector<8x32xf32> -> vector<8x32xf32>
    %c1 = arith.constant 1 : index
    %c0_9 = arith.constant 0 : index
    %c0_10 = arith.constant 0 : index
    %21 = vector.load %arg2[%c1, %c0_9, %c0_10] : memref<3x16x32xbf16, #tpu.memory_space<vmem>>, vector<1x16x32xbf16>
    %22 = vector.shape_cast %21 : vector<1x16x32xbf16> to vector<16x32xbf16>
    %23 = arith.truncf %1 : vector<8x16xf32> to vector<8x16xbf16>
    %cst_11 = arith.constant dense<0.000000e+00> : vector<8x32xf32>
    %24 = tpu.matmul %23, %22, %cst_11 {dimension_numbers = #tpu.dot_dimension_numbers<[1], [0], [0], [1], [0, 0, 1, 1], [], []>} : vector<8x16xbf16>, vector<16x32xbf16>, vector<8x32xf32> -> vector<8x32xf32>
    %25 = arith.addf %20, %24 : vector<8x32xf32>
    %c2 = arith.constant 2 : index
    %c0_12 = arith.constant 0 : index
    %c0_13 = arith.constant 0 : index
    %26 = vector.load %arg2[%c2, %c0_12, %c0_13] : memref<3x16x32xbf16, #tpu.memory_space<vmem>>, vector<1x16x32xbf16>
    %27 = vector.shape_cast %26 : vector<1x16x32xbf16> to vector<16x32xbf16>
    %28 = arith.truncf %16 : vector<8x16xf32> to vector<8x16xbf16>
    %cst_14 = arith.constant dense<0.000000e+00> : vector<8x32xf32>
    %29 = tpu.matmul %28, %27, %cst_14 {dimension_numbers = #tpu.dot_dimension_numbers<[1], [0], [0], [1], [0, 0, 1, 1], [], []>} : vector<8x16xbf16>, vector<16x32xbf16>, vector<8x32xf32> -> vector<8x32xf32>
    %30 = arith.addf %25, %29 : vector<8x32xf32>
    %c0_15 = arith.constant 0 : index
    %c0_16 = arith.constant 0 : index
    %31 = vector.load %arg3[%c0_15, %c0_16] : memref<1x32xf32, #tpu.memory_space<vmem>>, vector<1x32xf32>
    %32 = vector.broadcast %31 : vector<1x32xf32> to vector<8x32xf32>
    %33 = arith.addf %30, %32 : vector<8x32xf32>
    %c0_17 = arith.constant 0 : index
    %c0_18 = arith.constant 0 : index
    %34 = vector.load %arg4[%c0_17, %c0_18] : memref<8x32xf32, #tpu.memory_space<vmem>>, vector<8x32xf32>
    %35 = arith.addf %33, %34 : vector<8x32xf32>
    %c0_19 = arith.constant 0 : index
    %c0_20 = arith.constant 0 : index
    %c0_21 = arith.constant 0 : index
    %36 = vector.load %arg5[%c0_19, %c0_20, %c0_21] : memref<1x8x32xf32, #tpu.memory_space<vmem>>, vector<1x8x32xf32>
    %37 = vector.shape_cast %36 : vector<1x8x32xf32> to vector<8x32xf32>
    %38 = vector.shape_cast %35 : vector<8x32xf32> to vector<1x8x32xf32>
    tpu.vector_store %arg5[%c0_19, %c0_20, %c0_21], %38 {strides = array<i32>} : memref<1x8x32xf32, #tpu.memory_space<vmem>>, vector<1x8x32xf32>,
    return
  }
  func.func @transform_0(%arg0: i32) -> (i32, i32, i32) {
    %c0_i32 = arith.constant 0 : i32
    %c0_i32_0 = arith.constant 0 : i32
    %c0_i32_1 = arith.constant 0 : i32
    return %arg0, %c0_i32, %c0_i32_0 : i32, i32, i32
  }
  func.func @transform_1(%arg0: i32) -> (i32, i32, i32) {
    %c0_i32 = arith.constant 0 : i32
    %c0_i32_0 = arith.constant 0 : i32
    %c0_i32_1 = arith.constant 0 : i32
    %c0_i32_2 = arith.constant 0 : i32
    return %c0_i32, %c0_i32_0, %c0_i32_1 : i32, i32, i32
  }
  func.func @transform_2(%arg0: i32) -> (i32, i32) {
    %c0_i32 = arith.constant 0 : i32
    %c0_i32_0 = arith.constant 0 : i32
    %c0_i32_1 = arith.constant 0 : i32
    return %c0_i32, %c0_i32_0 : i32, i32
  }
  func.func @transform_3(%arg0: i32) -> (i32, i32) {
    %c0_i32 = arith.constant 0 : i32
    %c0_i32_0 = arith.constant 0 : i32
    %c0_i32_1 = arith.constant 0 : i32
    return %c0_i32, %c0_i32_0 : i32, i32
  }
  func.func @transform_4(%arg0: i32) -> (i32, i32, i32) {
    %c0_i32 = arith.constant 0 : i32
    %c0_i32_0 = arith.constant 0 : i32
    %c0_i32_1 = arith.constant 0 : i32
    return %arg0, %c0_i32, %c0_i32_0 : i32, i32, i32
  }
}

module attributes {stable_mosaic.version = 11 : i64} {
  func.func @_conv3_kernel(%arg0: i32, %arg1: memref<1x8x18xf32, #tpu.memory_space<vmem>>, %arg2: memref<3x18x32xbf16, #tpu.memory_space<vmem>>, %arg3: memref<1x32xf32, #tpu.memory_space<vmem>>, %arg4: memref<1x8x32xf32, #tpu.memory_space<vmem>>) attributes {dimension_semantics = [#tpu.dimension_semantics<parallel>], iteration_bounds = array<i64: 2>, scalar_prefetch = 0 : i64, scratch_operands = 0 : i64, tpu.core_type = #tpu.core_type<tc>, window_params = [{transform_indices = @transform_0, window_bounds = array<i64: 1, 8, 18>}, {pipeline_mode = #tpu.pipeline_mode<synchronous>, transform_indices = @transform_1, window_bounds = array<i64: 3, 18, 32>}, {pipeline_mode = #tpu.pipeline_mode<synchronous>, transform_indices = @transform_2, window_bounds = array<i64: 1, 32>}, {transform_indices = @transform_3, window_bounds = array<i64: 1, 8, 32>}]} {
    %c0 = arith.constant 0 : index
    %c0_0 = arith.constant 0 : index
    %c0_1 = arith.constant 0 : index
    %0 = vector.load %arg1[%c0, %c0_0, %c0_1] : memref<1x8x18xf32, #tpu.memory_space<vmem>>, vector<1x8x18xf32>
    %1 = vector.shape_cast %0 : vector<1x8x18xf32> to vector<8x18xf32>
    %2 = tpu.iota {dimensions = array<i32: 0>} : vector<8x1xi32>
    %c1_i32 = arith.constant 1 : i32
    %3 = vector.broadcast %c1_i32 : i32 to vector<8x1xi32>
    %4 = arith.cmpi sge, %2, %3 : vector<8x1xi32>
    %c1_i32_2 = arith.constant 1 : i32
    %5 = tpu.dynamic_rotate %1 by %c1_i32_2 dim 0 : vector<8x18xf32>, i32 -> vector<8x18xf32>
    %cst = arith.constant 0.000000e+00 : f32
    %6 = vector.shape_cast %4 : vector<8x1xi1> to vector<8x1xi1>
    %7 = vector.broadcast %6 : vector<8x1xi1> to vector<8x18xi1>
    %8 = vector.broadcast %cst : f32 to vector<8x18xf32>
    %9 = arith.select %7, %5, %8 : vector<8x18xi1>, vector<8x18xf32>
    %c7_i32 = arith.constant 7 : i32
    %10 = vector.broadcast %c7_i32 : i32 to vector<8x1xi32>
    %11 = arith.cmpi slt, %2, %10 : vector<8x1xi32>
    %c7_i32_3 = arith.constant 7 : i32
    %12 = tpu.dynamic_rotate %1 by %c7_i32_3 dim 0 : vector<8x18xf32>, i32 -> vector<8x18xf32>
    %cst_4 = arith.constant 0.000000e+00 : f32
    %13 = vector.shape_cast %11 : vector<8x1xi1> to vector<8x1xi1>
    %14 = vector.broadcast %13 : vector<8x1xi1> to vector<8x18xi1>
    %15 = vector.broadcast %cst_4 : f32 to vector<8x18xf32>
    %16 = arith.select %14, %12, %15 : vector<8x18xi1>, vector<8x18xf32>
    %c0_5 = arith.constant 0 : index
    %c0_6 = arith.constant 0 : index
    %c0_7 = arith.constant 0 : index
    %17 = vector.load %arg2[%c0_5, %c0_6, %c0_7] : memref<3x18x32xbf16, #tpu.memory_space<vmem>>, vector<1x18x32xbf16>
    %18 = vector.shape_cast %17 : vector<1x18x32xbf16> to vector<18x32xbf16>
    %19 = arith.truncf %9 : vector<8x18xf32> to vector<8x18xbf16>
    %cst_8 = arith.constant dense<0.000000e+00> : vector<8x32xf32>
    %20 = tpu.matmul %19, %18, %cst_8 {dimension_numbers = #tpu.dot_dimension_numbers<[1], [0], [0], [1], [0, 0, 1, 1], [], []>} : vector<8x18xbf16>, vector<18x32xbf16>, vector<8x32xf32> -> vector<8x32xf32>
    %c1 = arith.constant 1 : index
    %c0_9 = arith.constant 0 : index
    %c0_10 = arith.constant 0 : index
    %21 = vector.load %arg2[%c1, %c0_9, %c0_10] : memref<3x18x32xbf16, #tpu.memory_space<vmem>>, vector<1x18x32xbf16>
    %22 = vector.shape_cast %21 : vector<1x18x32xbf16> to vector<18x32xbf16>
    %23 = arith.truncf %1 : vector<8x18xf32> to vector<8x18xbf16>
    %cst_11 = arith.constant dense<0.000000e+00> : vector<8x32xf32>
    %24 = tpu.matmul %23, %22, %cst_11 {dimension_numbers = #tpu.dot_dimension_numbers<[1], [0], [0], [1], [0, 0, 1, 1], [], []>} : vector<8x18xbf16>, vector<18x32xbf16>, vector<8x32xf32> -> vector<8x32xf32>
    %25 = arith.addf %20, %24 : vector<8x32xf32>
    %c2 = arith.constant 2 : index
    %c0_12 = arith.constant 0 : index
    %c0_13 = arith.constant 0 : index
    %26 = vector.load %arg2[%c2, %c0_12, %c0_13] : memref<3x18x32xbf16, #tpu.memory_space<vmem>>, vector<1x18x32xbf16>
    %27 = vector.shape_cast %26 : vector<1x18x32xbf16> to vector<18x32xbf16>
    %28 = arith.truncf %16 : vector<8x18xf32> to vector<8x18xbf16>
    %cst_14 = arith.constant dense<0.000000e+00> : vector<8x32xf32>
    %29 = tpu.matmul %28, %27, %cst_14 {dimension_numbers = #tpu.dot_dimension_numbers<[1], [0], [0], [1], [0, 0, 1, 1], [], []>} : vector<8x18xbf16>, vector<18x32xbf16>, vector<8x32xf32> -> vector<8x32xf32>
    %30 = arith.addf %25, %29 : vector<8x32xf32>
    %c0_15 = arith.constant 0 : index
    %c0_16 = arith.constant 0 : index
    %31 = vector.load %arg3[%c0_15, %c0_16] : memref<1x32xf32, #tpu.memory_space<vmem>>, vector<1x32xf32>
    %32 = vector.broadcast %31 : vector<1x32xf32> to vector<8x32xf32>
    %33 = arith.addf %30, %32 : vector<8x32xf32>
    %c0_17 = arith.constant 0 : index
    %c0_18 = arith.constant 0 : index
    %c0_19 = arith.constant 0 : index
    %34 = vector.load %arg4[%c0_17, %c0_18, %c0_19] : memref<1x8x32xf32, #tpu.memory_space<vmem>>, vector<1x8x32xf32>
    %35 = vector.shape_cast %34 : vector<1x8x32xf32> to vector<8x32xf32>
    %36 = vector.shape_cast %33 : vector<8x32xf32> to vector<1x8x32xf32>
    tpu.vector_store %arg4[%c0_17, %c0_18, %c0_19], %36 {strides = array<i32>} : memref<1x8x32xf32, #tpu.memory_space<vmem>>, vector<1x8x32xf32>,
    return
  }
  func.func @transform_0(%arg0: i32) -> (i32, i32, i32) {
    %c0_i32 = arith.constant 0 : i32
    %c0_i32_0 = arith.constant 0 : i32
    %c0_i32_1 = arith.constant 0 : i32
    return %arg0, %c0_i32, %c0_i32_0 : i32, i32, i32
  }
  func.func @transform_1(%arg0: i32) -> (i32, i32, i32) {
    %c0_i32 = arith.constant 0 : i32
    %c0_i32_0 = arith.constant 0 : i32
    %c0_i32_1 = arith.constant 0 : i32
    %c0_i32_2 = arith.constant 0 : i32
    return %c0_i32, %c0_i32_0, %c0_i32_1 : i32, i32, i32
  }
  func.func @transform_2(%arg0: i32) -> (i32, i32) {
    %c0_i32 = arith.constant 0 : i32
    %c0_i32_0 = arith.constant 0 : i32
    %c0_i32_1 = arith.constant 0 : i32
    return %c0_i32, %c0_i32_0 : i32, i32
  }
  func.func @transform_3(%arg0: i32) -> (i32, i32, i32) {
    %c0_i32 = arith.constant 0 : i32
    %c0_i32_0 = arith.constant 0 : i32
    %c0_i32_1 = arith.constant 0 : i32
    return %arg0, %c0_i32, %c0_i32_0 : i32, i32, i32
  }
}

module attributes {stable_mosaic.version = 11 : i64} {
  func.func @_linear_kernel(%arg0: i32, %arg1: i32, %arg2: i32, %arg3: memref<2x33xbf16, #tpu.memory_space<vmem>>, %arg4: memref<33x32xbf16, #tpu.memory_space<vmem>>, %arg5: memref<1x32xf32, #tpu.memory_space<vmem>>, %arg6: memref<2x32xf32, #tpu.memory_space<vmem>>, %arg7: memref<2x32xf32, #tpu.memory_space<vmem>>) attributes {dimension_semantics = [#tpu.dimension_semantics<parallel>, #tpu.dimension_semantics<parallel>, #tpu.dimension_semantics<arbitrary>], iteration_bounds = array<i64: 1, 1, 1>, scalar_prefetch = 0 : i64, scratch_operands = 1 : i64, tpu.core_type = #tpu.core_type<tc>, window_params = [{transform_indices = @transform_0, window_bounds = array<i64: 2, 33>}, {transform_indices = @transform_1, window_bounds = array<i64: 33, 32>}, {transform_indices = @transform_2, window_bounds = array<i64: 1, 32>}, {transform_indices = @transform_3, window_bounds = array<i64: 2, 32>}]} {
    %c0_i32 = arith.constant 0 : i32
    %0 = arith.cmpi eq, %arg2, %c0_i32 : i32
    %1 = arith.extui %0 : i1 to i32
    %c0_i32_0 = arith.constant 0 : i32
    %2 = arith.cmpi ne, %1, %c0_i32_0 : i32
    scf.if %2 {
      %cst_10 = arith.constant 0.000000e+00 : f32
      %12 = vector.broadcast %cst_10 : f32 to vector<2x32xf32>
      %c0_11 = arith.constant 0 : index
      %c0_12 = arith.constant 0 : index
      %13 = vector.load %arg7[%c0_11, %c0_12] : memref<2x32xf32, #tpu.memory_space<vmem>>, vector<2x32xf32>
      tpu.vector_store %arg7[%c0_11, %c0_12], %12 {strides = array<i32>} : memref<2x32xf32, #tpu.memory_space<vmem>>, vector<2x32xf32>,
    } else {
    }
    %c0 = arith.constant 0 : index
    %c0_1 = arith.constant 0 : index
    %3 = vector.load %arg7[%c0, %c0_1] : memref<2x32xf32, #tpu.memory_space<vmem>>, vector<2x32xf32>
    %c0_2 = arith.constant 0 : index
    %c0_3 = arith.constant 0 : index
    %4 = vector.load %arg3[%c0_2, %c0_3] : memref<2x33xbf16, #tpu.memory_space<vmem>>, vector<2x33xbf16>
    %c0_4 = arith.constant 0 : index
    %c0_5 = arith.constant 0 : index
    %5 = vector.load %arg4[%c0_4, %c0_5] : memref<33x32xbf16, #tpu.memory_space<vmem>>, vector<33x32xbf16>
    %cst = arith.constant dense<0.000000e+00> : vector<2x32xf32>
    %6 = tpu.matmul %4, %5, %cst {dimension_numbers = #tpu.dot_dimension_numbers<[1], [0], [0], [1], [0, 0, 1, 1], [], []>} : vector<2x33xbf16>, vector<33x32xbf16>, vector<2x32xf32> -> vector<2x32xf32>
    %7 = arith.addf %3, %6 : vector<2x32xf32>
    %c0_6 = arith.constant 0 : index
    %c0_7 = arith.constant 0 : index
    %8 = vector.load %arg7[%c0_6, %c0_7] : memref<2x32xf32, #tpu.memory_space<vmem>>, vector<2x32xf32>
    tpu.vector_store %arg7[%c0_6, %c0_7], %7 {strides = array<i32>} : memref<2x32xf32, #tpu.memory_space<vmem>>, vector<2x32xf32>,
    %c0_i32_8 = arith.constant 0 : i32
    %9 = arith.cmpi eq, %arg2, %c0_i32_8 : i32
    %10 = arith.extui %9 : i1 to i32
    %c0_i32_9 = arith.constant 0 : i32
    %11 = arith.cmpi ne, %10, %c0_i32_9 : i32
    scf.if %11 {
      %c0_10 = arith.constant 0 : index
      %c0_11 = arith.constant 0 : index
      %12 = vector.load %arg7[%c0_10, %c0_11] : memref<2x32xf32, #tpu.memory_space<vmem>>, vector<2x32xf32>
      %c0_12 = arith.constant 0 : index
      %c0_13 = arith.constant 0 : index
      %13 = vector.load %arg5[%c0_12, %c0_13] : memref<1x32xf32, #tpu.memory_space<vmem>>, vector<1x32xf32>
      %14 = vector.broadcast %13 : vector<1x32xf32> to vector<2x32xf32>
      %15 = arith.addf %12, %14 : vector<2x32xf32>
      %c0_14 = arith.constant 0 : index
      %c0_15 = arith.constant 0 : index
      %16 = vector.load %arg6[%c0_14, %c0_15] : memref<2x32xf32, #tpu.memory_space<vmem>>, vector<2x32xf32>
      tpu.vector_store %arg6[%c0_14, %c0_15], %15 {strides = array<i32>} : memref<2x32xf32, #tpu.memory_space<vmem>>, vector<2x32xf32>,
    } else {
    }
    return
  }
  func.func @transform_0(%arg0: i32, %arg1: i32, %arg2: i32) -> (i32, i32) {
    %c0_i32 = arith.constant 0 : i32
    return %arg0, %arg2 : i32, i32
  }
  func.func @transform_1(%arg0: i32, %arg1: i32, %arg2: i32) -> (i32, i32) {
    %c0_i32 = arith.constant 0 : i32
    return %arg2, %arg1 : i32, i32
  }
  func.func @transform_2(%arg0: i32, %arg1: i32, %arg2: i32) -> (i32, i32) {
    %c0_i32 = arith.constant 0 : i32
    %c0_i32_0 = arith.constant 0 : i32
    return %c0_i32, %arg1 : i32, i32
  }
  func.func @transform_3(%arg0: i32, %arg1: i32, %arg2: i32) -> (i32, i32) {
    %c0_i32 = arith.constant 0 : i32
    return %arg0, %arg1 : i32, i32
  }
}

module attributes {stable_mosaic.version = 11 : i64} {
  func.func @_linear_kernel(%arg0: i32, %arg1: i32, %arg2: i32, %arg3: memref<2x32xbf16, #tpu.memory_space<vmem>>, %arg4: memref<32x32xbf16, #tpu.memory_space<vmem>>, %arg5: memref<1x32xf32, #tpu.memory_space<vmem>>, %arg6: memref<2x32xf32, #tpu.memory_space<vmem>>, %arg7: memref<2x32xf32, #tpu.memory_space<vmem>>) attributes {dimension_semantics = [#tpu.dimension_semantics<parallel>, #tpu.dimension_semantics<parallel>, #tpu.dimension_semantics<arbitrary>], iteration_bounds = array<i64: 1, 1, 1>, scalar_prefetch = 0 : i64, scratch_operands = 1 : i64, tpu.core_type = #tpu.core_type<tc>, window_params = [{transform_indices = @transform_0, window_bounds = array<i64: 2, 32>}, {transform_indices = @transform_1, window_bounds = array<i64: 32, 32>}, {transform_indices = @transform_2, window_bounds = array<i64: 1, 32>}, {transform_indices = @transform_3, window_bounds = array<i64: 2, 32>}]} {
    %c0_i32 = arith.constant 0 : i32
    %0 = arith.cmpi eq, %arg2, %c0_i32 : i32
    %1 = arith.extui %0 : i1 to i32
    %c0_i32_0 = arith.constant 0 : i32
    %2 = arith.cmpi ne, %1, %c0_i32_0 : i32
    scf.if %2 {
      %cst_10 = arith.constant 0.000000e+00 : f32
      %12 = vector.broadcast %cst_10 : f32 to vector<2x32xf32>
      %c0_11 = arith.constant 0 : index
      %c0_12 = arith.constant 0 : index
      %13 = vector.load %arg7[%c0_11, %c0_12] : memref<2x32xf32, #tpu.memory_space<vmem>>, vector<2x32xf32>
      tpu.vector_store %arg7[%c0_11, %c0_12], %12 {strides = array<i32>} : memref<2x32xf32, #tpu.memory_space<vmem>>, vector<2x32xf32>,
    } else {
    }
    %c0 = arith.constant 0 : index
    %c0_1 = arith.constant 0 : index
    %3 = vector.load %arg7[%c0, %c0_1] : memref<2x32xf32, #tpu.memory_space<vmem>>, vector<2x32xf32>
    %c0_2 = arith.constant 0 : index
    %c0_3 = arith.constant 0 : index
    %4 = vector.load %arg3[%c0_2, %c0_3] : memref<2x32xbf16, #tpu.memory_space<vmem>>, vector<2x32xbf16>
    %c0_4 = arith.constant 0 : index
    %c0_5 = arith.constant 0 : index
    %5 = vector.load %arg4[%c0_4, %c0_5] : memref<32x32xbf16, #tpu.memory_space<vmem>>, vector<32x32xbf16>
    %cst = arith.constant dense<0.000000e+00> : vector<2x32xf32>
    %6 = tpu.matmul %4, %5, %cst {dimension_numbers = #tpu.dot_dimension_numbers<[1], [0], [0], [1], [0, 0, 1, 1], [], []>} : vector<2x32xbf16>, vector<32x32xbf16>, vector<2x32xf32> -> vector<2x32xf32>
    %7 = arith.addf %3, %6 : vector<2x32xf32>
    %c0_6 = arith.constant 0 : index
    %c0_7 = arith.constant 0 : index
    %8 = vector.load %arg7[%c0_6, %c0_7] : memref<2x32xf32, #tpu.memory_space<vmem>>, vector<2x32xf32>
    tpu.vector_store %arg7[%c0_6, %c0_7], %7 {strides = array<i32>} : memref<2x32xf32, #tpu.memory_space<vmem>>, vector<2x32xf32>,
    %c0_i32_8 = arith.constant 0 : i32
    %9 = arith.cmpi eq, %arg2, %c0_i32_8 : i32
    %10 = arith.extui %9 : i1 to i32
    %c0_i32_9 = arith.constant 0 : i32
    %11 = arith.cmpi ne, %10, %c0_i32_9 : i32
    scf.if %11 {
      %c0_10 = arith.constant 0 : index
      %c0_11 = arith.constant 0 : index
      %12 = vector.load %arg7[%c0_10, %c0_11] : memref<2x32xf32, #tpu.memory_space<vmem>>, vector<2x32xf32>
      %c0_12 = arith.constant 0 : index
      %c0_13 = arith.constant 0 : index
      %13 = vector.load %arg5[%c0_12, %c0_13] : memref<1x32xf32, #tpu.memory_space<vmem>>, vector<1x32xf32>
      %14 = vector.broadcast %13 : vector<1x32xf32> to vector<2x32xf32>
      %15 = arith.addf %12, %14 : vector<2x32xf32>
      %c0_14 = arith.constant 0 : index
      %c0_15 = arith.constant 0 : index
      %16 = vector.load %arg6[%c0_14, %c0_15] : memref<2x32xf32, #tpu.memory_space<vmem>>, vector<2x32xf32>
      tpu.vector_store %arg6[%c0_14, %c0_15], %15 {strides = array<i32>} : memref<2x32xf32, #tpu.memory_space<vmem>>, vector<2x32xf32>,
    } else {
    }
    return
  }
  func.func @transform_0(%arg0: i32, %arg1: i32, %arg2: i32) -> (i32, i32) {
    %c0_i32 = arith.constant 0 : i32
    return %arg0, %arg2 : i32, i32
  }
  func.func @transform_1(%arg0: i32, %arg1: i32, %arg2: i32) -> (i32, i32) {
    %c0_i32 = arith.constant 0 : i32
    return %arg2, %arg1 : i32, i32
  }
  func.func @transform_2(%arg0: i32, %arg1: i32, %arg2: i32) -> (i32, i32) {
    %c0_i32 = arith.constant 0 : i32
    %c0_i32_0 = arith.constant 0 : i32
    return %c0_i32, %arg1 : i32, i32
  }
  func.func @transform_3(%arg0: i32, %arg1: i32, %arg2: i32) -> (i32, i32) {
    %c0_i32 = arith.constant 0 : i32
    return %arg0, %arg1 : i32, i32
  }
}

module attributes {stable_mosaic.version = 11 : i64} {
  func.func @_ffn_pre_kernel(%arg0: i32, %arg1: i32, %arg2: memref<1x24x32xf32, #tpu.memory_space<vmem>>, %arg3: memref<1x1x32xf32, #tpu.memory_space<vmem>>, %arg4: memref<1x32xf32, #tpu.memory_space<vmem>>, %arg5: memref<1x32xf32, #tpu.memory_space<vmem>>, %arg6: memref<32x64xbf16, #tpu.memory_space<vmem>>, %arg7: memref<1x64xf32, #tpu.memory_space<vmem>>, %arg8: memref<64x32xbf16, #tpu.memory_space<vmem>>, %arg9: memref<1x32xf32, #tpu.memory_space<vmem>>, %arg10: memref<1x24x32xf32, #tpu.memory_space<vmem>>) attributes {dimension_semantics = [#tpu.dimension_semantics<parallel>, #tpu.dimension_semantics<parallel>], iteration_bounds = array<i64: 2, 1>, scalar_prefetch = 0 : i64, scratch_operands = 0 : i64, tpu.core_type = #tpu.core_type<tc>, window_params = [{transform_indices = @transform_0, window_bounds = array<i64: 1, 24, 32>}, {transform_indices = @transform_1, window_bounds = array<i64: 1, 1, 32>}, {pipeline_mode = #tpu.pipeline_mode<synchronous>, transform_indices = @transform_2, window_bounds = array<i64: 1, 32>}, {pipeline_mode = #tpu.pipeline_mode<synchronous>, transform_indices = @transform_3, window_bounds = array<i64: 1, 32>}, {pipeline_mode = #tpu.pipeline_mode<synchronous>, transform_indices = @transform_4, window_bounds = array<i64: 32, 64>}, {pipeline_mode = #tpu.pipeline_mode<synchronous>, transform_indices = @transform_5, window_bounds = array<i64: 1, 64>}, {pipeline_mode = #tpu.pipeline_mode<synchronous>, transform_indices = @transform_6, window_bounds = array<i64: 64, 32>}, {pipeline_mode = #tpu.pipeline_mode<synchronous>, transform_indices = @transform_7, window_bounds = array<i64: 1, 32>}, {transform_indices = @transform_8, window_bounds = array<i64: 1, 24, 32>}]} {
    %c0 = arith.constant 0 : index
    %c0_0 = arith.constant 0 : index
    %c0_1 = arith.constant 0 : index
    %0 = vector.load %arg2[%c0, %c0_0, %c0_1] : memref<1x24x32xf32, #tpu.memory_space<vmem>>, vector<1x24x32xf32>
    %1 = vector.shape_cast %0 : vector<1x24x32xf32> to vector<24x32xf32>
    %c0_2 = arith.constant 0 : index
    %c0_3 = arith.constant 0 : index
    %c0_4 = arith.constant 0 : index
    %2 = vector.load %arg3[%c0_2, %c0_3, %c0_4] : memref<1x1x32xf32, #tpu.memory_space<vmem>>, vector<1x1x32xf32>
    %3 = vector.shape_cast %2 : vector<1x1x32xf32> to vector<1x32xf32>
    %4 = vector.broadcast %3 : vector<1x32xf32> to vector<24x32xf32>
    %5 = arith.addf %1, %4 : vector<24x32xf32>
    %c0_5 = arith.constant 0 : index
    %c0_6 = arith.constant 0 : index
    %6 = vector.load %arg4[%c0_5, %c0_6] : memref<1x32xf32, #tpu.memory_space<vmem>>, vector<1x32xf32>
    %c0_7 = arith.constant 0 : index
    %c0_8 = arith.constant 0 : index
    %7 = vector.load %arg5[%c0_7, %c0_8] : memref<1x32xf32, #tpu.memory_space<vmem>>, vector<1x32xf32>
    %cst = arith.constant dense<0.000000e+00> : vector<24xf32>
    %8 = vector.multi_reduction <add>, %5, %cst [1] : vector<24x32xf32> to vector<24xf32>
    %9 = vector.shape_cast %8 : vector<24xf32> to vector<24x1xf32>
    %cst_9 = arith.constant 3.200000e+01 : f32
    %10 = vector.broadcast %cst_9 : f32 to vector<24x1xf32>
    %11 = arith.divf %9, %10 : vector<24x1xf32>
    %12 = vector.broadcast %11 : vector<24x1xf32> to vector<24x32xf32>
    %13 = arith.subf %5, %12 : vector<24x32xf32>
    %14 = arith.mulf %13, %13 : vector<24x32xf32>
    %cst_10 = arith.constant dense<0.000000e+00> : vector<24xf32>
    %15 = vector.multi_reduction <add>, %14, %cst_10 [1] : vector<24x32xf32> to vector<24xf32>
    %16 = vector.shape_cast %15 : vector<24xf32> to vector<24x1xf32>
    %cst_11 = arith.constant 3.200000e+01 : f32
    %17 = vector.broadcast %cst_11 : f32 to vector<24x1xf32>
    %18 = arith.divf %16, %17 : vector<24x1xf32>
    %19 = vector.broadcast %11 : vector<24x1xf32> to vector<24x32xf32>
    %20 = arith.subf %5, %19 : vector<24x32xf32>
    %cst_12 = arith.constant 9.99999974E-6 : f32
    %21 = vector.broadcast %cst_12 : f32 to vector<24x1xf32>
    %22 = arith.addf %18, %21 : vector<24x1xf32>
    %23 = math.rsqrt %22 : vector<24x1xf32>
    %24 = vector.broadcast %23 : vector<24x1xf32> to vector<24x32xf32>
    %25 = arith.mulf %20, %24 : vector<24x32xf32>
    %26 = vector.broadcast %6 : vector<1x32xf32> to vector<24x32xf32>
    %27 = arith.mulf %25, %26 : vector<24x32xf32>
    %28 = vector.broadcast %7 : vector<1x32xf32> to vector<24x32xf32>
    %29 = arith.addf %27, %28 : vector<24x32xf32>
    %c0_13 = arith.constant 0 : index
    %c0_14 = arith.constant 0 : index
    %30 = vector.load %arg6[%c0_13, %c0_14] : memref<32x64xbf16, #tpu.memory_space<vmem>>, vector<32x64xbf16>
    %31 = arith.truncf %29 : vector<24x32xf32> to vector<24x32xbf16>
    %cst_15 = arith.constant dense<0.000000e+00> : vector<24x64xf32>
    %32 = tpu.matmul %31, %30, %cst_15 {dimension_numbers = #tpu.dot_dimension_numbers<[1], [0], [0], [1], [0, 0, 1, 1], [], []>} : vector<24x32xbf16>, vector<32x64xbf16>, vector<24x64xf32> -> vector<24x64xf32>
    %c0_16 = arith.constant 0 : index
    %c0_17 = arith.constant 0 : index
    %33 = vector.load %arg7[%c0_16, %c0_17] : memref<1x64xf32, #tpu.memory_space<vmem>>, vector<1x64xf32>
    %34 = vector.broadcast %33 : vector<1x64xf32> to vector<24x64xf32>
    %35 = arith.addf %32, %34 : vector<24x64xf32>
    %36 = arith.negf %35 : vector<24x64xf32>
    %37 = math.exp %36 : vector<24x64xf32>
    %cst_18 = arith.constant 1.000000e+00 : f32
    %38 = vector.broadcast %cst_18 : f32 to vector<24x64xf32>
    %39 = arith.addf %38, %37 : vector<24x64xf32>
    %40 = arith.divf %38, %39 : vector<24x64xf32>
    %41 = arith.mulf %35, %40 : vector<24x64xf32>
    %c0_19 = arith.constant 0 : index
    %c0_20 = arith.constant 0 : index
    %42 = vector.load %arg8[%c0_19, %c0_20] : memref<64x32xbf16, #tpu.memory_space<vmem>>, vector<64x32xbf16>
    %43 = arith.truncf %41 : vector<24x64xf32> to vector<24x64xbf16>
    %cst_21 = arith.constant dense<0.000000e+00> : vector<24x32xf32>
    %44 = tpu.matmul %43, %42, %cst_21 {dimension_numbers = #tpu.dot_dimension_numbers<[1], [0], [0], [1], [0, 0, 1, 1], [], []>} : vector<24x64xbf16>, vector<64x32xbf16>, vector<24x32xf32> -> vector<24x32xf32>
    %c0_22 = arith.constant 0 : index
    %c0_23 = arith.constant 0 : index
    %45 = vector.load %arg9[%c0_22, %c0_23] : memref<1x32xf32, #tpu.memory_space<vmem>>, vector<1x32xf32>
    %46 = vector.broadcast %45 : vector<1x32xf32> to vector<24x32xf32>
    %47 = arith.addf %44, %46 : vector<24x32xf32>
    %cst_24 = arith.constant 5.000000e-01 : f32
    %48 = vector.broadcast %cst_24 : f32 to vector<24x32xf32>
    %49 = arith.mulf %48, %47 : vector<24x32xf32>
    %50 = arith.addf %5, %49 : vector<24x32xf32>
    %c0_25 = arith.constant 0 : index
    %c0_26 = arith.constant 0 : index
    %c0_27 = arith.constant 0 : index
    %51 = vector.load %arg10[%c0_25, %c0_26, %c0_27] : memref<1x24x32xf32, #tpu.memory_space<vmem>>, vector<1x24x32xf32>
    %52 = vector.shape_cast %51 : vector<1x24x32xf32> to vector<24x32xf32>
    %53 = vector.shape_cast %50 : vector<24x32xf32> to vector<1x24x32xf32>
    tpu.vector_store %arg10[%c0_25, %c0_26, %c0_27], %53 {strides = array<i32>} : memref<1x24x32xf32, #tpu.memory_space<vmem>>, vector<1x24x32xf32>,
    return
  }
  func.func @transform_0(%arg0: i32, %arg1: i32) -> (i32, i32, i32) {
    %c0_i32 = arith.constant 0 : i32
    %c0_i32_0 = arith.constant 0 : i32
    return %arg0, %arg1, %c0_i32 : i32, i32, i32
  }
  func.func @transform_1(%arg0: i32, %arg1: i32) -> (i32, i32, i32) {
    %c0_i32 = arith.constant 0 : i32
    %c0_i32_0 = arith.constant 0 : i32
    %c0_i32_1 = arith.constant 0 : i32
    return %arg0, %c0_i32, %c0_i32_0 : i32, i32, i32
  }
  func.func @transform_2(%arg0: i32, %arg1: i32) -> (i32, i32) {
    %c0_i32 = arith.constant 0 : i32
    %c0_i32_0 = arith.constant 0 : i32
    %c0_i32_1 = arith.constant 0 : i32
    return %c0_i32, %c0_i32_0 : i32, i32
  }
  func.func @transform_3(%arg0: i32, %arg1: i32) -> (i32, i32) {
    %c0_i32 = arith.constant 0 : i32
    %c0_i32_0 = arith.constant 0 : i32
    %c0_i32_1 = arith.constant 0 : i32
    return %c0_i32, %c0_i32_0 : i32, i32
  }
  func.func @transform_4(%arg0: i32, %arg1: i32) -> (i32, i32) {
    %c0_i32 = arith.constant 0 : i32
    %c0_i32_0 = arith.constant 0 : i32
    %c0_i32_1 = arith.constant 0 : i32
    return %c0_i32, %c0_i32_0 : i32, i32
  }
  func.func @transform_5(%arg0: i32, %arg1: i32) -> (i32, i32) {
    %c0_i32 = arith.constant 0 : i32
    %c0_i32_0 = arith.constant 0 : i32
    %c0_i32_1 = arith.constant 0 : i32
    return %c0_i32, %c0_i32_0 : i32, i32
  }
  func.func @transform_6(%arg0: i32, %arg1: i32) -> (i32, i32) {
    %c0_i32 = arith.constant 0 : i32
    %c0_i32_0 = arith.constant 0 : i32
    %c0_i32_1 = arith.constant 0 : i32
    return %c0_i32, %c0_i32_0 : i32, i32
  }
  func.func @transform_7(%arg0: i32, %arg1: i32) -> (i32, i32) {
    %c0_i32 = arith.constant 0 : i32
    %c0_i32_0 = arith.constant 0 : i32
    %c0_i32_1 = arith.constant 0 : i32
    return %c0_i32, %c0_i32_0 : i32, i32
  }
  func.func @transform_8(%arg0: i32, %arg1: i32) -> (i32, i32, i32) {
    %c0_i32 = arith.constant 0 : i32
    %c0_i32_0 = arith.constant 0 : i32
    return %arg0, %arg1, %c0_i32 : i32, i32, i32
  }
}

module attributes {stable_mosaic.version = 11 : i64} {
  func.func @_mha_kernel(%arg0: i32, %arg1: memref<2xi32, #tpu.memory_space<smem>>, %arg2: memref<1x24x32xf32, #tpu.memory_space<vmem>>, %arg3: memref<1x32xf32, #tpu.memory_space<vmem>>, %arg4: memref<1x32xf32, #tpu.memory_space<vmem>>, %arg5: memref<32x32xbf16, #tpu.memory_space<vmem>>, %arg6: memref<32x32xbf16, #tpu.memory_space<vmem>>, %arg7: memref<32x32xbf16, #tpu.memory_space<vmem>>, %arg8: memref<1x32xf32, #tpu.memory_space<vmem>>, %arg9: memref<1x32xf32, #tpu.memory_space<vmem>>, %arg10: memref<1x32xf32, #tpu.memory_space<vmem>>, %arg11: memref<32x32xbf16, #tpu.memory_space<vmem>>, %arg12: memref<1x32xf32, #tpu.memory_space<vmem>>, %arg13: memref<1x24x32xf32, #tpu.memory_space<vmem>>) attributes {dimension_semantics = [#tpu.dimension_semantics<parallel>], iteration_bounds = array<i64: 2>, scalar_prefetch = 1 : i64, scratch_operands = 0 : i64, tpu.core_type = #tpu.core_type<tc>, window_params = [{transform_indices = @transform_0, window_bounds = array<i64: 1, 24, 32>}, {pipeline_mode = #tpu.pipeline_mode<synchronous>, transform_indices = @transform_1, window_bounds = array<i64: 1, 32>}, {pipeline_mode = #tpu.pipeline_mode<synchronous>, transform_indices = @transform_2, window_bounds = array<i64: 1, 32>}, {pipeline_mode = #tpu.pipeline_mode<synchronous>, transform_indices = @transform_3, window_bounds = array<i64: 32, 32>}, {pipeline_mode = #tpu.pipeline_mode<synchronous>, transform_indices = @transform_4, window_bounds = array<i64: 32, 32>}, {pipeline_mode = #tpu.pipeline_mode<synchronous>, transform_indices = @transform_5, window_bounds = array<i64: 32, 32>}, {pipeline_mode = #tpu.pipeline_mode<synchronous>, transform_indices = @transform_6, window_bounds = array<i64: 1, 32>}, {pipeline_mode = #tpu.pipeline_mode<synchronous>, transform_indices = @transform_7, window_bounds = array<i64: 1, 32>}, {pipeline_mode = #tpu.pipeline_mode<synchronous>, transform_indices = @transform_8, window_bounds = array<i64: 1, 32>}, {pipeline_mode = #tpu.pipeline_mode<synchronous>, transform_indices = @transform_9, window_bounds = array<i64: 32, 32>}, {pipeline_mode = #tpu.pipeline_mode<synchronous>, transform_indices = @transform_10, window_bounds = array<i64: 1, 32>}, {transform_indices = @transform_11, window_bounds = array<i64: 1, 24, 32>}]} {
    %0 = arith.index_cast %arg0 : i32 to index
    %1 = memref.load %arg1[%0] : memref<2xi32, #tpu.memory_space<smem>>
    %c0 = arith.constant 0 : index
    %c0_0 = arith.constant 0 : index
    %c0_1 = arith.constant 0 : index
    %2 = vector.load %arg2[%c0, %c0_0, %c0_1] : memref<1x24x32xf32, #tpu.memory_space<vmem>>, vector<1x24x32xf32>
    %3 = vector.shape_cast %2 : vector<1x24x32xf32> to vector<24x32xf32>
    %c0_2 = arith.constant 0 : index
    %c0_3 = arith.constant 0 : index
    %4 = vector.load %arg3[%c0_2, %c0_3] : memref<1x32xf32, #tpu.memory_space<vmem>>, vector<1x32xf32>
    %c0_4 = arith.constant 0 : index
    %c0_5 = arith.constant 0 : index
    %5 = vector.load %arg4[%c0_4, %c0_5] : memref<1x32xf32, #tpu.memory_space<vmem>>, vector<1x32xf32>
    %cst = arith.constant dense<0.000000e+00> : vector<24xf32>
    %6 = vector.multi_reduction <add>, %3, %cst [1] : vector<24x32xf32> to vector<24xf32>
    %7 = vector.shape_cast %6 : vector<24xf32> to vector<24x1xf32>
    %cst_6 = arith.constant 3.200000e+01 : f32
    %8 = vector.broadcast %cst_6 : f32 to vector<24x1xf32>
    %9 = arith.divf %7, %8 : vector<24x1xf32>
    %10 = vector.broadcast %9 : vector<24x1xf32> to vector<24x32xf32>
    %11 = arith.subf %3, %10 : vector<24x32xf32>
    %12 = arith.mulf %11, %11 : vector<24x32xf32>
    %cst_7 = arith.constant dense<0.000000e+00> : vector<24xf32>
    %13 = vector.multi_reduction <add>, %12, %cst_7 [1] : vector<24x32xf32> to vector<24xf32>
    %14 = vector.shape_cast %13 : vector<24xf32> to vector<24x1xf32>
    %cst_8 = arith.constant 3.200000e+01 : f32
    %15 = vector.broadcast %cst_8 : f32 to vector<24x1xf32>
    %16 = arith.divf %14, %15 : vector<24x1xf32>
    %17 = vector.broadcast %9 : vector<24x1xf32> to vector<24x32xf32>
    %18 = arith.subf %3, %17 : vector<24x32xf32>
    %cst_9 = arith.constant 9.99999974E-6 : f32
    %19 = vector.broadcast %cst_9 : f32 to vector<24x1xf32>
    %20 = arith.addf %16, %19 : vector<24x1xf32>
    %21 = math.rsqrt %20 : vector<24x1xf32>
    %22 = vector.broadcast %21 : vector<24x1xf32> to vector<24x32xf32>
    %23 = arith.mulf %18, %22 : vector<24x32xf32>
    %24 = vector.broadcast %4 : vector<1x32xf32> to vector<24x32xf32>
    %25 = arith.mulf %23, %24 : vector<24x32xf32>
    %26 = vector.broadcast %5 : vector<1x32xf32> to vector<24x32xf32>
    %27 = arith.addf %25, %26 : vector<24x32xf32>
    %28 = arith.truncf %27 : vector<24x32xf32> to vector<24x32xbf16>
    %c0_10 = arith.constant 0 : index
    %c0_11 = arith.constant 0 : index
    %29 = vector.load %arg5[%c0_10, %c0_11] : memref<32x32xbf16, #tpu.memory_space<vmem>>, vector<32x32xbf16>
    %cst_12 = arith.constant dense<0.000000e+00> : vector<24x32xf32>
    %30 = tpu.matmul %28, %29, %cst_12 {dimension_numbers = #tpu.dot_dimension_numbers<[1], [0], [0], [1], [0, 0, 1, 1], [], []>} : vector<24x32xbf16>, vector<32x32xbf16>, vector<24x32xf32> -> vector<24x32xf32>
    %c0_13 = arith.constant 0 : index
    %c0_14 = arith.constant 0 : index
    %31 = vector.load %arg8[%c0_13, %c0_14] : memref<1x32xf32, #tpu.memory_space<vmem>>, vector<1x32xf32>
    %32 = vector.broadcast %31 : vector<1x32xf32> to vector<24x32xf32>
    %33 = arith.addf %30, %32 : vector<24x32xf32>
    %c0_15 = arith.constant 0 : index
    %c0_16 = arith.constant 0 : index
    %34 = vector.load %arg6[%c0_15, %c0_16] : memref<32x32xbf16, #tpu.memory_space<vmem>>, vector<32x32xbf16>
    %cst_17 = arith.constant dense<0.000000e+00> : vector<24x32xf32>
    %35 = tpu.matmul %28, %34, %cst_17 {dimension_numbers = #tpu.dot_dimension_numbers<[1], [0], [0], [1], [0, 0, 1, 1], [], []>} : vector<24x32xbf16>, vector<32x32xbf16>, vector<24x32xf32> -> vector<24x32xf32>
    %c0_18 = arith.constant 0 : index
    %c0_19 = arith.constant 0 : index
    %36 = vector.load %arg9[%c0_18, %c0_19] : memref<1x32xf32, #tpu.memory_space<vmem>>, vector<1x32xf32>
    %37 = vector.broadcast %36 : vector<1x32xf32> to vector<24x32xf32>
    %38 = arith.addf %35, %37 : vector<24x32xf32>
    %c0_20 = arith.constant 0 : index
    %c0_21 = arith.constant 0 : index
    %39 = vector.load %arg7[%c0_20, %c0_21] : memref<32x32xbf16, #tpu.memory_space<vmem>>, vector<32x32xbf16>
    %cst_22 = arith.constant dense<0.000000e+00> : vector<24x32xf32>
    %40 = tpu.matmul %28, %39, %cst_22 {dimension_numbers = #tpu.dot_dimension_numbers<[1], [0], [0], [1], [0, 0, 1, 1], [], []>} : vector<24x32xbf16>, vector<32x32xbf16>, vector<24x32xf32> -> vector<24x32xf32>
    %c0_23 = arith.constant 0 : index
    %c0_24 = arith.constant 0 : index
    %41 = vector.load %arg10[%c0_23, %c0_24] : memref<1x32xf32, #tpu.memory_space<vmem>>, vector<1x32xf32>
    %42 = vector.broadcast %41 : vector<1x32xf32> to vector<24x32xf32>
    %43 = arith.addf %40, %42 : vector<24x32xf32>
    %44 = tpu.iota {dimensions = array<i32: 1>} : vector<1x24xi32>
    %45 = vector.broadcast %1 : i32 to vector<1x24xi32>
    %46 = arith.cmpi slt, %44, %45 : vector<1x24xi32>
    %47 = vector.extract_strided_slice %33 {offsets = [0, 0], sizes = [24, 8], strides = [1, 1]} : vector<24x32xf32> to vector<24x8xf32>
    %48 = arith.truncf %47 : vector<24x8xf32> to vector<24x8xbf16>
    %49 = vector.extract_strided_slice %38 {offsets = [0, 0], sizes = [24, 8], strides = [1, 1]} : vector<24x32xf32> to vector<24x8xf32>
    %50 = arith.truncf %49 : vector<24x8xf32> to vector<24x8xbf16>
    %51 = vector.extract_strided_slice %43 {offsets = [0, 0], sizes = [24, 8], strides = [1, 1]} : vector<24x32xf32> to vector<24x8xf32>
    %52 = arith.truncf %51 : vector<24x8xf32> to vector<24x8xbf16>
    %cst_25 = arith.constant dense<0.000000e+00> : vector<24x24xf32>
    %53 = tpu.matmul %48, %50, %cst_25 {dimension_numbers = #tpu.dot_dimension_numbers<[1], [1], [0], [0], [0, 0, 1, 0], [], []>} : vector<24x8xbf16>, vector<24x8xbf16>, vector<24x24xf32> -> vector<24x24xf32>
    %cst_26 = arith.constant 0.353553385 : f32
    %54 = vector.broadcast %cst_26 : f32 to vector<24x24xf32>
    %55 = arith.mulf %53, %54 : vector<24x24xf32>
    %cst_27 = arith.constant -1.000000e+30 : f32
    %56 = vector.shape_cast %46 : vector<1x24xi1> to vector<1x24xi1>
    %57 = vector.broadcast %56 : vector<1x24xi1> to vector<24x24xi1>
    %58 = vector.broadcast %cst_27 : f32 to vector<24x24xf32>
    %59 = arith.select %57, %55, %58 : vector<24x24xi1>, vector<24x24xf32>
    %cst_28 = arith.constant dense<0xFF800000> : vector<24xf32>
    %60 = vector.multi_reduction <maximumf>, %59, %cst_28 [1] : vector<24x24xf32> to vector<24xf32>
    %61 = vector.shape_cast %60 : vector<24xf32> to vector<24x1xf32>
    %62 = vector.broadcast %61 : vector<24x1xf32> to vector<24x24xf32>
    %63 = arith.subf %59, %62 : vector<24x24xf32>
    %64 = math.exp %63 : vector<24x24xf32>
    %cst_29 = arith.constant dense<0.000000e+00> : vector<24xf32>
    %65 = vector.multi_reduction <add>, %64, %cst_29 [1] : vector<24x24xf32> to vector<24xf32>
    %66 = vector.shape_cast %65 : vector<24xf32> to vector<24x1xf32>
    %67 = tpu.reciprocal %66 : vector<24x1xf32> -> vector<24x1xf32>
    %68 = arith.truncf %64 : vector<24x24xf32> to vector<24x24xbf16>
    %cst_30 = arith.constant dense<0.000000e+00> : vector<24x8xf32>
    %69 = tpu.matmul %68, %52, %cst_30 {dimension_numbers = #tpu.dot_dimension_numbers<[1], [0], [0], [1], [0, 0, 1, 1], [], []>} : vector<24x24xbf16>, vector<24x8xbf16>, vector<24x8xf32> -> vector<24x8xf32>
    %70 = vector.broadcast %67 : vector<24x1xf32> to vector<24x8xf32>
    %71 = arith.mulf %69, %70 : vector<24x8xf32>
    %72 = vector.extract_strided_slice %33 {offsets = [0, 8], sizes = [24, 8], strides = [1, 1]} : vector<24x32xf32> to vector<24x8xf32>
    %73 = arith.truncf %72 : vector<24x8xf32> to vector<24x8xbf16>
    %74 = vector.extract_strided_slice %38 {offsets = [0, 8], sizes = [24, 8], strides = [1, 1]} : vector<24x32xf32> to vector<24x8xf32>
    %75 = arith.truncf %74 : vector<24x8xf32> to vector<24x8xbf16>
    %76 = vector.extract_strided_slice %43 {offsets = [0, 8], sizes = [24, 8], strides = [1, 1]} : vector<24x32xf32> to vector<24x8xf32>
    %77 = arith.truncf %76 : vector<24x8xf32> to vector<24x8xbf16>
    %cst_31 = arith.constant dense<0.000000e+00> : vector<24x24xf32>
    %78 = tpu.matmul %73, %75, %cst_31 {dimension_numbers = #tpu.dot_dimension_numbers<[1], [1], [0], [0], [0, 0, 1, 0], [], []>} : vector<24x8xbf16>, vector<24x8xbf16>, vector<24x24xf32> -> vector<24x24xf32>
    %cst_32 = arith.constant 0.353553385 : f32
    %79 = vector.broadcast %cst_32 : f32 to vector<24x24xf32>
    %80 = arith.mulf %78, %79 : vector<24x24xf32>
    %cst_33 = arith.constant -1.000000e+30 : f32
    %81 = vector.shape_cast %46 : vector<1x24xi1> to vector<1x24xi1>
    %82 = vector.broadcast %81 : vector<1x24xi1> to vector<24x24xi1>
    %83 = vector.broadcast %cst_33 : f32 to vector<24x24xf32>
    %84 = arith.select %82, %80, %83 : vector<24x24xi1>, vector<24x24xf32>
    %cst_34 = arith.constant dense<0xFF800000> : vector<24xf32>
    %85 = vector.multi_reduction <maximumf>, %84, %cst_34 [1] : vector<24x24xf32> to vector<24xf32>
    %86 = vector.shape_cast %85 : vector<24xf32> to vector<24x1xf32>
    %87 = vector.broadcast %86 : vector<24x1xf32> to vector<24x24xf32>
    %88 = arith.subf %84, %87 : vector<24x24xf32>
    %89 = math.exp %88 : vector<24x24xf32>
    %cst_35 = arith.constant dense<0.000000e+00> : vector<24xf32>
    %90 = vector.multi_reduction <add>, %89, %cst_35 [1] : vector<24x24xf32> to vector<24xf32>
    %91 = vector.shape_cast %90 : vector<24xf32> to vector<24x1xf32>
    %92 = tpu.reciprocal %91 : vector<24x1xf32> -> vector<24x1xf32>
    %93 = arith.truncf %89 : vector<24x24xf32> to vector<24x24xbf16>
    %cst_36 = arith.constant dense<0.000000e+00> : vector<24x8xf32>
    %94 = tpu.matmul %93, %77, %cst_36 {dimension_numbers = #tpu.dot_dimension_numbers<[1], [0], [0], [1], [0, 0, 1, 1], [], []>} : vector<24x24xbf16>, vector<24x8xbf16>, vector<24x8xf32> -> vector<24x8xf32>
    %95 = vector.broadcast %92 : vector<24x1xf32> to vector<24x8xf32>
    %96 = arith.mulf %94, %95 : vector<24x8xf32>
    %97 = vector.extract_strided_slice %33 {offsets = [0, 16], sizes = [24, 8], strides = [1, 1]} : vector<24x32xf32> to vector<24x8xf32>
    %98 = arith.truncf %97 : vector<24x8xf32> to vector<24x8xbf16>
    %99 = vector.extract_strided_slice %38 {offsets = [0, 16], sizes = [24, 8], strides = [1, 1]} : vector<24x32xf32> to vector<24x8xf32>
    %100 = arith.truncf %99 : vector<24x8xf32> to vector<24x8xbf16>
    %101 = vector.extract_strided_slice %43 {offsets = [0, 16], sizes = [24, 8], strides = [1, 1]} : vector<24x32xf32> to vector<24x8xf32>
    %102 = arith.truncf %101 : vector<24x8xf32> to vector<24x8xbf16>
    %cst_37 = arith.constant dense<0.000000e+00> : vector<24x24xf32>
    %103 = tpu.matmul %98, %100, %cst_37 {dimension_numbers = #tpu.dot_dimension_numbers<[1], [1], [0], [0], [0, 0, 1, 0], [], []>} : vector<24x8xbf16>, vector<24x8xbf16>, vector<24x24xf32> -> vector<24x24xf32>
    %cst_38 = arith.constant 0.353553385 : f32
    %104 = vector.broadcast %cst_38 : f32 to vector<24x24xf32>
    %105 = arith.mulf %103, %104 : vector<24x24xf32>
    %cst_39 = arith.constant -1.000000e+30 : f32
    %106 = vector.shape_cast %46 : vector<1x24xi1> to vector<1x24xi1>
    %107 = vector.broadcast %106 : vector<1x24xi1> to vector<24x24xi1>
    %108 = vector.broadcast %cst_39 : f32 to vector<24x24xf32>
    %109 = arith.select %107, %105, %108 : vector<24x24xi1>, vector<24x24xf32>
    %cst_40 = arith.constant dense<0xFF800000> : vector<24xf32>
    %110 = vector.multi_reduction <maximumf>, %109, %cst_40 [1] : vector<24x24xf32> to vector<24xf32>
    %111 = vector.shape_cast %110 : vector<24xf32> to vector<24x1xf32>
    %112 = vector.broadcast %111 : vector<24x1xf32> to vector<24x24xf32>
    %113 = arith.subf %109, %112 : vector<24x24xf32>
    %114 = math.exp %113 : vector<24x24xf32>
    %cst_41 = arith.constant dense<0.000000e+00> : vector<24xf32>
    %115 = vector.multi_reduction <add>, %114, %cst_41 [1] : vector<24x24xf32> to vector<24xf32>
    %116 = vector.shape_cast %115 : vector<24xf32> to vector<24x1xf32>
    %117 = tpu.reciprocal %116 : vector<24x1xf32> -> vector<24x1xf32>
    %118 = arith.truncf %114 : vector<24x24xf32> to vector<24x24xbf16>
    %cst_42 = arith.constant dense<0.000000e+00> : vector<24x8xf32>
    %119 = tpu.matmul %118, %102, %cst_42 {dimension_numbers = #tpu.dot_dimension_numbers<[1], [0], [0], [1], [0, 0, 1, 1], [], []>} : vector<24x24xbf16>, vector<24x8xbf16>, vector<24x8xf32> -> vector<24x8xf32>
    %120 = vector.broadcast %117 : vector<24x1xf32> to vector<24x8xf32>
    %121 = arith.mulf %119, %120 : vector<24x8xf32>
    %122 = vector.extract_strided_slice %33 {offsets = [0, 24], sizes = [24, 8], strides = [1, 1]} : vector<24x32xf32> to vector<24x8xf32>
    %123 = arith.truncf %122 : vector<24x8xf32> to vector<24x8xbf16>
    %124 = vector.extract_strided_slice %38 {offsets = [0, 24], sizes = [24, 8], strides = [1, 1]} : vector<24x32xf32> to vector<24x8xf32>
    %125 = arith.truncf %124 : vector<24x8xf32> to vector<24x8xbf16>
    %126 = vector.extract_strided_slice %43 {offsets = [0, 24], sizes = [24, 8], strides = [1, 1]} : vector<24x32xf32> to vector<24x8xf32>
    %127 = arith.truncf %126 : vector<24x8xf32> to vector<24x8xbf16>
    %cst_43 = arith.constant dense<0.000000e+00> : vector<24x24xf32>
    %128 = tpu.matmul %123, %125, %cst_43 {dimension_numbers = #tpu.dot_dimension_numbers<[1], [1], [0], [0], [0, 0, 1, 0], [], []>} : vector<24x8xbf16>, vector<24x8xbf16>, vector<24x24xf32> -> vector<24x24xf32>
    %cst_44 = arith.constant 0.353553385 : f32
    %129 = vector.broadcast %cst_44 : f32 to vector<24x24xf32>
    %130 = arith.mulf %128, %129 : vector<24x24xf32>
    %cst_45 = arith.constant -1.000000e+30 : f32
    %131 = vector.shape_cast %46 : vector<1x24xi1> to vector<1x24xi1>
    %132 = vector.broadcast %131 : vector<1x24xi1> to vector<24x24xi1>
    %133 = vector.broadcast %cst_45 : f32 to vector<24x24xf32>
    %134 = arith.select %132, %130, %133 : vector<24x24xi1>, vector<24x24xf32>
    %cst_46 = arith.constant dense<0xFF800000> : vector<24xf32>
    %135 = vector.multi_reduction <maximumf>, %134, %cst_46 [1] : vector<24x24xf32> to vector<24xf32>
    %136 = vector.shape_cast %135 : vector<24xf32> to vector<24x1xf32>
    %137 = vector.broadcast %136 : vector<24x1xf32> to vector<24x24xf32>
    %138 = arith.subf %134, %137 : vector<24x24xf32>
    %139 = math.exp %138 : vector<24x24xf32>
    %cst_47 = arith.constant dense<0.000000e+00> : vector<24xf32>
    %140 = vector.multi_reduction <add>, %139, %cst_47 [1] : vector<24x24xf32> to vector<24xf32>
    %141 = vector.shape_cast %140 : vector<24xf32> to vector<24x1xf32>
    %142 = tpu.reciprocal %141 : vector<24x1xf32> -> vector<24x1xf32>
    %143 = arith.truncf %139 : vector<24x24xf32> to vector<24x24xbf16>
    %cst_48 = arith.constant dense<0.000000e+00> : vector<24x8xf32>
    %144 = tpu.matmul %143, %127, %cst_48 {dimension_numbers = #tpu.dot_dimension_numbers<[1], [0], [0], [1], [0, 0, 1, 1], [], []>} : vector<24x24xbf16>, vector<24x8xbf16>, vector<24x8xf32> -> vector<24x8xf32>
    %145 = vector.broadcast %142 : vector<24x1xf32> to vector<24x8xf32>
    %146 = arith.mulf %144, %145 : vector<24x8xf32>
    %147 = tpu.concatenate %71, %96, %121, %146 in 1 : vector<24x8xf32>, vector<24x8xf32>, vector<24x8xf32>, vector<24x8xf32> -> vector<24x32xf32>
    %148 = arith.truncf %147 : vector<24x32xf32> to vector<24x32xbf16>
    %c0_49 = arith.constant 0 : index
    %c0_50 = arith.constant 0 : index
    %149 = vector.load %arg11[%c0_49, %c0_50] : memref<32x32xbf16, #tpu.memory_space<vmem>>, vector<32x32xbf16>
    %cst_51 = arith.constant dense<0.000000e+00> : vector<24x32xf32>
    %150 = tpu.matmul %148, %149, %cst_51 {dimension_numbers = #tpu.dot_dimension_numbers<[1], [0], [0], [1], [0, 0, 1, 1], [], []>} : vector<24x32xbf16>, vector<32x32xbf16>, vector<24x32xf32> -> vector<24x32xf32>
    %151 = arith.addf %3, %150 : vector<24x32xf32>
    %c0_52 = arith.constant 0 : index
    %c0_53 = arith.constant 0 : index
    %152 = vector.load %arg12[%c0_52, %c0_53] : memref<1x32xf32, #tpu.memory_space<vmem>>, vector<1x32xf32>
    %153 = vector.broadcast %152 : vector<1x32xf32> to vector<24x32xf32>
    %154 = arith.addf %151, %153 : vector<24x32xf32>
    %c0_54 = arith.constant 0 : index
    %c0_55 = arith.constant 0 : index
    %c0_56 = arith.constant 0 : index
    %155 = vector.load %arg13[%c0_54, %c0_55, %c0_56] : memref<1x24x32xf32, #tpu.memory_space<vmem>>, vector<1x24x32xf32>
    %156 = vector.shape_cast %155 : vector<1x24x32xf32> to vector<24x32xf32>
    %157 = vector.shape_cast %154 : vector<24x32xf32> to vector<1x24x32xf32>
    tpu.vector_store %arg13[%c0_54, %c0_55, %c0_56], %157 {strides = array<i32>} : memref<1x24x32xf32, #tpu.memory_space<vmem>>, vector<1x24x32xf32>,
    return
  }
  func.func @transform_0(%arg0: i32, %arg1: memref<2xi32, #tpu.memory_space<smem>>) -> (i32, i32, i32) {
    %c0_i32 = arith.constant 0 : i32
    %c0_i32_0 = arith.constant 0 : i32
    %c0_i32_1 = arith.constant 0 : i32
    return %arg0, %c0_i32, %c0_i32_0 : i32, i32, i32
  }
  func.func @transform_1(%arg0: i32, %arg1: memref<2xi32, #tpu.memory_space<smem>>) -> (i32, i32) {
    %c0_i32 = arith.constant 0 : i32
    %c0_i32_0 = arith.constant 0 : i32
    %c0_i32_1 = arith.constant 0 : i32
    return %c0_i32, %c0_i32_0 : i32, i32
  }
  func.func @transform_2(%arg0: i32, %arg1: memref<2xi32, #tpu.memory_space<smem>>) -> (i32, i32) {
    %c0_i32 = arith.constant 0 : i32
    %c0_i32_0 = arith.constant 0 : i32
    %c0_i32_1 = arith.constant 0 : i32
    return %c0_i32, %c0_i32_0 : i32, i32
  }
  func.func @transform_3(%arg0: i32, %arg1: memref<2xi32, #tpu.memory_space<smem>>) -> (i32, i32) {
    %c0_i32 = arith.constant 0 : i32
    %c0_i32_0 = arith.constant 0 : i32
    %c0_i32_1 = arith.constant 0 : i32
    return %c0_i32, %c0_i32_0 : i32, i32
  }
  func.func @transform_4(%arg0: i32, %arg1: memref<2xi32, #tpu.memory_space<smem>>) -> (i32, i32) {
    %c0_i32 = arith.constant 0 : i32
    %c0_i32_0 = arith.constant 0 : i32
    %c0_i32_1 = arith.constant 0 : i32
    return %c0_i32, %c0_i32_0 : i32, i32
  }
  func.func @transform_5(%arg0: i32, %arg1: memref<2xi32, #tpu.memory_space<smem>>) -> (i32, i32) {
    %c0_i32 = arith.constant 0 : i32
    %c0_i32_0 = arith.constant 0 : i32
    %c0_i32_1 = arith.constant 0 : i32
    return %c0_i32, %c0_i32_0 : i32, i32
  }
  func.func @transform_6(%arg0: i32, %arg1: memref<2xi32, #tpu.memory_space<smem>>) -> (i32, i32) {
    %c0_i32 = arith.constant 0 : i32
    %c0_i32_0 = arith.constant 0 : i32
    %c0_i32_1 = arith.constant 0 : i32
    return %c0_i32, %c0_i32_0 : i32, i32
  }
  func.func @transform_7(%arg0: i32, %arg1: memref<2xi32, #tpu.memory_space<smem>>) -> (i32, i32) {
    %c0_i32 = arith.constant 0 : i32
    %c0_i32_0 = arith.constant 0 : i32
    %c0_i32_1 = arith.constant 0 : i32
    return %c0_i32, %c0_i32_0 : i32, i32
  }
  func.func @transform_8(%arg0: i32, %arg1: memref<2xi32, #tpu.memory_space<smem>>) -> (i32, i32) {
    %c0_i32 = arith.constant 0 : i32
    %c0_i32_0 = arith.constant 0 : i32
    %c0_i32_1 = arith.constant 0 : i32
    return %c0_i32, %c0_i32_0 : i32, i32
  }
  func.func @transform_9(%arg0: i32, %arg1: memref<2xi32, #tpu.memory_space<smem>>) -> (i32, i32) {
    %c0_i32 = arith.constant 0 : i32
    %c0_i32_0 = arith.constant 0 : i32
    %c0_i32_1 = arith.constant 0 : i32
    return %c0_i32, %c0_i32_0 : i32, i32
  }
  func.func @transform_10(%arg0: i32, %arg1: memref<2xi32, #tpu.memory_space<smem>>) -> (i32, i32) {
    %c0_i32 = arith.constant 0 : i32
    %c0_i32_0 = arith.constant 0 : i32
    %c0_i32_1 = arith.constant 0 : i32
    return %c0_i32, %c0_i32_0 : i32, i32
  }
  func.func @transform_11(%arg0: i32, %arg1: memref<2xi32, #tpu.memory_space<smem>>) -> (i32, i32, i32) {
    %c0_i32 = arith.constant 0 : i32
    %c0_i32_0 = arith.constant 0 : i32
    %c0_i32_1 = arith.constant 0 : i32
    return %arg0, %c0_i32, %c0_i32_0 : i32, i32, i32
  }
}

module attributes {stable_mosaic.version = 11 : i64} {
  func.func @_convmod_kernel(%arg0: i32, %arg1: memref<1x24x32xf32, #tpu.memory_space<vmem>>, %arg2: memref<1x32xf32, #tpu.memory_space<vmem>>, %arg3: memref<1x32xf32, #tpu.memory_space<vmem>>, %arg4: memref<32x64xbf16, #tpu.memory_space<vmem>>, %arg5: memref<1x64xf32, #tpu.memory_space<vmem>>, %arg6: memref<15x32xf32, #tpu.memory_space<vmem>>, %arg7: memref<1x32xf32, #tpu.memory_space<vmem>>, %arg8: memref<1x32xf32, #tpu.memory_space<vmem>>, %arg9: memref<1x32xf32, #tpu.memory_space<vmem>>, %arg10: memref<32x32xbf16, #tpu.memory_space<vmem>>, %arg11: memref<1x32xf32, #tpu.memory_space<vmem>>, %arg12: memref<1x24x32xf32, #tpu.memory_space<vmem>>) attributes {dimension_semantics = [#tpu.dimension_semantics<parallel>], iteration_bounds = array<i64: 2>, scalar_prefetch = 0 : i64, scratch_operands = 0 : i64, tpu.core_type = #tpu.core_type<tc>, window_params = [{transform_indices = @transform_0, window_bounds = array<i64: 1, 24, 32>}, {pipeline_mode = #tpu.pipeline_mode<synchronous>, transform_indices = @transform_1, window_bounds = array<i64: 1, 32>}, {pipeline_mode = #tpu.pipeline_mode<synchronous>, transform_indices = @transform_2, window_bounds = array<i64: 1, 32>}, {pipeline_mode = #tpu.pipeline_mode<synchronous>, transform_indices = @transform_3, window_bounds = array<i64: 32, 64>}, {pipeline_mode = #tpu.pipeline_mode<synchronous>, transform_indices = @transform_4, window_bounds = array<i64: 1, 64>}, {pipeline_mode = #tpu.pipeline_mode<synchronous>, transform_indices = @transform_5, window_bounds = array<i64: 15, 32>}, {pipeline_mode = #tpu.pipeline_mode<synchronous>, transform_indices = @transform_6, window_bounds = array<i64: 1, 32>}, {pipeline_mode = #tpu.pipeline_mode<synchronous>, transform_indices = @transform_7, window_bounds = array<i64: 1, 32>}, {pipeline_mode = #tpu.pipeline_mode<synchronous>, transform_indices = @transform_8, window_bounds = array<i64: 1, 32>}, {pipeline_mode = #tpu.pipeline_mode<synchronous>, transform_indices = @transform_9, window_bounds = array<i64: 32, 32>}, {pipeline_mode = #tpu.pipeline_mode<synchronous>, transform_indices = @transform_10, window_bounds = array<i64: 1, 32>}, {transform_indices = @transform_11, window_bounds = array<i64: 1, 24, 32>}]} {
    %c0 = arith.constant 0 : index
    %c0_0 = arith.constant 0 : index
    %c0_1 = arith.constant 0 : index
    %0 = vector.load %arg1[%c0, %c0_0, %c0_1] : memref<1x24x32xf32, #tpu.memory_space<vmem>>, vector<1x24x32xf32>
    %1 = vector.shape_cast %0 : vector<1x24x32xf32> to vector<24x32xf32>
    %c0_2 = arith.constant 0 : index
    %c0_3 = arith.constant 0 : index
    %2 = vector.load %arg2[%c0_2, %c0_3] : memref<1x32xf32, #tpu.memory_space<vmem>>, vector<1x32xf32>
    %c0_4 = arith.constant 0 : index
    %c0_5 = arith.constant 0 : index
    %3 = vector.load %arg3[%c0_4, %c0_5] : memref<1x32xf32, #tpu.memory_space<vmem>>, vector<1x32xf32>
    %cst = arith.constant dense<0.000000e+00> : vector<24xf32>
    %4 = vector.multi_reduction <add>, %1, %cst [1] : vector<24x32xf32> to vector<24xf32>
    %5 = vector.shape_cast %4 : vector<24xf32> to vector<24x1xf32>
    %cst_6 = arith.constant 3.200000e+01 : f32
    %6 = vector.broadcast %cst_6 : f32 to vector<24x1xf32>
    %7 = arith.divf %5, %6 : vector<24x1xf32>
    %8 = vector.broadcast %7 : vector<24x1xf32> to vector<24x32xf32>
    %9 = arith.subf %1, %8 : vector<24x32xf32>
    %10 = arith.mulf %9, %9 : vector<24x32xf32>
    %cst_7 = arith.constant dense<0.000000e+00> : vector<24xf32>
    %11 = vector.multi_reduction <add>, %10, %cst_7 [1] : vector<24x32xf32> to vector<24xf32>
    %12 = vector.shape_cast %11 : vector<24xf32> to vector<24x1xf32>
    %cst_8 = arith.constant 3.200000e+01 : f32
    %13 = vector.broadcast %cst_8 : f32 to vector<24x1xf32>
    %14 = arith.divf %12, %13 : vector<24x1xf32>
    %15 = vector.broadcast %7 : vector<24x1xf32> to vector<24x32xf32>
    %16 = arith.subf %1, %15 : vector<24x32xf32>
    %cst_9 = arith.constant 9.99999974E-6 : f32
    %17 = vector.broadcast %cst_9 : f32 to vector<24x1xf32>
    %18 = arith.addf %14, %17 : vector<24x1xf32>
    %19 = math.rsqrt %18 : vector<24x1xf32>
    %20 = vector.broadcast %19 : vector<24x1xf32> to vector<24x32xf32>
    %21 = arith.mulf %16, %20 : vector<24x32xf32>
    %22 = vector.broadcast %2 : vector<1x32xf32> to vector<24x32xf32>
    %23 = arith.mulf %21, %22 : vector<24x32xf32>
    %24 = vector.broadcast %3 : vector<1x32xf32> to vector<24x32xf32>
    %25 = arith.addf %23, %24 : vector<24x32xf32>
    %c0_10 = arith.constant 0 : index
    %c0_11 = arith.constant 0 : index
    %26 = vector.load %arg4[%c0_10, %c0_11] : memref<32x64xbf16, #tpu.memory_space<vmem>>, vector<32x64xbf16>
    %27 = arith.truncf %25 : vector<24x32xf32> to vector<24x32xbf16>
    %cst_12 = arith.constant dense<0.000000e+00> : vector<24x64xf32>
    %28 = tpu.matmul %27, %26, %cst_12 {dimension_numbers = #tpu.dot_dimension_numbers<[1], [0], [0], [1], [0, 0, 1, 1], [], []>} : vector<24x32xbf16>, vector<32x64xbf16>, vector<24x64xf32> -> vector<24x64xf32>
    %c0_13 = arith.constant 0 : index
    %c0_14 = arith.constant 0 : index
    %29 = vector.load %arg5[%c0_13, %c0_14] : memref<1x64xf32, #tpu.memory_space<vmem>>, vector<1x64xf32>
    %30 = vector.broadcast %29 : vector<1x64xf32> to vector<24x64xf32>
    %31 = arith.addf %28, %30 : vector<24x64xf32>
    %32 = vector.extract_strided_slice %31 {offsets = [0, 0], sizes = [24, 32], strides = [1, 1]} : vector<24x64xf32> to vector<24x32xf32>
    %33 = vector.extract_strided_slice %31 {offsets = [0, 32], sizes = [24, 32], strides = [1, 1]} : vector<24x64xf32> to vector<24x32xf32>
    %34 = arith.negf %33 : vector<24x32xf32>
    %35 = math.exp %34 : vector<24x32xf32>
    %cst_15 = arith.constant 1.000000e+00 : f32
    %36 = vector.broadcast %cst_15 : f32 to vector<24x32xf32>
    %37 = arith.addf %36, %35 : vector<24x32xf32>
    %38 = arith.divf %36, %37 : vector<24x32xf32>
    %39 = arith.mulf %32, %38 : vector<24x32xf32>
    %c0_16 = arith.constant 0 : index
    %c0_17 = arith.constant 0 : index
    %40 = vector.load %arg6[%c0_16, %c0_17] : memref<15x32xf32, #tpu.memory_space<vmem>>, vector<15x32xf32>
    %41 = tpu.iota {dimensions = array<i32: 0>} : vector<24x1xi32>
    %cst_18 = arith.constant 0.000000e+00 : f32
    %42 = vector.broadcast %cst_18 : f32 to vector<24x32xf32>
    %c7_i32 = arith.constant 7 : i32
    %43 = tpu.dynamic_rotate %39 by %c7_i32 dim 0 : vector<24x32xf32>, i32 -> vector<24x32xf32>
    %c-7_i32 = arith.constant -7 : i32
    %44 = vector.broadcast %c-7_i32 : i32 to vector<24x1xi32>
    %45 = arith.addi %41, %44 : vector<24x1xi32>
    %c0_i32 = arith.constant 0 : i32
    %46 = vector.broadcast %c0_i32 : i32 to vector<24x1xi32>
    %47 = arith.cmpi sge, %45, %46 : vector<24x1xi32>
    %c-7_i32_19 = arith.constant -7 : i32
    %48 = vector.broadcast %c-7_i32_19 : i32 to vector<24x1xi32>
    %49 = arith.addi %41, %48 : vector<24x1xi32>
    %c24_i32 = arith.constant 24 : i32
    %50 = vector.broadcast %c24_i32 : i32 to vector<24x1xi32>
    %51 = arith.cmpi slt, %49, %50 : vector<24x1xi32>
    %52 = arith.andi %47, %51 : vector<24x1xi1>
    %cst_20 = arith.constant 0.000000e+00 : f32
    %53 = vector.shape_cast %52 : vector<24x1xi1> to vector<24x1xi1>
    %54 = vector.broadcast %53 : vector<24x1xi1> to vector<24x32xi1>
    %55 = vector.broadcast %cst_20 : f32 to vector<24x32xf32>
    %56 = arith.select %54, %43, %55 : vector<24x32xi1>, vector<24x32xf32>
    %57 = vector.extract_strided_slice %40 {offsets = [0, 0], sizes = [1, 32], strides = [1, 1]} : vector<15x32xf32> to vector<1x32xf32>
    %58 = vector.broadcast %57 : vector<1x32xf32> to vector<24x32xf32>
    %59 = arith.mulf %56, %58 : vector<24x32xf32>
    %60 = arith.addf %42, %59 : vector<24x32xf32>
    %c6_i32 = arith.constant 6 : i32
    %61 = tpu.dynamic_rotate %39 by %c6_i32 dim 0 : vector<24x32xf32>, i32 -> vector<24x32xf32>
    %c-6_i32 = arith.constant -6 : i32
    %62 = vector.broadcast %c-6_i32 : i32 to vector<24x1xi32>
    %63 = arith.addi %41, %62 : vector<24x1xi32>
    %c0_i32_21 = arith.constant 0 : i32
    %64 = vector.broadcast %c0_i32_21 : i32 to vector<24x1xi32>
    %65 = arith.cmpi sge, %63, %64 : vector<24x1xi32>
    %c-6_i32_22 = arith.constant -6 : i32
    %66 = vector.broadcast %c-6_i32_22 : i32 to vector<24x1xi32>
    %67 = arith.addi %41, %66 : vector<24x1xi32>
    %c24_i32_23 = arith.constant 24 : i32
    %68 = vector.broadcast %c24_i32_23 : i32 to vector<24x1xi32>
    %69 = arith.cmpi slt, %67, %68 : vector<24x1xi32>
    %70 = arith.andi %65, %69 : vector<24x1xi1>
    %cst_24 = arith.constant 0.000000e+00 : f32
    %71 = vector.shape_cast %70 : vector<24x1xi1> to vector<24x1xi1>
    %72 = vector.broadcast %71 : vector<24x1xi1> to vector<24x32xi1>
    %73 = vector.broadcast %cst_24 : f32 to vector<24x32xf32>
    %74 = arith.select %72, %61, %73 : vector<24x32xi1>, vector<24x32xf32>
    %75 = vector.extract_strided_slice %40 {offsets = [1, 0], sizes = [1, 32], strides = [1, 1]} : vector<15x32xf32> to vector<1x32xf32>
    %76 = vector.broadcast %75 : vector<1x32xf32> to vector<24x32xf32>
    %77 = arith.mulf %74, %76 : vector<24x32xf32>
    %78 = arith.addf %60, %77 : vector<24x32xf32>
    %c5_i32 = arith.constant 5 : i32
    %79 = tpu.dynamic_rotate %39 by %c5_i32 dim 0 : vector<24x32xf32>, i32 -> vector<24x32xf32>
    %c-5_i32 = arith.constant -5 : i32
    %80 = vector.broadcast %c-5_i32 : i32 to vector<24x1xi32>
    %81 = arith.addi %41, %80 : vector<24x1xi32>
    %c0_i32_25 = arith.constant 0 : i32
    %82 = vector.broadcast %c0_i32_25 : i32 to vector<24x1xi32>
    %83 = arith.cmpi sge, %81, %82 : vector<24x1xi32>
    %c-5_i32_26 = arith.constant -5 : i32
    %84 = vector.broadcast %c-5_i32_26 : i32 to vector<24x1xi32>
    %85 = arith.addi %41, %84 : vector<24x1xi32>
    %c24_i32_27 = arith.constant 24 : i32
    %86 = vector.broadcast %c24_i32_27 : i32 to vector<24x1xi32>
    %87 = arith.cmpi slt, %85, %86 : vector<24x1xi32>
    %88 = arith.andi %83, %87 : vector<24x1xi1>
    %cst_28 = arith.constant 0.000000e+00 : f32
    %89 = vector.shape_cast %88 : vector<24x1xi1> to vector<24x1xi1>
    %90 = vector.broadcast %89 : vector<24x1xi1> to vector<24x32xi1>
    %91 = vector.broadcast %cst_28 : f32 to vector<24x32xf32>
    %92 = arith.select %90, %79, %91 : vector<24x32xi1>, vector<24x32xf32>
    %93 = vector.extract_strided_slice %40 {offsets = [2, 0], sizes = [1, 32], strides = [1, 1]} : vector<15x32xf32> to vector<1x32xf32>
    %94 = vector.broadcast %93 : vector<1x32xf32> to vector<24x32xf32>
    %95 = arith.mulf %92, %94 : vector<24x32xf32>
    %96 = arith.addf %78, %95 : vector<24x32xf32>
    %c4_i32 = arith.constant 4 : i32
    %97 = tpu.dynamic_rotate %39 by %c4_i32 dim 0 : vector<24x32xf32>, i32 -> vector<24x32xf32>
    %c-4_i32 = arith.constant -4 : i32
    %98 = vector.broadcast %c-4_i32 : i32 to vector<24x1xi32>
    %99 = arith.addi %41, %98 : vector<24x1xi32>
    %c0_i32_29 = arith.constant 0 : i32
    %100 = vector.broadcast %c0_i32_29 : i32 to vector<24x1xi32>
    %101 = arith.cmpi sge, %99, %100 : vector<24x1xi32>
    %c-4_i32_30 = arith.constant -4 : i32
    %102 = vector.broadcast %c-4_i32_30 : i32 to vector<24x1xi32>
    %103 = arith.addi %41, %102 : vector<24x1xi32>
    %c24_i32_31 = arith.constant 24 : i32
    %104 = vector.broadcast %c24_i32_31 : i32 to vector<24x1xi32>
    %105 = arith.cmpi slt, %103, %104 : vector<24x1xi32>
    %106 = arith.andi %101, %105 : vector<24x1xi1>
    %cst_32 = arith.constant 0.000000e+00 : f32
    %107 = vector.shape_cast %106 : vector<24x1xi1> to vector<24x1xi1>
    %108 = vector.broadcast %107 : vector<24x1xi1> to vector<24x32xi1>
    %109 = vector.broadcast %cst_32 : f32 to vector<24x32xf32>
    %110 = arith.select %108, %97, %109 : vector<24x32xi1>, vector<24x32xf32>
    %111 = vector.extract_strided_slice %40 {offsets = [3, 0], sizes = [1, 32], strides = [1, 1]} : vector<15x32xf32> to vector<1x32xf32>
    %112 = vector.broadcast %111 : vector<1x32xf32> to vector<24x32xf32>
    %113 = arith.mulf %110, %112 : vector<24x32xf32>
    %114 = arith.addf %96, %113 : vector<24x32xf32>
    %c3_i32 = arith.constant 3 : i32
    %115 = tpu.dynamic_rotate %39 by %c3_i32 dim 0 : vector<24x32xf32>, i32 -> vector<24x32xf32>
    %c-3_i32 = arith.constant -3 : i32
    %116 = vector.broadcast %c-3_i32 : i32 to vector<24x1xi32>
    %117 = arith.addi %41, %116 : vector<24x1xi32>
    %c0_i32_33 = arith.constant 0 : i32
    %118 = vector.broadcast %c0_i32_33 : i32 to vector<24x1xi32>
    %119 = arith.cmpi sge, %117, %118 : vector<24x1xi32>
    %c-3_i32_34 = arith.constant -3 : i32
    %120 = vector.broadcast %c-3_i32_34 : i32 to vector<24x1xi32>
    %121 = arith.addi %41, %120 : vector<24x1xi32>
    %c24_i32_35 = arith.constant 24 : i32
    %122 = vector.broadcast %c24_i32_35 : i32 to vector<24x1xi32>
    %123 = arith.cmpi slt, %121, %122 : vector<24x1xi32>
    %124 = arith.andi %119, %123 : vector<24x1xi1>
    %cst_36 = arith.constant 0.000000e+00 : f32
    %125 = vector.shape_cast %124 : vector<24x1xi1> to vector<24x1xi1>
    %126 = vector.broadcast %125 : vector<24x1xi1> to vector<24x32xi1>
    %127 = vector.broadcast %cst_36 : f32 to vector<24x32xf32>
    %128 = arith.select %126, %115, %127 : vector<24x32xi1>, vector<24x32xf32>
    %129 = vector.extract_strided_slice %40 {offsets = [4, 0], sizes = [1, 32], strides = [1, 1]} : vector<15x32xf32> to vector<1x32xf32>
    %130 = vector.broadcast %129 : vector<1x32xf32> to vector<24x32xf32>
    %131 = arith.mulf %128, %130 : vector<24x32xf32>
    %132 = arith.addf %114, %131 : vector<24x32xf32>
    %c2_i32 = arith.constant 2 : i32
    %133 = tpu.dynamic_rotate %39 by %c2_i32 dim 0 : vector<24x32xf32>, i32 -> vector<24x32xf32>
    %c-2_i32 = arith.constant -2 : i32
    %134 = vector.broadcast %c-2_i32 : i32 to vector<24x1xi32>
    %135 = arith.addi %41, %134 : vector<24x1xi32>
    %c0_i32_37 = arith.constant 0 : i32
    %136 = vector.broadcast %c0_i32_37 : i32 to vector<24x1xi32>
    %137 = arith.cmpi sge, %135, %136 : vector<24x1xi32>
    %c-2_i32_38 = arith.constant -2 : i32
    %138 = vector.broadcast %c-2_i32_38 : i32 to vector<24x1xi32>
    %139 = arith.addi %41, %138 : vector<24x1xi32>
    %c24_i32_39 = arith.constant 24 : i32
    %140 = vector.broadcast %c24_i32_39 : i32 to vector<24x1xi32>
    %141 = arith.cmpi slt, %139, %140 : vector<24x1xi32>
    %142 = arith.andi %137, %141 : vector<24x1xi1>
    %cst_40 = arith.constant 0.000000e+00 : f32
    %143 = vector.shape_cast %142 : vector<24x1xi1> to vector<24x1xi1>
    %144 = vector.broadcast %143 : vector<24x1xi1> to vector<24x32xi1>
    %145 = vector.broadcast %cst_40 : f32 to vector<24x32xf32>
    %146 = arith.select %144, %133, %145 : vector<24x32xi1>, vector<24x32xf32>
    %147 = vector.extract_strided_slice %40 {offsets = [5, 0], sizes = [1, 32], strides = [1, 1]} : vector<15x32xf32> to vector<1x32xf32>
    %148 = vector.broadcast %147 : vector<1x32xf32> to vector<24x32xf32>
    %149 = arith.mulf %146, %148 : vector<24x32xf32>
    %150 = arith.addf %132, %149 : vector<24x32xf32>
    %c1_i32 = arith.constant 1 : i32
    %151 = tpu.dynamic_rotate %39 by %c1_i32 dim 0 : vector<24x32xf32>, i32 -> vector<24x32xf32>
    %c-1_i32 = arith.constant -1 : i32
    %152 = vector.broadcast %c-1_i32 : i32 to vector<24x1xi32>
    %153 = arith.addi %41, %152 : vector<24x1xi32>
    %c0_i32_41 = arith.constant 0 : i32
    %154 = vector.broadcast %c0_i32_41 : i32 to vector<24x1xi32>
    %155 = arith.cmpi sge, %153, %154 : vector<24x1xi32>
    %c-1_i32_42 = arith.constant -1 : i32
    %156 = vector.broadcast %c-1_i32_42 : i32 to vector<24x1xi32>
    %157 = arith.addi %41, %156 : vector<24x1xi32>
    %c24_i32_43 = arith.constant 24 : i32
    %158 = vector.broadcast %c24_i32_43 : i32 to vector<24x1xi32>
    %159 = arith.cmpi slt, %157, %158 : vector<24x1xi32>
    %160 = arith.andi %155, %159 : vector<24x1xi1>
    %cst_44 = arith.constant 0.000000e+00 : f32
    %161 = vector.shape_cast %160 : vector<24x1xi1> to vector<24x1xi1>
    %162 = vector.broadcast %161 : vector<24x1xi1> to vector<24x32xi1>
    %163 = vector.broadcast %cst_44 : f32 to vector<24x32xf32>
    %164 = arith.select %162, %151, %163 : vector<24x32xi1>, vector<24x32xf32>
    %165 = vector.extract_strided_slice %40 {offsets = [6, 0], sizes = [1, 32], strides = [1, 1]} : vector<15x32xf32> to vector<1x32xf32>
    %166 = vector.broadcast %165 : vector<1x32xf32> to vector<24x32xf32>
    %167 = arith.mulf %164, %166 : vector<24x32xf32>
    %168 = arith.addf %150, %167 : vector<24x32xf32>
    %169 = vector.extract_strided_slice %40 {offsets = [7, 0], sizes = [1, 32], strides = [1, 1]} : vector<15x32xf32> to vector<1x32xf32>
    %170 = vector.broadcast %169 : vector<1x32xf32> to vector<24x32xf32>
    %171 = arith.mulf %39, %170 : vector<24x32xf32>
    %172 = arith.addf %168, %171 : vector<24x32xf32>
    %c23_i32 = arith.constant 23 : i32
    %173 = tpu.dynamic_rotate %39 by %c23_i32 dim 0 : vector<24x32xf32>, i32 -> vector<24x32xf32>
    %c1_i32_45 = arith.constant 1 : i32
    %174 = vector.broadcast %c1_i32_45 : i32 to vector<24x1xi32>
    %175 = arith.addi %41, %174 : vector<24x1xi32>
    %c0_i32_46 = arith.constant 0 : i32
    %176 = vector.broadcast %c0_i32_46 : i32 to vector<24x1xi32>
    %177 = arith.cmpi sge, %175, %176 : vector<24x1xi32>
    %c1_i32_47 = arith.constant 1 : i32
    %178 = vector.broadcast %c1_i32_47 : i32 to vector<24x1xi32>
    %179 = arith.addi %41, %178 : vector<24x1xi32>
    %c24_i32_48 = arith.constant 24 : i32
    %180 = vector.broadcast %c24_i32_48 : i32 to vector<24x1xi32>
    %181 = arith.cmpi slt, %179, %180 : vector<24x1xi32>
    %182 = arith.andi %177, %181 : vector<24x1xi1>
    %cst_49 = arith.constant 0.000000e+00 : f32
    %183 = vector.shape_cast %182 : vector<24x1xi1> to vector<24x1xi1>
    %184 = vector.broadcast %183 : vector<24x1xi1> to vector<24x32xi1>
    %185 = vector.broadcast %cst_49 : f32 to vector<24x32xf32>
    %186 = arith.select %184, %173, %185 : vector<24x32xi1>, vector<24x32xf32>
    %187 = vector.extract_strided_slice %40 {offsets = [8, 0], sizes = [1, 32], strides = [1, 1]} : vector<15x32xf32> to vector<1x32xf32>
    %188 = vector.broadcast %187 : vector<1x32xf32> to vector<24x32xf32>
    %189 = arith.mulf %186, %188 : vector<24x32xf32>
    %190 = arith.addf %172, %189 : vector<24x32xf32>
    %c22_i32 = arith.constant 22 : i32
    %191 = tpu.dynamic_rotate %39 by %c22_i32 dim 0 : vector<24x32xf32>, i32 -> vector<24x32xf32>
    %c2_i32_50 = arith.constant 2 : i32
    %192 = vector.broadcast %c2_i32_50 : i32 to vector<24x1xi32>
    %193 = arith.addi %41, %192 : vector<24x1xi32>
    %c0_i32_51 = arith.constant 0 : i32
    %194 = vector.broadcast %c0_i32_51 : i32 to vector<24x1xi32>
    %195 = arith.cmpi sge, %193, %194 : vector<24x1xi32>
    %c2_i32_52 = arith.constant 2 : i32
    %196 = vector.broadcast %c2_i32_52 : i32 to vector<24x1xi32>
    %197 = arith.addi %41, %196 : vector<24x1xi32>
    %c24_i32_53 = arith.constant 24 : i32
    %198 = vector.broadcast %c24_i32_53 : i32 to vector<24x1xi32>
    %199 = arith.cmpi slt, %197, %198 : vector<24x1xi32>
    %200 = arith.andi %195, %199 : vector<24x1xi1>
    %cst_54 = arith.constant 0.000000e+00 : f32
    %201 = vector.shape_cast %200 : vector<24x1xi1> to vector<24x1xi1>
    %202 = vector.broadcast %201 : vector<24x1xi1> to vector<24x32xi1>
    %203 = vector.broadcast %cst_54 : f32 to vector<24x32xf32>
    %204 = arith.select %202, %191, %203 : vector<24x32xi1>, vector<24x32xf32>
    %205 = vector.extract_strided_slice %40 {offsets = [9, 0], sizes = [1, 32], strides = [1, 1]} : vector<15x32xf32> to vector<1x32xf32>
    %206 = vector.broadcast %205 : vector<1x32xf32> to vector<24x32xf32>
    %207 = arith.mulf %204, %206 : vector<24x32xf32>
    %208 = arith.addf %190, %207 : vector<24x32xf32>
    %c21_i32 = arith.constant 21 : i32
    %209 = tpu.dynamic_rotate %39 by %c21_i32 dim 0 : vector<24x32xf32>, i32 -> vector<24x32xf32>
    %c3_i32_55 = arith.constant 3 : i32
    %210 = vector.broadcast %c3_i32_55 : i32 to vector<24x1xi32>
    %211 = arith.addi %41, %210 : vector<24x1xi32>
    %c0_i32_56 = arith.constant 0 : i32
    %212 = vector.broadcast %c0_i32_56 : i32 to vector<24x1xi32>
    %213 = arith.cmpi sge, %211, %212 : vector<24x1xi32>
    %c3_i32_57 = arith.constant 3 : i32
    %214 = vector.broadcast %c3_i32_57 : i32 to vector<24x1xi32>
    %215 = arith.addi %41, %214 : vector<24x1xi32>
    %c24_i32_58 = arith.constant 24 : i32
    %216 = vector.broadcast %c24_i32_58 : i32 to vector<24x1xi32>
    %217 = arith.cmpi slt, %215, %216 : vector<24x1xi32>
    %218 = arith.andi %213, %217 : vector<24x1xi1>
    %cst_59 = arith.constant 0.000000e+00 : f32
    %219 = vector.shape_cast %218 : vector<24x1xi1> to vector<24x1xi1>
    %220 = vector.broadcast %219 : vector<24x1xi1> to vector<24x32xi1>
    %221 = vector.broadcast %cst_59 : f32 to vector<24x32xf32>
    %222 = arith.select %220, %209, %221 : vector<24x32xi1>, vector<24x32xf32>
    %223 = vector.extract_strided_slice %40 {offsets = [10, 0], sizes = [1, 32], strides = [1, 1]} : vector<15x32xf32> to vector<1x32xf32>
    %224 = vector.broadcast %223 : vector<1x32xf32> to vector<24x32xf32>
    %225 = arith.mulf %222, %224 : vector<24x32xf32>
    %226 = arith.addf %208, %225 : vector<24x32xf32>
    %c20_i32 = arith.constant 20 : i32
    %227 = tpu.dynamic_rotate %39 by %c20_i32 dim 0 : vector<24x32xf32>, i32 -> vector<24x32xf32>
    %c4_i32_60 = arith.constant 4 : i32
    %228 = vector.broadcast %c4_i32_60 : i32 to vector<24x1xi32>
    %229 = arith.addi %41, %228 : vector<24x1xi32>
    %c0_i32_61 = arith.constant 0 : i32
    %230 = vector.broadcast %c0_i32_61 : i32 to vector<24x1xi32>
    %231 = arith.cmpi sge, %229, %230 : vector<24x1xi32>
    %c4_i32_62 = arith.constant 4 : i32
    %232 = vector.broadcast %c4_i32_62 : i32 to vector<24x1xi32>
    %233 = arith.addi %41, %232 : vector<24x1xi32>
    %c24_i32_63 = arith.constant 24 : i32
    %234 = vector.broadcast %c24_i32_63 : i32 to vector<24x1xi32>
    %235 = arith.cmpi slt, %233, %234 : vector<24x1xi32>
    %236 = arith.andi %231, %235 : vector<24x1xi1>
    %cst_64 = arith.constant 0.000000e+00 : f32
    %237 = vector.shape_cast %236 : vector<24x1xi1> to vector<24x1xi1>
    %238 = vector.broadcast %237 : vector<24x1xi1> to vector<24x32xi1>
    %239 = vector.broadcast %cst_64 : f32 to vector<24x32xf32>
    %240 = arith.select %238, %227, %239 : vector<24x32xi1>, vector<24x32xf32>
    %241 = vector.extract_strided_slice %40 {offsets = [11, 0], sizes = [1, 32], strides = [1, 1]} : vector<15x32xf32> to vector<1x32xf32>
    %242 = vector.broadcast %241 : vector<1x32xf32> to vector<24x32xf32>
    %243 = arith.mulf %240, %242 : vector<24x32xf32>
    %244 = arith.addf %226, %243 : vector<24x32xf32>
    %c19_i32 = arith.constant 19 : i32
    %245 = tpu.dynamic_rotate %39 by %c19_i32 dim 0 : vector<24x32xf32>, i32 -> vector<24x32xf32>
    %c5_i32_65 = arith.constant 5 : i32
    %246 = vector.broadcast %c5_i32_65 : i32 to vector<24x1xi32>
    %247 = arith.addi %41, %246 : vector<24x1xi32>
    %c0_i32_66 = arith.constant 0 : i32
    %248 = vector.broadcast %c0_i32_66 : i32 to vector<24x1xi32>
    %249 = arith.cmpi sge, %247, %248 : vector<24x1xi32>
    %c5_i32_67 = arith.constant 5 : i32
    %250 = vector.broadcast %c5_i32_67 : i32 to vector<24x1xi32>
    %251 = arith.addi %41, %250 : vector<24x1xi32>
    %c24_i32_68 = arith.constant 24 : i32
    %252 = vector.broadcast %c24_i32_68 : i32 to vector<24x1xi32>
    %253 = arith.cmpi slt, %251, %252 : vector<24x1xi32>
    %254 = arith.andi %249, %253 : vector<24x1xi1>
    %cst_69 = arith.constant 0.000000e+00 : f32
    %255 = vector.shape_cast %254 : vector<24x1xi1> to vector<24x1xi1>
    %256 = vector.broadcast %255 : vector<24x1xi1> to vector<24x32xi1>
    %257 = vector.broadcast %cst_69 : f32 to vector<24x32xf32>
    %258 = arith.select %256, %245, %257 : vector<24x32xi1>, vector<24x32xf32>
    %259 = vector.extract_strided_slice %40 {offsets = [12, 0], sizes = [1, 32], strides = [1, 1]} : vector<15x32xf32> to vector<1x32xf32>
    %260 = vector.broadcast %259 : vector<1x32xf32> to vector<24x32xf32>
    %261 = arith.mulf %258, %260 : vector<24x32xf32>
    %262 = arith.addf %244, %261 : vector<24x32xf32>
    %c18_i32 = arith.constant 18 : i32
    %263 = tpu.dynamic_rotate %39 by %c18_i32 dim 0 : vector<24x32xf32>, i32 -> vector<24x32xf32>
    %c6_i32_70 = arith.constant 6 : i32
    %264 = vector.broadcast %c6_i32_70 : i32 to vector<24x1xi32>
    %265 = arith.addi %41, %264 : vector<24x1xi32>
    %c0_i32_71 = arith.constant 0 : i32
    %266 = vector.broadcast %c0_i32_71 : i32 to vector<24x1xi32>
    %267 = arith.cmpi sge, %265, %266 : vector<24x1xi32>
    %c6_i32_72 = arith.constant 6 : i32
    %268 = vector.broadcast %c6_i32_72 : i32 to vector<24x1xi32>
    %269 = arith.addi %41, %268 : vector<24x1xi32>
    %c24_i32_73 = arith.constant 24 : i32
    %270 = vector.broadcast %c24_i32_73 : i32 to vector<24x1xi32>
    %271 = arith.cmpi slt, %269, %270 : vector<24x1xi32>
    %272 = arith.andi %267, %271 : vector<24x1xi1>
    %cst_74 = arith.constant 0.000000e+00 : f32
    %273 = vector.shape_cast %272 : vector<24x1xi1> to vector<24x1xi1>
    %274 = vector.broadcast %273 : vector<24x1xi1> to vector<24x32xi1>
    %275 = vector.broadcast %cst_74 : f32 to vector<24x32xf32>
    %276 = arith.select %274, %263, %275 : vector<24x32xi1>, vector<24x32xf32>
    %277 = vector.extract_strided_slice %40 {offsets = [13, 0], sizes = [1, 32], strides = [1, 1]} : vector<15x32xf32> to vector<1x32xf32>
    %278 = vector.broadcast %277 : vector<1x32xf32> to vector<24x32xf32>
    %279 = arith.mulf %276, %278 : vector<24x32xf32>
    %280 = arith.addf %262, %279 : vector<24x32xf32>
    %c17_i32 = arith.constant 17 : i32
    %281 = tpu.dynamic_rotate %39 by %c17_i32 dim 0 : vector<24x32xf32>, i32 -> vector<24x32xf32>
    %c7_i32_75 = arith.constant 7 : i32
    %282 = vector.broadcast %c7_i32_75 : i32 to vector<24x1xi32>
    %283 = arith.addi %41, %282 : vector<24x1xi32>
    %c0_i32_76 = arith.constant 0 : i32
    %284 = vector.broadcast %c0_i32_76 : i32 to vector<24x1xi32>
    %285 = arith.cmpi sge, %283, %284 : vector<24x1xi32>
    %c7_i32_77 = arith.constant 7 : i32
    %286 = vector.broadcast %c7_i32_77 : i32 to vector<24x1xi32>
    %287 = arith.addi %41, %286 : vector<24x1xi32>
    %c24_i32_78 = arith.constant 24 : i32
    %288 = vector.broadcast %c24_i32_78 : i32 to vector<24x1xi32>
    %289 = arith.cmpi slt, %287, %288 : vector<24x1xi32>
    %290 = arith.andi %285, %289 : vector<24x1xi1>
    %cst_79 = arith.constant 0.000000e+00 : f32
    %291 = vector.shape_cast %290 : vector<24x1xi1> to vector<24x1xi1>
    %292 = vector.broadcast %291 : vector<24x1xi1> to vector<24x32xi1>
    %293 = vector.broadcast %cst_79 : f32 to vector<24x32xf32>
    %294 = arith.select %292, %281, %293 : vector<24x32xi1>, vector<24x32xf32>
    %295 = vector.extract_strided_slice %40 {offsets = [14, 0], sizes = [1, 32], strides = [1, 1]} : vector<15x32xf32> to vector<1x32xf32>
    %296 = vector.broadcast %295 : vector<1x32xf32> to vector<24x32xf32>
    %297 = arith.mulf %294, %296 : vector<24x32xf32>
    %298 = arith.addf %280, %297 : vector<24x32xf32>
    %c0_80 = arith.constant 0 : index
    %c0_81 = arith.constant 0 : index
    %299 = vector.load %arg7[%c0_80, %c0_81] : memref<1x32xf32, #tpu.memory_space<vmem>>, vector<1x32xf32>
    %300 = vector.broadcast %299 : vector<1x32xf32> to vector<24x32xf32>
    %301 = arith.addf %298, %300 : vector<24x32xf32>
    %302 = vector.shape_cast %301 : vector<24x32xf32> to vector<1x24x32xf32>
    %cst_82 = arith.constant dense<0.000000e+00> : vector<1xf32>
    %303 = vector.multi_reduction <add>, %302, %cst_82 [1, 2] : vector<1x24x32xf32> to vector<1xf32>
    %304 = vector.shape_cast %303 : vector<1xf32> to vector<1x1x1xf32>
    %305 = vector.extract %304[0, 0, 0] : f32 from vector<1x1x1xf32>
    %cst_83 = arith.constant 7.680000e+02 : f32
    %306 = arith.divf %305, %cst_83 : f32
    %307 = vector.broadcast %306 : f32 to vector<24x32xf32>
    %308 = arith.subf %301, %307 : vector<24x32xf32>
    %309 = arith.mulf %308, %308 : vector<24x32xf32>
    %310 = vector.shape_cast %309 : vector<24x32xf32> to vector<1x24x32xf32>
    %cst_84 = arith.constant dense<0.000000e+00> : vector<1xf32>
    %311 = vector.multi_reduction <add>, %310, %cst_84 [1, 2] : vector<1x24x32xf32> to vector<1xf32>
    %312 = vector.shape_cast %311 : vector<1xf32> to vector<1x1x1xf32>
    %313 = vector.extract %312[0, 0, 0] : f32 from vector<1x1x1xf32>
    %cst_85 = arith.constant 7.680000e+02 : f32
    %314 = arith.divf %313, %cst_85 : f32
    %315 = vector.broadcast %306 : f32 to vector<24x32xf32>
    %316 = arith.subf %301, %315 : vector<24x32xf32>
    %cst_86 = arith.constant 9.99999974E-6 : f32
    %317 = arith.addf %314, %cst_86 : f32
    %318 = math.rsqrt %317 : f32
    %319 = vector.broadcast %318 : f32 to vector<24x32xf32>
    %320 = arith.mulf %316, %319 : vector<24x32xf32>
    %c0_87 = arith.constant 0 : index
    %c0_88 = arith.constant 0 : index
    %321 = vector.load %arg8[%c0_87, %c0_88] : memref<1x32xf32, #tpu.memory_space<vmem>>, vector<1x32xf32>
    %322 = vector.broadcast %321 : vector<1x32xf32> to vector<24x32xf32>
    %323 = arith.mulf %320, %322 : vector<24x32xf32>
    %c0_89 = arith.constant 0 : index
    %c0_90 = arith.constant 0 : index
    %324 = vector.load %arg9[%c0_89, %c0_90] : memref<1x32xf32, #tpu.memory_space<vmem>>, vector<1x32xf32>
    %325 = vector.broadcast %324 : vector<1x32xf32> to vector<24x32xf32>
    %326 = arith.addf %323, %325 : vector<24x32xf32>
    %327 = arith.negf %326 : vector<24x32xf32>
    %328 = math.exp %327 : vector<24x32xf32>
    %cst_91 = arith.constant 1.000000e+00 : f32
    %329 = vector.broadcast %cst_91 : f32 to vector<24x32xf32>
    %330 = arith.addf %329, %328 : vector<24x32xf32>
    %331 = arith.divf %329, %330 : vector<24x32xf32>
    %332 = arith.mulf %326, %331 : vector<24x32xf32>
    %c0_92 = arith.constant 0 : index
    %c0_93 = arith.constant 0 : index
    %333 = vector.load %arg10[%c0_92, %c0_93] : memref<32x32xbf16, #tpu.memory_space<vmem>>, vector<32x32xbf16>
    %334 = arith.truncf %332 : vector<24x32xf32> to vector<24x32xbf16>
    %cst_94 = arith.constant dense<0.000000e+00> : vector<24x32xf32>
    %335 = tpu.matmul %334, %333, %cst_94 {dimension_numbers = #tpu.dot_dimension_numbers<[1], [0], [0], [1], [0, 0, 1, 1], [], []>} : vector<24x32xbf16>, vector<32x32xbf16>, vector<24x32xf32> -> vector<24x32xf32>
    %c0_95 = arith.constant 0 : index
    %c0_96 = arith.constant 0 : index
    %336 = vector.load %arg11[%c0_95, %c0_96] : memref<1x32xf32, #tpu.memory_space<vmem>>, vector<1x32xf32>
    %337 = vector.broadcast %336 : vector<1x32xf32> to vector<24x32xf32>
    %338 = arith.addf %335, %337 : vector<24x32xf32>
    %339 = arith.addf %1, %338 : vector<24x32xf32>
    %c0_97 = arith.constant 0 : index
    %c0_98 = arith.constant 0 : index
    %c0_99 = arith.constant 0 : index
    %340 = vector.load %arg12[%c0_97, %c0_98, %c0_99] : memref<1x24x32xf32, #tpu.memory_space<vmem>>, vector<1x24x32xf32>
    %341 = vector.shape_cast %340 : vector<1x24x32xf32> to vector<24x32xf32>
    %342 = vector.shape_cast %339 : vector<24x32xf32> to vector<1x24x32xf32>
    tpu.vector_store %arg12[%c0_97, %c0_98, %c0_99], %342 {strides = array<i32>} : memref<1x24x32xf32, #tpu.memory_space<vmem>>, vector<1x24x32xf32>,
    return
  }
  func.func @transform_0(%arg0: i32) -> (i32, i32, i32) {
    %c0_i32 = arith.constant 0 : i32
    %c0_i32_0 = arith.constant 0 : i32
    %c0_i32_1 = arith.constant 0 : i32
    return %arg0, %c0_i32, %c0_i32_0 : i32, i32, i32
  }
  func.func @transform_1(%arg0: i32) -> (i32, i32) {
    %c0_i32 = arith.constant 0 : i32
    %c0_i32_0 = arith.constant 0 : i32
    %c0_i32_1 = arith.constant 0 : i32
    return %c0_i32, %c0_i32_0 : i32, i32
  }
  func.func @transform_2(%arg0: i32) -> (i32, i32) {
    %c0_i32 = arith.constant 0 : i32
    %c0_i32_0 = arith.constant 0 : i32
    %c0_i32_1 = arith.constant 0 : i32
    return %c0_i32, %c0_i32_0 : i32, i32
  }
  func.func @transform_3(%arg0: i32) -> (i32, i32) {
    %c0_i32 = arith.constant 0 : i32
    %c0_i32_0 = arith.constant 0 : i32
    %c0_i32_1 = arith.constant 0 : i32
    return %c0_i32, %c0_i32_0 : i32, i32
  }
  func.func @transform_4(%arg0: i32) -> (i32, i32) {
    %c0_i32 = arith.constant 0 : i32
    %c0_i32_0 = arith.constant 0 : i32
    %c0_i32_1 = arith.constant 0 : i32
    return %c0_i32, %c0_i32_0 : i32, i32
  }
  func.func @transform_5(%arg0: i32) -> (i32, i32) {
    %c0_i32 = arith.constant 0 : i32
    %c0_i32_0 = arith.constant 0 : i32
    %c0_i32_1 = arith.constant 0 : i32
    return %c0_i32, %c0_i32_0 : i32, i32
  }
  func.func @transform_6(%arg0: i32) -> (i32, i32) {
    %c0_i32 = arith.constant 0 : i32
    %c0_i32_0 = arith.constant 0 : i32
    %c0_i32_1 = arith.constant 0 : i32
    return %c0_i32, %c0_i32_0 : i32, i32
  }
  func.func @transform_7(%arg0: i32) -> (i32, i32) {
    %c0_i32 = arith.constant 0 : i32
    %c0_i32_0 = arith.constant 0 : i32
    %c0_i32_1 = arith.constant 0 : i32
    return %c0_i32, %c0_i32_0 : i32, i32
  }
  func.func @transform_8(%arg0: i32) -> (i32, i32) {
    %c0_i32 = arith.constant 0 : i32
    %c0_i32_0 = arith.constant 0 : i32
    %c0_i32_1 = arith.constant 0 : i32
    return %c0_i32, %c0_i32_0 : i32, i32
  }
  func.func @transform_9(%arg0: i32) -> (i32, i32) {
    %c0_i32 = arith.constant 0 : i32
    %c0_i32_0 = arith.constant 0 : i32
    %c0_i32_1 = arith.constant 0 : i32
    return %c0_i32, %c0_i32_0 : i32, i32
  }
  func.func @transform_10(%arg0: i32) -> (i32, i32) {
    %c0_i32 = arith.constant 0 : i32
    %c0_i32_0 = arith.constant 0 : i32
    %c0_i32_1 = arith.constant 0 : i32
    return %c0_i32, %c0_i32_0 : i32, i32
  }
  func.func @transform_11(%arg0: i32) -> (i32, i32, i32) {
    %c0_i32 = arith.constant 0 : i32
    %c0_i32_0 = arith.constant 0 : i32
    %c0_i32_1 = arith.constant 0 : i32
    return %arg0, %c0_i32, %c0_i32_0 : i32, i32, i32
  }
}

module attributes {stable_mosaic.version = 11 : i64} {
  func.func @_ffn_post_kernel(%arg0: i32, %arg1: i32, %arg2: memref<1x24x32xf32, #tpu.memory_space<vmem>>, %arg3: memref<1x32xf32, #tpu.memory_space<vmem>>, %arg4: memref<1x32xf32, #tpu.memory_space<vmem>>, %arg5: memref<32x64xbf16, #tpu.memory_space<vmem>>, %arg6: memref<1x64xf32, #tpu.memory_space<vmem>>, %arg7: memref<64x32xbf16, #tpu.memory_space<vmem>>, %arg8: memref<1x32xf32, #tpu.memory_space<vmem>>, %arg9: memref<1x32xf32, #tpu.memory_space<vmem>>, %arg10: memref<1x32xf32, #tpu.memory_space<vmem>>, %arg11: memref<1x24x32xf32, #tpu.memory_space<vmem>>) attributes {dimension_semantics = [#tpu.dimension_semantics<parallel>, #tpu.dimension_semantics<parallel>], iteration_bounds = array<i64: 2, 1>, scalar_prefetch = 0 : i64, scratch_operands = 0 : i64, tpu.core_type = #tpu.core_type<tc>, window_params = [{transform_indices = @transform_0, window_bounds = array<i64: 1, 24, 32>}, {pipeline_mode = #tpu.pipeline_mode<synchronous>, transform_indices = @transform_1, window_bounds = array<i64: 1, 32>}, {pipeline_mode = #tpu.pipeline_mode<synchronous>, transform_indices = @transform_2, window_bounds = array<i64: 1, 32>}, {pipeline_mode = #tpu.pipeline_mode<synchronous>, transform_indices = @transform_3, window_bounds = array<i64: 32, 64>}, {pipeline_mode = #tpu.pipeline_mode<synchronous>, transform_indices = @transform_4, window_bounds = array<i64: 1, 64>}, {pipeline_mode = #tpu.pipeline_mode<synchronous>, transform_indices = @transform_5, window_bounds = array<i64: 64, 32>}, {pipeline_mode = #tpu.pipeline_mode<synchronous>, transform_indices = @transform_6, window_bounds = array<i64: 1, 32>}, {pipeline_mode = #tpu.pipeline_mode<synchronous>, transform_indices = @transform_7, window_bounds = array<i64: 1, 32>}, {pipeline_mode = #tpu.pipeline_mode<synchronous>, transform_indices = @transform_8, window_bounds = array<i64: 1, 32>}, {transform_indices = @transform_9, window_bounds = array<i64: 1, 24, 32>}]} {
    %c0 = arith.constant 0 : index
    %c0_0 = arith.constant 0 : index
    %c0_1 = arith.constant 0 : index
    %0 = vector.load %arg2[%c0, %c0_0, %c0_1] : memref<1x24x32xf32, #tpu.memory_space<vmem>>, vector<1x24x32xf32>
    %1 = vector.shape_cast %0 : vector<1x24x32xf32> to vector<24x32xf32>
    %c0_2 = arith.constant 0 : index
    %c0_3 = arith.constant 0 : index
    %2 = vector.load %arg3[%c0_2, %c0_3] : memref<1x32xf32, #tpu.memory_space<vmem>>, vector<1x32xf32>
    %c0_4 = arith.constant 0 : index
    %c0_5 = arith.constant 0 : index
    %3 = vector.load %arg4[%c0_4, %c0_5] : memref<1x32xf32, #tpu.memory_space<vmem>>, vector<1x32xf32>
    %cst = arith.constant dense<0.000000e+00> : vector<24xf32>
    %4 = vector.multi_reduction <add>, %1, %cst [1] : vector<24x32xf32> to vector<24xf32>
    %5 = vector.shape_cast %4 : vector<24xf32> to vector<24x1xf32>
    %cst_6 = arith.constant 3.200000e+01 : f32
    %6 = vector.broadcast %cst_6 : f32 to vector<24x1xf32>
    %7 = arith.divf %5, %6 : vector<24x1xf32>
    %8 = vector.broadcast %7 : vector<24x1xf32> to vector<24x32xf32>
    %9 = arith.subf %1, %8 : vector<24x32xf32>
    %10 = arith.mulf %9, %9 : vector<24x32xf32>
    %cst_7 = arith.constant dense<0.000000e+00> : vector<24xf32>
    %11 = vector.multi_reduction <add>, %10, %cst_7 [1] : vector<24x32xf32> to vector<24xf32>
    %12 = vector.shape_cast %11 : vector<24xf32> to vector<24x1xf32>
    %cst_8 = arith.constant 3.200000e+01 : f32
    %13 = vector.broadcast %cst_8 : f32 to vector<24x1xf32>
    %14 = arith.divf %12, %13 : vector<24x1xf32>
    %15 = vector.broadcast %7 : vector<24x1xf32> to vector<24x32xf32>
    %16 = arith.subf %1, %15 : vector<24x32xf32>
    %cst_9 = arith.constant 9.99999974E-6 : f32
    %17 = vector.broadcast %cst_9 : f32 to vector<24x1xf32>
    %18 = arith.addf %14, %17 : vector<24x1xf32>
    %19 = math.rsqrt %18 : vector<24x1xf32>
    %20 = vector.broadcast %19 : vector<24x1xf32> to vector<24x32xf32>
    %21 = arith.mulf %16, %20 : vector<24x32xf32>
    %22 = vector.broadcast %2 : vector<1x32xf32> to vector<24x32xf32>
    %23 = arith.mulf %21, %22 : vector<24x32xf32>
    %24 = vector.broadcast %3 : vector<1x32xf32> to vector<24x32xf32>
    %25 = arith.addf %23, %24 : vector<24x32xf32>
    %c0_10 = arith.constant 0 : index
    %c0_11 = arith.constant 0 : index
    %26 = vector.load %arg5[%c0_10, %c0_11] : memref<32x64xbf16, #tpu.memory_space<vmem>>, vector<32x64xbf16>
    %27 = arith.truncf %25 : vector<24x32xf32> to vector<24x32xbf16>
    %cst_12 = arith.constant dense<0.000000e+00> : vector<24x64xf32>
    %28 = tpu.matmul %27, %26, %cst_12 {dimension_numbers = #tpu.dot_dimension_numbers<[1], [0], [0], [1], [0, 0, 1, 1], [], []>} : vector<24x32xbf16>, vector<32x64xbf16>, vector<24x64xf32> -> vector<24x64xf32>
    %c0_13 = arith.constant 0 : index
    %c0_14 = arith.constant 0 : index
    %29 = vector.load %arg6[%c0_13, %c0_14] : memref<1x64xf32, #tpu.memory_space<vmem>>, vector<1x64xf32>
    %30 = vector.broadcast %29 : vector<1x64xf32> to vector<24x64xf32>
    %31 = arith.addf %28, %30 : vector<24x64xf32>
    %32 = arith.negf %31 : vector<24x64xf32>
    %33 = math.exp %32 : vector<24x64xf32>
    %cst_15 = arith.constant 1.000000e+00 : f32
    %34 = vector.broadcast %cst_15 : f32 to vector<24x64xf32>
    %35 = arith.addf %34, %33 : vector<24x64xf32>
    %36 = arith.divf %34, %35 : vector<24x64xf32>
    %37 = arith.mulf %31, %36 : vector<24x64xf32>
    %c0_16 = arith.constant 0 : index
    %c0_17 = arith.constant 0 : index
    %38 = vector.load %arg7[%c0_16, %c0_17] : memref<64x32xbf16, #tpu.memory_space<vmem>>, vector<64x32xbf16>
    %39 = arith.truncf %37 : vector<24x64xf32> to vector<24x64xbf16>
    %cst_18 = arith.constant dense<0.000000e+00> : vector<24x32xf32>
    %40 = tpu.matmul %39, %38, %cst_18 {dimension_numbers = #tpu.dot_dimension_numbers<[1], [0], [0], [1], [0, 0, 1, 1], [], []>} : vector<24x64xbf16>, vector<64x32xbf16>, vector<24x32xf32> -> vector<24x32xf32>
    %c0_19 = arith.constant 0 : index
    %c0_20 = arith.constant 0 : index
    %41 = vector.load %arg8[%c0_19, %c0_20] : memref<1x32xf32, #tpu.memory_space<vmem>>, vector<1x32xf32>
    %42 = vector.broadcast %41 : vector<1x32xf32> to vector<24x32xf32>
    %43 = arith.addf %40, %42 : vector<24x32xf32>
    %cst_21 = arith.constant 5.000000e-01 : f32
    %44 = vector.broadcast %cst_21 : f32 to vector<24x32xf32>
    %45 = arith.mulf %44, %43 : vector<24x32xf32>
    %46 = arith.addf %1, %45 : vector<24x32xf32>
    %c0_22 = arith.constant 0 : index
    %c0_23 = arith.constant 0 : index
    %47 = vector.load %arg9[%c0_22, %c0_23] : memref<1x32xf32, #tpu.memory_space<vmem>>, vector<1x32xf32>
    %c0_24 = arith.constant 0 : index
    %c0_25 = arith.constant 0 : index
    %48 = vector.load %arg10[%c0_24, %c0_25] : memref<1x32xf32, #tpu.memory_space<vmem>>, vector<1x32xf32>
    %cst_26 = arith.constant dense<0.000000e+00> : vector<24xf32>
    %49 = vector.multi_reduction <add>, %46, %cst_26 [1] : vector<24x32xf32> to vector<24xf32>
    %50 = vector.shape_cast %49 : vector<24xf32> to vector<24x1xf32>
    %cst_27 = arith.constant 3.200000e+01 : f32
    %51 = vector.broadcast %cst_27 : f32 to vector<24x1xf32>
    %52 = arith.divf %50, %51 : vector<24x1xf32>
    %53 = vector.broadcast %52 : vector<24x1xf32> to vector<24x32xf32>
    %54 = arith.subf %46, %53 : vector<24x32xf32>
    %55 = arith.mulf %54, %54 : vector<24x32xf32>
    %cst_28 = arith.constant dense<0.000000e+00> : vector<24xf32>
    %56 = vector.multi_reduction <add>, %55, %cst_28 [1] : vector<24x32xf32> to vector<24xf32>
    %57 = vector.shape_cast %56 : vector<24xf32> to vector<24x1xf32>
    %cst_29 = arith.constant 3.200000e+01 : f32
    %58 = vector.broadcast %cst_29 : f32 to vector<24x1xf32>
    %59 = arith.divf %57, %58 : vector<24x1xf32>
    %60 = vector.broadcast %52 : vector<24x1xf32> to vector<24x32xf32>
    %61 = arith.subf %46, %60 : vector<24x32xf32>
    %cst_30 = arith.constant 9.99999974E-6 : f32
    %62 = vector.broadcast %cst_30 : f32 to vector<24x1xf32>
    %63 = arith.addf %59, %62 : vector<24x1xf32>
    %64 = math.rsqrt %63 : vector<24x1xf32>
    %65 = vector.broadcast %64 : vector<24x1xf32> to vector<24x32xf32>
    %66 = arith.mulf %61, %65 : vector<24x32xf32>
    %67 = vector.broadcast %47 : vector<1x32xf32> to vector<24x32xf32>
    %68 = arith.mulf %66, %67 : vector<24x32xf32>
    %69 = vector.broadcast %48 : vector<1x32xf32> to vector<24x32xf32>
    %70 = arith.addf %68, %69 : vector<24x32xf32>
    %c0_31 = arith.constant 0 : index
    %c0_32 = arith.constant 0 : index
    %c0_33 = arith.constant 0 : index
    %71 = vector.load %arg11[%c0_31, %c0_32, %c0_33] : memref<1x24x32xf32, #tpu.memory_space<vmem>>, vector<1x24x32xf32>
    %72 = vector.shape_cast %71 : vector<1x24x32xf32> to vector<24x32xf32>
    %73 = vector.shape_cast %70 : vector<24x32xf32> to vector<1x24x32xf32>
    tpu.vector_store %arg11[%c0_31, %c0_32, %c0_33], %73 {strides = array<i32>} : memref<1x24x32xf32, #tpu.memory_space<vmem>>, vector<1x24x32xf32>,
    return
  }
  func.func @transform_0(%arg0: i32, %arg1: i32) -> (i32, i32, i32) {
    %c0_i32 = arith.constant 0 : i32
    %c0_i32_0 = arith.constant 0 : i32
    return %arg0, %arg1, %c0_i32 : i32, i32, i32
  }
  func.func @transform_1(%arg0: i32, %arg1: i32) -> (i32, i32) {
    %c0_i32 = arith.constant 0 : i32
    %c0_i32_0 = arith.constant 0 : i32
    %c0_i32_1 = arith.constant 0 : i32
    return %c0_i32, %c0_i32_0 : i32, i32
  }
  func.func @transform_2(%arg0: i32, %arg1: i32) -> (i32, i32) {
    %c0_i32 = arith.constant 0 : i32
    %c0_i32_0 = arith.constant 0 : i32
    %c0_i32_1 = arith.constant 0 : i32
    return %c0_i32, %c0_i32_0 : i32, i32
  }
  func.func @transform_3(%arg0: i32, %arg1: i32) -> (i32, i32) {
    %c0_i32 = arith.constant 0 : i32
    %c0_i32_0 = arith.constant 0 : i32
    %c0_i32_1 = arith.constant 0 : i32
    return %c0_i32, %c0_i32_0 : i32, i32
  }
  func.func @transform_4(%arg0: i32, %arg1: i32) -> (i32, i32) {
    %c0_i32 = arith.constant 0 : i32
    %c0_i32_0 = arith.constant 0 : i32
    %c0_i32_1 = arith.constant 0 : i32
    return %c0_i32, %c0_i32_0 : i32, i32
  }
  func.func @transform_5(%arg0: i32, %arg1: i32) -> (i32, i32) {
    %c0_i32 = arith.constant 0 : i32
    %c0_i32_0 = arith.constant 0 : i32
    %c0_i32_1 = arith.constant 0 : i32
    return %c0_i32, %c0_i32_0 : i32, i32
  }
  func.func @transform_6(%arg0: i32, %arg1: i32) -> (i32, i32) {
    %c0_i32 = arith.constant 0 : i32
    %c0_i32_0 = arith.constant 0 : i32
    %c0_i32_1 = arith.constant 0 : i32
    return %c0_i32, %c0_i32_0 : i32, i32
  }
  func.func @transform_7(%arg0: i32, %arg1: i32) -> (i32, i32) {
    %c0_i32 = arith.constant 0 : i32
    %c0_i32_0 = arith.constant 0 : i32
    %c0_i32_1 = arith.constant 0 : i32
    return %c0_i32, %c0_i32_0 : i32, i32
  }
  func.func @transform_8(%arg0: i32, %arg1: i32) -> (i32, i32) {
    %c0_i32 = arith.constant 0 : i32
    %c0_i32_0 = arith.constant 0 : i32
    %c0_i32_1 = arith.constant 0 : i32
    return %c0_i32, %c0_i32_0 : i32, i32
  }
  func.func @transform_9(%arg0: i32, %arg1: i32) -> (i32, i32, i32) {
    %c0_i32 = arith.constant 0 : i32
    %c0_i32_0 = arith.constant 0 : i32
    return %arg0, %arg1, %c0_i32 : i32, i32, i32
  }
}

module attributes {stable_mosaic.version = 11 : i64} {
  func.func @_convmod_kernel(%arg0: i32, %arg1: memref<1x24x32xf32, #tpu.memory_space<vmem>>, %arg2: memref<1x32xf32, #tpu.memory_space<vmem>>, %arg3: memref<1x32xf32, #tpu.memory_space<vmem>>, %arg4: memref<32x64xbf16, #tpu.memory_space<vmem>>, %arg5: memref<1x64xf32, #tpu.memory_space<vmem>>, %arg6: memref<7x32xf32, #tpu.memory_space<vmem>>, %arg7: memref<1x32xf32, #tpu.memory_space<vmem>>, %arg8: memref<1x32xf32, #tpu.memory_space<vmem>>, %arg9: memref<1x32xf32, #tpu.memory_space<vmem>>, %arg10: memref<32x32xbf16, #tpu.memory_space<vmem>>, %arg11: memref<1x32xf32, #tpu.memory_space<vmem>>, %arg12: memref<1x24x32xf32, #tpu.memory_space<vmem>>) attributes {dimension_semantics = [#tpu.dimension_semantics<parallel>], iteration_bounds = array<i64: 2>, scalar_prefetch = 0 : i64, scratch_operands = 0 : i64, tpu.core_type = #tpu.core_type<tc>, window_params = [{transform_indices = @transform_0, window_bounds = array<i64: 1, 24, 32>}, {pipeline_mode = #tpu.pipeline_mode<synchronous>, transform_indices = @transform_1, window_bounds = array<i64: 1, 32>}, {pipeline_mode = #tpu.pipeline_mode<synchronous>, transform_indices = @transform_2, window_bounds = array<i64: 1, 32>}, {pipeline_mode = #tpu.pipeline_mode<synchronous>, transform_indices = @transform_3, window_bounds = array<i64: 32, 64>}, {pipeline_mode = #tpu.pipeline_mode<synchronous>, transform_indices = @transform_4, window_bounds = array<i64: 1, 64>}, {pipeline_mode = #tpu.pipeline_mode<synchronous>, transform_indices = @transform_5, window_bounds = array<i64: 7, 32>}, {pipeline_mode = #tpu.pipeline_mode<synchronous>, transform_indices = @transform_6, window_bounds = array<i64: 1, 32>}, {pipeline_mode = #tpu.pipeline_mode<synchronous>, transform_indices = @transform_7, window_bounds = array<i64: 1, 32>}, {pipeline_mode = #tpu.pipeline_mode<synchronous>, transform_indices = @transform_8, window_bounds = array<i64: 1, 32>}, {pipeline_mode = #tpu.pipeline_mode<synchronous>, transform_indices = @transform_9, window_bounds = array<i64: 32, 32>}, {pipeline_mode = #tpu.pipeline_mode<synchronous>, transform_indices = @transform_10, window_bounds = array<i64: 1, 32>}, {transform_indices = @transform_11, window_bounds = array<i64: 1, 24, 32>}]} {
    %c0 = arith.constant 0 : index
    %c0_0 = arith.constant 0 : index
    %c0_1 = arith.constant 0 : index
    %0 = vector.load %arg1[%c0, %c0_0, %c0_1] : memref<1x24x32xf32, #tpu.memory_space<vmem>>, vector<1x24x32xf32>
    %1 = vector.shape_cast %0 : vector<1x24x32xf32> to vector<24x32xf32>
    %c0_2 = arith.constant 0 : index
    %c0_3 = arith.constant 0 : index
    %2 = vector.load %arg2[%c0_2, %c0_3] : memref<1x32xf32, #tpu.memory_space<vmem>>, vector<1x32xf32>
    %c0_4 = arith.constant 0 : index
    %c0_5 = arith.constant 0 : index
    %3 = vector.load %arg3[%c0_4, %c0_5] : memref<1x32xf32, #tpu.memory_space<vmem>>, vector<1x32xf32>
    %cst = arith.constant dense<0.000000e+00> : vector<24xf32>
    %4 = vector.multi_reduction <add>, %1, %cst [1] : vector<24x32xf32> to vector<24xf32>
    %5 = vector.shape_cast %4 : vector<24xf32> to vector<24x1xf32>
    %cst_6 = arith.constant 3.200000e+01 : f32
    %6 = vector.broadcast %cst_6 : f32 to vector<24x1xf32>
    %7 = arith.divf %5, %6 : vector<24x1xf32>
    %8 = vector.broadcast %7 : vector<24x1xf32> to vector<24x32xf32>
    %9 = arith.subf %1, %8 : vector<24x32xf32>
    %10 = arith.mulf %9, %9 : vector<24x32xf32>
    %cst_7 = arith.constant dense<0.000000e+00> : vector<24xf32>
    %11 = vector.multi_reduction <add>, %10, %cst_7 [1] : vector<24x32xf32> to vector<24xf32>
    %12 = vector.shape_cast %11 : vector<24xf32> to vector<24x1xf32>
    %cst_8 = arith.constant 3.200000e+01 : f32
    %13 = vector.broadcast %cst_8 : f32 to vector<24x1xf32>
    %14 = arith.divf %12, %13 : vector<24x1xf32>
    %15 = vector.broadcast %7 : vector<24x1xf32> to vector<24x32xf32>
    %16 = arith.subf %1, %15 : vector<24x32xf32>
    %cst_9 = arith.constant 9.99999974E-6 : f32
    %17 = vector.broadcast %cst_9 : f32 to vector<24x1xf32>
    %18 = arith.addf %14, %17 : vector<24x1xf32>
    %19 = math.rsqrt %18 : vector<24x1xf32>
    %20 = vector.broadcast %19 : vector<24x1xf32> to vector<24x32xf32>
    %21 = arith.mulf %16, %20 : vector<24x32xf32>
    %22 = vector.broadcast %2 : vector<1x32xf32> to vector<24x32xf32>
    %23 = arith.mulf %21, %22 : vector<24x32xf32>
    %24 = vector.broadcast %3 : vector<1x32xf32> to vector<24x32xf32>
    %25 = arith.addf %23, %24 : vector<24x32xf32>
    %c0_10 = arith.constant 0 : index
    %c0_11 = arith.constant 0 : index
    %26 = vector.load %arg4[%c0_10, %c0_11] : memref<32x64xbf16, #tpu.memory_space<vmem>>, vector<32x64xbf16>
    %27 = arith.truncf %25 : vector<24x32xf32> to vector<24x32xbf16>
    %cst_12 = arith.constant dense<0.000000e+00> : vector<24x64xf32>
    %28 = tpu.matmul %27, %26, %cst_12 {dimension_numbers = #tpu.dot_dimension_numbers<[1], [0], [0], [1], [0, 0, 1, 1], [], []>} : vector<24x32xbf16>, vector<32x64xbf16>, vector<24x64xf32> -> vector<24x64xf32>
    %c0_13 = arith.constant 0 : index
    %c0_14 = arith.constant 0 : index
    %29 = vector.load %arg5[%c0_13, %c0_14] : memref<1x64xf32, #tpu.memory_space<vmem>>, vector<1x64xf32>
    %30 = vector.broadcast %29 : vector<1x64xf32> to vector<24x64xf32>
    %31 = arith.addf %28, %30 : vector<24x64xf32>
    %32 = vector.extract_strided_slice %31 {offsets = [0, 0], sizes = [24, 32], strides = [1, 1]} : vector<24x64xf32> to vector<24x32xf32>
    %33 = vector.extract_strided_slice %31 {offsets = [0, 32], sizes = [24, 32], strides = [1, 1]} : vector<24x64xf32> to vector<24x32xf32>
    %34 = arith.negf %33 : vector<24x32xf32>
    %35 = math.exp %34 : vector<24x32xf32>
    %cst_15 = arith.constant 1.000000e+00 : f32
    %36 = vector.broadcast %cst_15 : f32 to vector<24x32xf32>
    %37 = arith.addf %36, %35 : vector<24x32xf32>
    %38 = arith.divf %36, %37 : vector<24x32xf32>
    %39 = arith.mulf %32, %38 : vector<24x32xf32>
    %c0_16 = arith.constant 0 : index
    %c0_17 = arith.constant 0 : index
    %40 = vector.load %arg6[%c0_16, %c0_17] : memref<7x32xf32, #tpu.memory_space<vmem>>, vector<7x32xf32>
    %41 = tpu.iota {dimensions = array<i32: 0>} : vector<24x1xi32>
    %cst_18 = arith.constant 0.000000e+00 : f32
    %42 = vector.broadcast %cst_18 : f32 to vector<24x32xf32>
    %c3_i32 = arith.constant 3 : i32
    %43 = tpu.dynamic_rotate %39 by %c3_i32 dim 0 : vector<24x32xf32>, i32 -> vector<24x32xf32>
    %c-3_i32 = arith.constant -3 : i32
    %44 = vector.broadcast %c-3_i32 : i32 to vector<24x1xi32>
    %45 = arith.addi %41, %44 : vector<24x1xi32>
    %c0_i32 = arith.constant 0 : i32
    %46 = vector.broadcast %c0_i32 : i32 to vector<24x1xi32>
    %47 = arith.cmpi sge, %45, %46 : vector<24x1xi32>
    %c-3_i32_19 = arith.constant -3 : i32
    %48 = vector.broadcast %c-3_i32_19 : i32 to vector<24x1xi32>
    %49 = arith.addi %41, %48 : vector<24x1xi32>
    %c24_i32 = arith.constant 24 : i32
    %50 = vector.broadcast %c24_i32 : i32 to vector<24x1xi32>
    %51 = arith.cmpi slt, %49, %50 : vector<24x1xi32>
    %52 = arith.andi %47, %51 : vector<24x1xi1>
    %cst_20 = arith.constant 0.000000e+00 : f32
    %53 = vector.shape_cast %52 : vector<24x1xi1> to vector<24x1xi1>
    %54 = vector.broadcast %53 : vector<24x1xi1> to vector<24x32xi1>
    %55 = vector.broadcast %cst_20 : f32 to vector<24x32xf32>
    %56 = arith.select %54, %43, %55 : vector<24x32xi1>, vector<24x32xf32>
    %57 = vector.extract_strided_slice %40 {offsets = [0, 0], sizes = [1, 32], strides = [1, 1]} : vector<7x32xf32> to vector<1x32xf32>
    %58 = vector.broadcast %57 : vector<1x32xf32> to vector<24x32xf32>
    %59 = arith.mulf %56, %58 : vector<24x32xf32>
    %60 = arith.addf %42, %59 : vector<24x32xf32>
    %c2_i32 = arith.constant 2 : i32
    %61 = tpu.dynamic_rotate %39 by %c2_i32 dim 0 : vector<24x32xf32>, i32 -> vector<24x32xf32>
    %c-2_i32 = arith.constant -2 : i32
    %62 = vector.broadcast %c-2_i32 : i32 to vector<24x1xi32>
    %63 = arith.addi %41, %62 : vector<24x1xi32>
    %c0_i32_21 = arith.constant 0 : i32
    %64 = vector.broadcast %c0_i32_21 : i32 to vector<24x1xi32>
    %65 = arith.cmpi sge, %63, %64 : vector<24x1xi32>
    %c-2_i32_22 = arith.constant -2 : i32
    %66 = vector.broadcast %c-2_i32_22 : i32 to vector<24x1xi32>
    %67 = arith.addi %41, %66 : vector<24x1xi32>
    %c24_i32_23 = arith.constant 24 : i32
    %68 = vector.broadcast %c24_i32_23 : i32 to vector<24x1xi32>
    %69 = arith.cmpi slt, %67, %68 : vector<24x1xi32>
    %70 = arith.andi %65, %69 : vector<24x1xi1>
    %cst_24 = arith.constant 0.000000e+00 : f32
    %71 = vector.shape_cast %70 : vector<24x1xi1> to vector<24x1xi1>
    %72 = vector.broadcast %71 : vector<24x1xi1> to vector<24x32xi1>
    %73 = vector.broadcast %cst_24 : f32 to vector<24x32xf32>
    %74 = arith.select %72, %61, %73 : vector<24x32xi1>, vector<24x32xf32>
    %75 = vector.extract_strided_slice %40 {offsets = [1, 0], sizes = [1, 32], strides = [1, 1]} : vector<7x32xf32> to vector<1x32xf32>
    %76 = vector.broadcast %75 : vector<1x32xf32> to vector<24x32xf32>
    %77 = arith.mulf %74, %76 : vector<24x32xf32>
    %78 = arith.addf %60, %77 : vector<24x32xf32>
    %c1_i32 = arith.constant 1 : i32
    %79 = tpu.dynamic_rotate %39 by %c1_i32 dim 0 : vector<24x32xf32>, i32 -> vector<24x32xf32>
    %c-1_i32 = arith.constant -1 : i32
    %80 = vector.broadcast %c-1_i32 : i32 to vector<24x1xi32>
    %81 = arith.addi %41, %80 : vector<24x1xi32>
    %c0_i32_25 = arith.constant 0 : i32
    %82 = vector.broadcast %c0_i32_25 : i32 to vector<24x1xi32>
    %83 = arith.cmpi sge, %81, %82 : vector<24x1xi32>
    %c-1_i32_26 = arith.constant -1 : i32
    %84 = vector.broadcast %c-1_i32_26 : i32 to vector<24x1xi32>
    %85 = arith.addi %41, %84 : vector<24x1xi32>
    %c24_i32_27 = arith.constant 24 : i32
    %86 = vector.broadcast %c24_i32_27 : i32 to vector<24x1xi32>
    %87 = arith.cmpi slt, %85, %86 : vector<24x1xi32>
    %88 = arith.andi %83, %87 : vector<24x1xi1>
    %cst_28 = arith.constant 0.000000e+00 : f32
    %89 = vector.shape_cast %88 : vector<24x1xi1> to vector<24x1xi1>
    %90 = vector.broadcast %89 : vector<24x1xi1> to vector<24x32xi1>
    %91 = vector.broadcast %cst_28 : f32 to vector<24x32xf32>
    %92 = arith.select %90, %79, %91 : vector<24x32xi1>, vector<24x32xf32>
    %93 = vector.extract_strided_slice %40 {offsets = [2, 0], sizes = [1, 32], strides = [1, 1]} : vector<7x32xf32> to vector<1x32xf32>
    %94 = vector.broadcast %93 : vector<1x32xf32> to vector<24x32xf32>
    %95 = arith.mulf %92, %94 : vector<24x32xf32>
    %96 = arith.addf %78, %95 : vector<24x32xf32>
    %97 = vector.extract_strided_slice %40 {offsets = [3, 0], sizes = [1, 32], strides = [1, 1]} : vector<7x32xf32> to vector<1x32xf32>
    %98 = vector.broadcast %97 : vector<1x32xf32> to vector<24x32xf32>
    %99 = arith.mulf %39, %98 : vector<24x32xf32>
    %100 = arith.addf %96, %99 : vector<24x32xf32>
    %c23_i32 = arith.constant 23 : i32
    %101 = tpu.dynamic_rotate %39 by %c23_i32 dim 0 : vector<24x32xf32>, i32 -> vector<24x32xf32>
    %c1_i32_29 = arith.constant 1 : i32
    %102 = vector.broadcast %c1_i32_29 : i32 to vector<24x1xi32>
    %103 = arith.addi %41, %102 : vector<24x1xi32>
    %c0_i32_30 = arith.constant 0 : i32
    %104 = vector.broadcast %c0_i32_30 : i32 to vector<24x1xi32>
    %105 = arith.cmpi sge, %103, %104 : vector<24x1xi32>
    %c1_i32_31 = arith.constant 1 : i32
    %106 = vector.broadcast %c1_i32_31 : i32 to vector<24x1xi32>
    %107 = arith.addi %41, %106 : vector<24x1xi32>
    %c24_i32_32 = arith.constant 24 : i32
    %108 = vector.broadcast %c24_i32_32 : i32 to vector<24x1xi32>
    %109 = arith.cmpi slt, %107, %108 : vector<24x1xi32>
    %110 = arith.andi %105, %109 : vector<24x1xi1>
    %cst_33 = arith.constant 0.000000e+00 : f32
    %111 = vector.shape_cast %110 : vector<24x1xi1> to vector<24x1xi1>
    %112 = vector.broadcast %111 : vector<24x1xi1> to vector<24x32xi1>
    %113 = vector.broadcast %cst_33 : f32 to vector<24x32xf32>
    %114 = arith.select %112, %101, %113 : vector<24x32xi1>, vector<24x32xf32>
    %115 = vector.extract_strided_slice %40 {offsets = [4, 0], sizes = [1, 32], strides = [1, 1]} : vector<7x32xf32> to vector<1x32xf32>
    %116 = vector.broadcast %115 : vector<1x32xf32> to vector<24x32xf32>
    %117 = arith.mulf %114, %116 : vector<24x32xf32>
    %118 = arith.addf %100, %117 : vector<24x32xf32>
    %c22_i32 = arith.constant 22 : i32
    %119 = tpu.dynamic_rotate %39 by %c22_i32 dim 0 : vector<24x32xf32>, i32 -> vector<24x32xf32>
    %c2_i32_34 = arith.constant 2 : i32
    %120 = vector.broadcast %c2_i32_34 : i32 to vector<24x1xi32>
    %121 = arith.addi %41, %120 : vector<24x1xi32>
    %c0_i32_35 = arith.constant 0 : i32
    %122 = vector.broadcast %c0_i32_35 : i32 to vector<24x1xi32>
    %123 = arith.cmpi sge, %121, %122 : vector<24x1xi32>
    %c2_i32_36 = arith.constant 2 : i32
    %124 = vector.broadcast %c2_i32_36 : i32 to vector<24x1xi32>
    %125 = arith.addi %41, %124 : vector<24x1xi32>
    %c24_i32_37 = arith.constant 24 : i32
    %126 = vector.broadcast %c24_i32_37 : i32 to vector<24x1xi32>
    %127 = arith.cmpi slt, %125, %126 : vector<24x1xi32>
    %128 = arith.andi %123, %127 : vector<24x1xi1>
    %cst_38 = arith.constant 0.000000e+00 : f32
    %129 = vector.shape_cast %128 : vector<24x1xi1> to vector<24x1xi1>
    %130 = vector.broadcast %129 : vector<24x1xi1> to vector<24x32xi1>
    %131 = vector.broadcast %cst_38 : f32 to vector<24x32xf32>
    %132 = arith.select %130, %119, %131 : vector<24x32xi1>, vector<24x32xf32>
    %133 = vector.extract_strided_slice %40 {offsets = [5, 0], sizes = [1, 32], strides = [1, 1]} : vector<7x32xf32> to vector<1x32xf32>
    %134 = vector.broadcast %133 : vector<1x32xf32> to vector<24x32xf32>
    %135 = arith.mulf %132, %134 : vector<24x32xf32>
    %136 = arith.addf %118, %135 : vector<24x32xf32>
    %c21_i32 = arith.constant 21 : i32
    %137 = tpu.dynamic_rotate %39 by %c21_i32 dim 0 : vector<24x32xf32>, i32 -> vector<24x32xf32>
    %c3_i32_39 = arith.constant 3 : i32
    %138 = vector.broadcast %c3_i32_39 : i32 to vector<24x1xi32>
    %139 = arith.addi %41, %138 : vector<24x1xi32>
    %c0_i32_40 = arith.constant 0 : i32
    %140 = vector.broadcast %c0_i32_40 : i32 to vector<24x1xi32>
    %141 = arith.cmpi sge, %139, %140 : vector<24x1xi32>
    %c3_i32_41 = arith.constant 3 : i32
    %142 = vector.broadcast %c3_i32_41 : i32 to vector<24x1xi32>
    %143 = arith.addi %41, %142 : vector<24x1xi32>
    %c24_i32_42 = arith.constant 24 : i32
    %144 = vector.broadcast %c24_i32_42 : i32 to vector<24x1xi32>
    %145 = arith.cmpi slt, %143, %144 : vector<24x1xi32>
    %146 = arith.andi %141, %145 : vector<24x1xi1>
    %cst_43 = arith.constant 0.000000e+00 : f32
    %147 = vector.shape_cast %146 : vector<24x1xi1> to vector<24x1xi1>
    %148 = vector.broadcast %147 : vector<24x1xi1> to vector<24x32xi1>
    %149 = vector.broadcast %cst_43 : f32 to vector<24x32xf32>
    %150 = arith.select %148, %137, %149 : vector<24x32xi1>, vector<24x32xf32>
    %151 = vector.extract_strided_slice %40 {offsets = [6, 0], sizes = [1, 32], strides = [1, 1]} : vector<7x32xf32> to vector<1x32xf32>
    %152 = vector.broadcast %151 : vector<1x32xf32> to vector<24x32xf32>
    %153 = arith.mulf %150, %152 : vector<24x32xf32>
    %154 = arith.addf %136, %153 : vector<24x32xf32>
    %c0_44 = arith.constant 0 : index
    %c0_45 = arith.constant 0 : index
    %155 = vector.load %arg7[%c0_44, %c0_45] : memref<1x32xf32, #tpu.memory_space<vmem>>, vector<1x32xf32>
    %156 = vector.broadcast %155 : vector<1x32xf32> to vector<24x32xf32>
    %157 = arith.addf %154, %156 : vector<24x32xf32>
    %158 = vector.shape_cast %157 : vector<24x32xf32> to vector<1x24x32xf32>
    %cst_46 = arith.constant dense<0.000000e+00> : vector<1xf32>
    %159 = vector.multi_reduction <add>, %158, %cst_46 [1, 2] : vector<1x24x32xf32> to vector<1xf32>
    %160 = vector.shape_cast %159 : vector<1xf32> to vector<1x1x1xf32>
    %161 = vector.extract %160[0, 0, 0] : f32 from vector<1x1x1xf32>
    %cst_47 = arith.constant 7.680000e+02 : f32
    %162 = arith.divf %161, %cst_47 : f32
    %163 = vector.broadcast %162 : f32 to vector<24x32xf32>
    %164 = arith.subf %157, %163 : vector<24x32xf32>
    %165 = arith.mulf %164, %164 : vector<24x32xf32>
    %166 = vector.shape_cast %165 : vector<24x32xf32> to vector<1x24x32xf32>
    %cst_48 = arith.constant dense<0.000000e+00> : vector<1xf32>
    %167 = vector.multi_reduction <add>, %166, %cst_48 [1, 2] : vector<1x24x32xf32> to vector<1xf32>
    %168 = vector.shape_cast %167 : vector<1xf32> to vector<1x1x1xf32>
    %169 = vector.extract %168[0, 0, 0] : f32 from vector<1x1x1xf32>
    %cst_49 = arith.constant 7.680000e+02 : f32
    %170 = arith.divf %169, %cst_49 : f32
    %171 = vector.broadcast %162 : f32 to vector<24x32xf32>
    %172 = arith.subf %157, %171 : vector<24x32xf32>
    %cst_50 = arith.constant 9.99999974E-6 : f32
    %173 = arith.addf %170, %cst_50 : f32
    %174 = math.rsqrt %173 : f32
    %175 = vector.broadcast %174 : f32 to vector<24x32xf32>
    %176 = arith.mulf %172, %175 : vector<24x32xf32>
    %c0_51 = arith.constant 0 : index
    %c0_52 = arith.constant 0 : index
    %177 = vector.load %arg8[%c0_51, %c0_52] : memref<1x32xf32, #tpu.memory_space<vmem>>, vector<1x32xf32>
    %178 = vector.broadcast %177 : vector<1x32xf32> to vector<24x32xf32>
    %179 = arith.mulf %176, %178 : vector<24x32xf32>
    %c0_53 = arith.constant 0 : index
    %c0_54 = arith.constant 0 : index
    %180 = vector.load %arg9[%c0_53, %c0_54] : memref<1x32xf32, #tpu.memory_space<vmem>>, vector<1x32xf32>
    %181 = vector.broadcast %180 : vector<1x32xf32> to vector<24x32xf32>
    %182 = arith.addf %179, %181 : vector<24x32xf32>
    %183 = arith.negf %182 : vector<24x32xf32>
    %184 = math.exp %183 : vector<24x32xf32>
    %cst_55 = arith.constant 1.000000e+00 : f32
    %185 = vector.broadcast %cst_55 : f32 to vector<24x32xf32>
    %186 = arith.addf %185, %184 : vector<24x32xf32>
    %187 = arith.divf %185, %186 : vector<24x32xf32>
    %188 = arith.mulf %182, %187 : vector<24x32xf32>
    %c0_56 = arith.constant 0 : index
    %c0_57 = arith.constant 0 : index
    %189 = vector.load %arg10[%c0_56, %c0_57] : memref<32x32xbf16, #tpu.memory_space<vmem>>, vector<32x32xbf16>
    %190 = arith.truncf %188 : vector<24x32xf32> to vector<24x32xbf16>
    %cst_58 = arith.constant dense<0.000000e+00> : vector<24x32xf32>
    %191 = tpu.matmul %190, %189, %cst_58 {dimension_numbers = #tpu.dot_dimension_numbers<[1], [0], [0], [1], [0, 0, 1, 1], [], []>} : vector<24x32xbf16>, vector<32x32xbf16>, vector<24x32xf32> -> vector<24x32xf32>
    %c0_59 = arith.constant 0 : index
    %c0_60 = arith.constant 0 : index
    %192 = vector.load %arg11[%c0_59, %c0_60] : memref<1x32xf32, #tpu.memory_space<vmem>>, vector<1x32xf32>
    %193 = vector.broadcast %192 : vector<1x32xf32> to vector<24x32xf32>
    %194 = arith.addf %191, %193 : vector<24x32xf32>
    %195 = arith.addf %1, %194 : vector<24x32xf32>
    %c0_61 = arith.constant 0 : index
    %c0_62 = arith.constant 0 : index
    %c0_63 = arith.constant 0 : index
    %196 = vector.load %arg12[%c0_61, %c0_62, %c0_63] : memref<1x24x32xf32, #tpu.memory_space<vmem>>, vector<1x24x32xf32>
    %197 = vector.shape_cast %196 : vector<1x24x32xf32> to vector<24x32xf32>
    %198 = vector.shape_cast %195 : vector<24x32xf32> to vector<1x24x32xf32>
    tpu.vector_store %arg12[%c0_61, %c0_62, %c0_63], %198 {strides = array<i32>} : memref<1x24x32xf32, #tpu.memory_space<vmem>>, vector<1x24x32xf32>,
    return
  }
  func.func @transform_0(%arg0: i32) -> (i32, i32, i32) {
    %c0_i32 = arith.constant 0 : i32
    %c0_i32_0 = arith.constant 0 : i32
    %c0_i32_1 = arith.constant 0 : i32
    return %arg0, %c0_i32, %c0_i32_0 : i32, i32, i32
  }
  func.func @transform_1(%arg0: i32) -> (i32, i32) {
    %c0_i32 = arith.constant 0 : i32
    %c0_i32_0 = arith.constant 0 : i32
    %c0_i32_1 = arith.constant 0 : i32
    return %c0_i32, %c0_i32_0 : i32, i32
  }
  func.func @transform_2(%arg0: i32) -> (i32, i32) {
    %c0_i32 = arith.constant 0 : i32
    %c0_i32_0 = arith.constant 0 : i32
    %c0_i32_1 = arith.constant 0 : i32
    return %c0_i32, %c0_i32_0 : i32, i32
  }
  func.func @transform_3(%arg0: i32) -> (i32, i32) {
    %c0_i32 = arith.constant 0 : i32
    %c0_i32_0 = arith.constant 0 : i32
    %c0_i32_1 = arith.constant 0 : i32
    return %c0_i32, %c0_i32_0 : i32, i32
  }
  func.func @transform_4(%arg0: i32) -> (i32, i32) {
    %c0_i32 = arith.constant 0 : i32
    %c0_i32_0 = arith.constant 0 : i32
    %c0_i32_1 = arith.constant 0 : i32
    return %c0_i32, %c0_i32_0 : i32, i32
  }
  func.func @transform_5(%arg0: i32) -> (i32, i32) {
    %c0_i32 = arith.constant 0 : i32
    %c0_i32_0 = arith.constant 0 : i32
    %c0_i32_1 = arith.constant 0 : i32
    return %c0_i32, %c0_i32_0 : i32, i32
  }
  func.func @transform_6(%arg0: i32) -> (i32, i32) {
    %c0_i32 = arith.constant 0 : i32
    %c0_i32_0 = arith.constant 0 : i32
    %c0_i32_1 = arith.constant 0 : i32
    return %c0_i32, %c0_i32_0 : i32, i32
  }
  func.func @transform_7(%arg0: i32) -> (i32, i32) {
    %c0_i32 = arith.constant 0 : i32
    %c0_i32_0 = arith.constant 0 : i32
    %c0_i32_1 = arith.constant 0 : i32
    return %c0_i32, %c0_i32_0 : i32, i32
  }
  func.func @transform_8(%arg0: i32) -> (i32, i32) {
    %c0_i32 = arith.constant 0 : i32
    %c0_i32_0 = arith.constant 0 : i32
    %c0_i32_1 = arith.constant 0 : i32
    return %c0_i32, %c0_i32_0 : i32, i32
  }
  func.func @transform_9(%arg0: i32) -> (i32, i32) {
    %c0_i32 = arith.constant 0 : i32
    %c0_i32_0 = arith.constant 0 : i32
    %c0_i32_1 = arith.constant 0 : i32
    return %c0_i32, %c0_i32_0 : i32, i32
  }
  func.func @transform_10(%arg0: i32) -> (i32, i32) {
    %c0_i32 = arith.constant 0 : i32
    %c0_i32_0 = arith.constant 0 : i32
    %c0_i32_1 = arith.constant 0 : i32
    return %c0_i32, %c0_i32_0 : i32, i32
  }
  func.func @transform_11(%arg0: i32) -> (i32, i32, i32) {
    %c0_i32 = arith.constant 0 : i32
    %c0_i32_0 = arith.constant 0 : i32
    %c0_i32_1 = arith.constant 0 : i32
    return %arg0, %c0_i32, %c0_i32_0 : i32, i32, i32
  }
}

module attributes {stable_mosaic.version = 11 : i64} {
  func.func @_linear_kernel(%arg0: i32, %arg1: i32, %arg2: i32, %arg3: memref<16x32xbf16, #tpu.memory_space<vmem>>, %arg4: memref<32x128xbf16, #tpu.memory_space<vmem>>, %arg5: memref<1x128xf32, #tpu.memory_space<vmem>>, %arg6: memref<16x128xf32, #tpu.memory_space<vmem>>, %arg7: memref<16x128xf32, #tpu.memory_space<vmem>>) attributes {dimension_semantics = [#tpu.dimension_semantics<parallel>, #tpu.dimension_semantics<parallel>, #tpu.dimension_semantics<arbitrary>], iteration_bounds = array<i64: 1, 1, 1>, scalar_prefetch = 0 : i64, scratch_operands = 1 : i64, tpu.core_type = #tpu.core_type<tc>, window_params = [{transform_indices = @transform_0, window_bounds = array<i64: 16, 32>}, {transform_indices = @transform_1, window_bounds = array<i64: 32, 128>}, {transform_indices = @transform_2, window_bounds = array<i64: 1, 128>}, {transform_indices = @transform_3, window_bounds = array<i64: 16, 128>}]} {
    %c0_i32 = arith.constant 0 : i32
    %0 = arith.cmpi eq, %arg2, %c0_i32 : i32
    %1 = arith.extui %0 : i1 to i32
    %c0_i32_0 = arith.constant 0 : i32
    %2 = arith.cmpi ne, %1, %c0_i32_0 : i32
    scf.if %2 {
      %cst_10 = arith.constant 0.000000e+00 : f32
      %12 = vector.broadcast %cst_10 : f32 to vector<16x128xf32>
      %c0_11 = arith.constant 0 : index
      %c0_12 = arith.constant 0 : index
      %13 = vector.load %arg7[%c0_11, %c0_12] : memref<16x128xf32, #tpu.memory_space<vmem>>, vector<16x128xf32>
      tpu.vector_store %arg7[%c0_11, %c0_12], %12 {strides = array<i32>} : memref<16x128xf32, #tpu.memory_space<vmem>>, vector<16x128xf32>,
    } else {
    }
    %c0 = arith.constant 0 : index
    %c0_1 = arith.constant 0 : index
    %3 = vector.load %arg7[%c0, %c0_1] : memref<16x128xf32, #tpu.memory_space<vmem>>, vector<16x128xf32>
    %c0_2 = arith.constant 0 : index
    %c0_3 = arith.constant 0 : index
    %4 = vector.load %arg3[%c0_2, %c0_3] : memref<16x32xbf16, #tpu.memory_space<vmem>>, vector<16x32xbf16>
    %c0_4 = arith.constant 0 : index
    %c0_5 = arith.constant 0 : index
    %5 = vector.load %arg4[%c0_4, %c0_5] : memref<32x128xbf16, #tpu.memory_space<vmem>>, vector<32x128xbf16>
    %cst = arith.constant dense<0.000000e+00> : vector<16x128xf32>
    %6 = tpu.matmul %4, %5, %cst {dimension_numbers = #tpu.dot_dimension_numbers<[1], [0], [0], [1], [0, 0, 1, 1], [], []>} : vector<16x32xbf16>, vector<32x128xbf16>, vector<16x128xf32> -> vector<16x128xf32>
    %7 = arith.addf %3, %6 : vector<16x128xf32>
    %c0_6 = arith.constant 0 : index
    %c0_7 = arith.constant 0 : index
    %8 = vector.load %arg7[%c0_6, %c0_7] : memref<16x128xf32, #tpu.memory_space<vmem>>, vector<16x128xf32>
    tpu.vector_store %arg7[%c0_6, %c0_7], %7 {strides = array<i32>} : memref<16x128xf32, #tpu.memory_space<vmem>>, vector<16x128xf32>,
    %c0_i32_8 = arith.constant 0 : i32
    %9 = arith.cmpi eq, %arg2, %c0_i32_8 : i32
    %10 = arith.extui %9 : i1 to i32
    %c0_i32_9 = arith.constant 0 : i32
    %11 = arith.cmpi ne, %10, %c0_i32_9 : i32
    scf.if %11 {
      %c0_10 = arith.constant 0 : index
      %c0_11 = arith.constant 0 : index
      %12 = vector.load %arg7[%c0_10, %c0_11] : memref<16x128xf32, #tpu.memory_space<vmem>>, vector<16x128xf32>
      %c0_12 = arith.constant 0 : index
      %c0_13 = arith.constant 0 : index
      %13 = vector.load %arg5[%c0_12, %c0_13] : memref<1x128xf32, #tpu.memory_space<vmem>>, vector<1x128xf32>
      %14 = vector.broadcast %13 : vector<1x128xf32> to vector<16x128xf32>
      %15 = arith.addf %12, %14 : vector<16x128xf32>
      %c0_14 = arith.constant 0 : index
      %c0_15 = arith.constant 0 : index
      %16 = vector.load %arg6[%c0_14, %c0_15] : memref<16x128xf32, #tpu.memory_space<vmem>>, vector<16x128xf32>
      tpu.vector_store %arg6[%c0_14, %c0_15], %15 {strides = array<i32>} : memref<16x128xf32, #tpu.memory_space<vmem>>, vector<16x128xf32>,
    } else {
    }
    return
  }
  func.func @transform_0(%arg0: i32, %arg1: i32, %arg2: i32) -> (i32, i32) {
    %c0_i32 = arith.constant 0 : i32
    return %arg0, %arg2 : i32, i32
  }
  func.func @transform_1(%arg0: i32, %arg1: i32, %arg2: i32) -> (i32, i32) {
    %c0_i32 = arith.constant 0 : i32
    return %arg2, %arg1 : i32, i32
  }
  func.func @transform_2(%arg0: i32, %arg1: i32, %arg2: i32) -> (i32, i32) {
    %c0_i32 = arith.constant 0 : i32
    %c0_i32_0 = arith.constant 0 : i32
    return %c0_i32, %arg1 : i32, i32
  }
  func.func @transform_3(%arg0: i32, %arg1: i32, %arg2: i32) -> (i32, i32) {
    %c0_i32 = arith.constant 0 : i32
    return %arg0, %arg1 : i32, i32
  }
}

</mosaic_0001>

<bundles_post_ra>
// kernel: style_diffuser_run.18
= control target key start
LH: loop header
LB: loop body
LE: loop exit
PB: predicated region body
PF: predicated region fallthrough
CT: control target
= control target key end

     0   :  { %vm19_vm0 = vcmask 261120   ;;  %v351_v1 = vmov 0.0   ;;  %vm352_vm1 = vmmov 0   ;;  %vm170_vm2 = vcmask 1040384   ;;  %s440_s1 = inlined_call_operand.vmem [shape: bf16[257,32], index: 1, kind: input, shape index: {}]   ;;  %s441_s0 = inlined_call_operand.vmem [shape: bf16[8,257], index: 0, kind: input, shape index: {}]   ;;  %s442_s2 = inlined_call_operand.vmem [shape: f32[1,32], index: 2, kind: input, shape index: {}]   ;;  %s443_s3 = inlined_call_operand.vmem [shape: f32[8,32], index: 3, kind: output, shape index: {}]  }
   0x1   :  { %v331_v0 = vld [vmem:[%s440_s1 + $0x40] sm:$0xff]   ;;  %20 = vst.msk [vmem:[#allocation2] sm:$0xff] %vm19_vm0, %v351_v1  ;;  %322 = vmatprep.subr.bf16.mxu1 %v351_v1  ;;  %v333_v3 = vld [vmem:[%s440_s1 + $0x48] sm:$0xff]   ;;  %324 = vmatprep.mubr.msk.bf16.mxu1 %vm352_vm1, %v351_v1  ;;  %v335_v5 = vld [vmem:[%s440_s1 + $0x50] sm:$0xff]   ;;  %v353_v12 = vmov 0   ;;  %vm166_vm3 = vcmask 7168  }
   0x2   :  { %v332_v2 = vld [vmem:[%s440_s1] sm:$0xff]   ;;  %298 = vmatprep.subr.bf16.mxu0 %v331_v0  ;;  %v334_v4 = vld [vmem:[%s440_s1 + $0x8] sm:$0xff]   ;;  %v336_v6 = vld [vmem:[%s440_s1 + $0x10] sm:$0xff]   ;;  %v172_v13 = vsel %vm170_vm2, 65535, %v353_v12 }
   0x3   :  { %299 = vmatpush3.bf16.msra.mxu0 %v332_v2  ;;  %v337_v7 = vld [vmem:[%s440_s1 + $0x58] sm:$0xff]   ;;  %v339_v9 = vld [vmem:[%s440_s1 + $0x60] sm:$0xff]   ;;  %v341_v11 = vld [vmem:[%s440_s1 + $0x68] sm:$0xff]  }
   0x4   :  { %300 = vmatprep.subr.bf16.mxu0 %v333_v3  ;;  %v338_v8 = vld [vmem:[%s440_s1 + $0x18] sm:$0xff]   ;;  %v340_v10 = vld [vmem:[%s440_s1 + $0x20] sm:$0xff]   ;;  %v342_v18 = vld [vmem:[%s440_s1 + $0x28] sm:$0xff]  }
   0x5   :  { %v347_v14 = vld [vmem:[%s440_s1 + $0x80] ss:$0 sps:$4 sm:$0x11]   ;;  %v350_v19 = vld [vmem:[%s441_s0 + $0x8] ss:$0 sps:$4 sm:$0xff]   ;;  %v343_v20 = vld [vmem:[%s440_s1 + $0x70] sm:$0xff]  }
   0x6   :  { %v22_v15 = vld [vmem:[%s441_s0] sm:$0xff]  ;;  %v174_v17 = vand.u32 %v347_v14, %v172_v13  ;;  %v344_v21 = vld [vmem:[%s440_s1 + $0x30] sm:$0xff]   ;;  %v345_v22 = vld [vmem:[%s440_s1 + $0x78] sm:$0xff]  }
   0x7   :  { %301 = vmatpush3.bf16.msra.mxu0 %v334_v4  ;;  %v277_v16 = vcombine.high %v22_v15, %v22_v15  ;;  %v346_v23 = vld [vmem:[%s440_s1 + $0x38] sm:$0xff]   ;;  %v276_v24 = vcombine.low %v22_v15, %v22_v15  ;;  %v297_v37 = vld [vmem:[%s442_s2] ss:$0 sm:$0xff] }
   0x8   :  { %302 = vmatprep.subr.bf16.mxu0 %v335_v5  ;;  %323 = vmatpush3.bf16.msra.mxu1 %v174_v17  ;;  %v21_v33 = vld [vmem:[#allocation2] sm:$0xff] }
   0x9   :  { %208 = vmatprep.mubr.bf16.mxu0 %v277_v16 }
   0xb   :  { %303 = vmatpush3.bf16.msra.mxu0 %v336_v6  ;;  %325 = vmatmul.mubr.msk.bf16.vlgmr.msra.gmra.mrb[0].mxu1 %vm166_vm3, %v350_v19 }
   0xc   :  { %304 = vmatprep.subr.bf16.mxu0 %v337_v7 }
   0xf   :  { %305 = vmatpush3.bf16.msra.mxu0 %v338_v8 }
  0x10   :  { %306 = vmatprep.subr.bf16.mxu0 %v339_v9 }
  0x13   :  { %307 = vmatpush3.bf16.msra.mxu0 %v340_v10 }
  0x14   :  { %308 = vmatprep.subr.bf16.mxu0 %v341_v11 }
  0x17   :  { %309 = vmatpush3.bf16.msra.mxu0 %v342_v18 }
  0x18   :  { %310 = vmatprep.subr.bf16.mxu0 %v343_v20 }
  0x1b   :  { %311 = vmatpush3.bf16.msra.mxu0 %v344_v21 }
  0x1c   :  { %312 = vmatprep.subr.bf16.mxu0 %v345_v22 }
  0x1f   :  { %313 = vmatpush3.bf16.msra.mxu0 %v346_v23 }
  0x22   :  { %209 = vmatmul.mubr.bf16.vlgmr.msra.gmra.mrb[0].mxu0 %v276_v24 }
  0xde   :  { %v250_v25 = vpop.f32.mrb[0].mxu1 }
  0xdf   :  { %v326_v26 = vpop.f32.mrb[1].mxu1 }
  0xe0   :  { %v253_v27 = vpop.f32.mrb[2].mxu1 }
  0xe1   :  { %v327_v28 = vpop.f32.mrb[3].mxu1 }
  0xf5   :  { %v314_v29 = vpop.f32.mrb[0].mxu0 }
  0xf6   :  { %v315_v30 = vpop.f32.mrb[1].mxu0 }
  0xf7   :  { %v316_v31 = vadd.f32 %v315_v30, %v314_v29  ;;  %v317_v32 = vpop.f32.mrb[2].mxu0 }
  0xf8   :  { %v318_v34 = vpop.f32.mrb[3].mxu0 }
  0xf9   :  { %v251_v35 = vadd.f32 %v316_v31, %v250_v25 }
  0xfb   :  { %v256_v36 = vadd.f32 %v251_v35, %v21_v33 }
  0xfd   :  { %258 = vst.msk [vmem:[#allocation2] sm:$0xff] %vm19_vm0, %v256_v36 }
 0x104   :  { %v262_v38 = vld [vmem:[#allocation2] sm:$0xff] }
 0x105   :  { %v270_v39 = vadd.f32 %v297_v37, %v262_v38 }
 0x107   :  { %271 = vst.msk [vmem:[%s443_s3] sm:$0xff] %vm19_vm0, %v270_v39 }

// kernel: style_diffuser_run.19
= control target key start
LH: loop header
LB: loop body
LE: loop exit
PB: predicated region body
PF: predicated region fallthrough
CT: control target
= control target key end

     0   :  { %s524_s15 = smov 0   ;;  %s566_s0 = inlined_call_operand.vmem [shape: f32[2,8,16], index: 0, kind: input, shape index: {}]   ;;  %s567_s1 = inlined_call_operand.vmem [shape: bf16[3,16,32], index: 1, kind: input, shape index: {}]   ;;  %s568_s2 = inlined_call_operand.vmem [shape: f32[1,32], index: 2, kind: input, shape index: {}]   ;;  %s569_s3 = inlined_call_operand.vmem [shape: f32[8,32], index: 3, kind: input, shape index: {}]   ;;  %s570_s4 = inlined_call_operand.vmem [shape: f32[2,8,32], index: 4, kind: output, shape index: {}]  }
   0x1 LB: > { %s432_s16 = sadd.s32 4294967295, %s495_s15   ;;  %p436_p0 = scmp.ge.s32.totalorder %s495_s15, 1  ;;  %s495_s15 = sphi %s524_s15, %s14_s15  }
   0x2   : > { %p161_p1 = scmp.lt.s32.totalorder %s495_s15, 3 }
   0x4   : > { %p162_p2 = pnand %p436_p0, %p161_p1 }
   0x5   : > { %v486_v0 = vld [vmem:[%s567_s1 + $0x8] sm:$0xff] (!%p162_p2)   ;;  %v195_v1 = vlaneseq (!%p162_p2)  ;;  %v497_v2 = vmov (!%p162_p2), 0.0   ;;  %p185_p3 = scmp.lt.s32.totalorder (!%p162_p2), %s432_s16, 1  ;;  %v487_v3 = vld [vmem:[%s567_s1] sm:$0xff] (!%p162_p2)   ;;  %vm498_vm0 = vmmov (!%p162_p2), 0   ;;  %vm220_vm1 = vcmask (!%p162_p2), 130048  }
   0x6   : > { %165 = sbr.rel (%p162_p2) target bundleno = 246 (0xf6), region = 36  ;;  %458 = vmatprep.subr.bf16.mxu0 (!%p162_p2), %v497_v2  ;;  %464 = vmatprep.subr.bf16.mxu1 (!%p162_p2), %v497_v2  ;;  %v488_v6 = vld [vmem:[%s567_s1 + $0x10] sm:$0xff] (!%p162_p2)   ;;  %v449_v24 = vld [vmem:[%s568_s2] ss:$0 sm:$0xff] (!%p162_p2)  ;;  %vm377_vm4 = vcmask (!%p162_p2), 261120  }
   0x7   : > { %459 = vmatpush3.bf16.msra.mxu0 (!%p162_p2), %v486_v0  ;;  %460 = vmatprep.mubr.msk.bf16.mxu0 (!%p162_p2), %vm498_vm0, %v497_v2  ;;  %v196_v4 = vshrl.u32 (!%p162_p2), %v195_v1, 7  ;;  %v375_v27 = vld [vmem:[%s569_s3] sm:$0xff] (!%p162_p2) }
   0x8   : > { %470 = vmatprep.subr.bf16.mxu0 (!%p162_p2), %v497_v2  ;;  %465 = vmatpush3.bf16.msra.mxu1 (!%p162_p2), %v487_v3 }
   0x9   : > { %466 = vmatprep.mubr.msk.bf16.mxu1 (!%p162_p2), %vm498_vm0, %v497_v2  ;;  %vm197_vm2 = vcmp.ge.s32.totalorder (!%p162_p2), %v196_v4, 1  ;;  %vm202_vm3 = vcmp.lt.s32.totalorder (!%p162_p2), %v196_v4, 7 }
   0xd   : > { %s572_s16 = smov (!%p185_p3, %s432_s16), 1 }
   0xe   : > { %s437_s21 = sshll.u32 %s572_s16, 3 }
   0xf   : > { %s188_s24 = scalar_lea.vmem %s566_s0, %s437_s21  ;;  %s192_s7 = scalar_lea.vmem %s570_s4, %s437_s21 }
  0x10   : > { %v194_v5 = vld [vmem:[%s188_s24] sm:$0xff] }
  0x11   : > { %v203_v7 = vrot.slane %v194_v5, 1  ;;  %v213_v8 = vpack.c.bf16 %v194_v5, %v194_v5  ;;  %v198_v9 = vrot.slane %v194_v5, 7 }
  0x13   : > { %461 = vmatmul.mubr.msk.bf16.vlgmr.msra.gmra.mrb[0].mxu0 %vm220_vm1, %v213_v8  ;;  %v201_v10 = vsel %vm197_vm2, %v198_v9, 0.0  ;;  %v206_v12 = vsel %vm202_vm3, %v203_v7, 0.0 }
  0x14   : > { %471 = vmatpush3.bf16.msra.mxu0 %v488_v6  ;;  %v209_v11 = vpack.c.bf16 %v201_v10, %v201_v10  ;;  %472 = vmatprep.mubr.msk.bf16.mxu0 %vm498_vm0, %v497_v2  ;;  %v316_v13 = vpack.c.bf16 %v206_v12, %v206_v12 }
  0x16   : > { %467 = vmatmul.mubr.msk.bf16.vlgmr.msra.gmra.mrb[0].mxu1 %vm220_vm1, %v209_v11 }
  0x1b   : > { %473 = vmatmul.mubr.msk.bf16.vlgmr.msra.gmra.mrb[4].mxu0 %vm220_vm1, %v316_v13 }
  0xe6   : > { %v258_v14 = vpop.f32.mrb[0].mxu0 }
  0xe7   : > { %v462_v15 = vpop.f32.mrb[1].mxu0 }
  0xe8   : > { %v261_v16 = vpop.f32.mrb[2].mxu0 }
  0xe9   : > { %v463_v17 = vpop.f32.mrb[3].mxu0  ;;  %v307_v18 = vpop.f32.mrb[0].mxu1 }
  0xea   : > { %v308_v19 = vadd.f32 %v307_v18, %v258_v14  ;;  %v468_v20 = vpop.f32.mrb[1].mxu1 }
  0xeb   : > { %v310_v21 = vpop.f32.mrb[2].mxu1 }
  0xec   : > { %v469_v22 = vpop.f32.mrb[3].mxu1 }
  0xee   : > { %v360_v23 = vpop.f32.mrb[4].mxu0 }
  0xef   : > { %v366_v25 = vadd.f32 %v360_v23, %v308_v19  ;;  %v474_v26 = vpop.f32.mrb[5].mxu0 }
  0xf0   : > { %v363_v28 = vpop.f32.mrb[6].mxu0 }
  0xf1   : > { %v374_v29 = vadd.f32 %v449_v24, %v366_v25  ;;  %v475_v30 = vpop.f32.mrb[7].mxu0 }
  0xf3   : > { %v376_v31 = vadd.f32 %v375_v27, %v374_v29 }
  0xf5   : > { %378 = vst.msk [vmem:[%s192_s7] sm:$0xff] %vm377_vm4, %v376_v31 }
  0xf6 PF: > { %s14_s15 = sadd.s32 1, %s495_s15  }
  0xf7   : > { %p11_p4 = scmp.ge.s32.totalorder %s14_s15, 4  }
  0xf9   :  { %13 = sbr.rel (!%p11_p4) target bundleno = 1 (0x1), region = 68 }

// kernel: style_diffuser_run.20
= control target key start
LH: loop header
LB: loop body
LE: loop exit
PB: predicated region body
PF: predicated region fallthrough
CT: control target
= control target key end

     0   :  { %s529_s12 = smov 0   ;;  %s583_s0 = inlined_call_operand.vmem [shape: f32[2,8,18], index: 0, kind: input, shape index: {}]   ;;  %s584_s1 = inlined_call_operand.vmem [shape: bf16[3,18,32], index: 1, kind: input, shape index: {}]   ;;  %s585_s2 = inlined_call_operand.vmem [shape: f32[1,32], index: 2, kind: input, shape index: {}]   ;;  %s586_s3 = inlined_call_operand.vmem [shape: f32[2,8,32], index: 3, kind: output, shape index: {}]  }
   0x1 LB: > { %s425_s13 = sadd.s32 4294967295, %s505_s12   ;;  %p429_p0 = scmp.ge.s32.totalorder %s505_s12, 1  ;;  %s505_s12 = sphi %s529_s12, %s13_s12  }
   0x2   : > { %p136_p1 = scmp.lt.s32.totalorder %s505_s12, 3 }
   0x4   : > { %p137_p2 = pnand %p429_p0, %p136_p1 }
   0x5   : > { %v493_v0 = vld [vmem:[%s584_s1 + $0xc] sm:$0xff] (!%p137_p2)   ;;  %v507_v1 = vmov (!%p137_p2), 0.0   ;;  %v494_v2 = vld [vmem:[%s584_s1] sm:$0xff] (!%p137_p2)   ;;  %vm202_vm0 = vcmask (!%p137_p2), 1040384   ;;  %v168_v3 = vlaneseq (!%p137_p2)  ;;  %p158_p3 = scmp.lt.s32.totalorder (!%p137_p2), %s425_s13, 1  ;;  %vm508_vm1 = vmmov (!%p137_p2), 0  }
   0x6   : > { %140 = sbr.rel (%p137_p2) target bundleno = 244 (0xf4), region = 32  ;;  %459 = vmatprep.subr.bf16.mxu0 (!%p137_p2), %v507_v1  ;;  %467 = vmatprep.subr.bf16.mxu1 (!%p137_p2), %v507_v1  ;;  %v495_v4 = vld [vmem:[%s584_s1 + $0x14] ss:$0 sps:$4 sm:$0x11] (!%p137_p2)   ;;  %vm198_vm2 = vcmask (!%p137_p2), 146432   ;;  %v497_v10 = vld [vmem:[%s584_s1 + $0x18] sm:$0xff] (!%p137_p2)  }
   0x7   : > { %460 = vmatpush3.bf16.msra.mxu0 (!%p137_p2), %v493_v0  ;;  %468 = vmatpush3.bf16.msra.mxu1 (!%p137_p2), %v494_v2  ;;  %v496_v5 = vld [vmem:[%s584_s1 + $0x8] ss:$0 sps:$4 sm:$0x11] (!%p137_p2)   ;;  %v204_v6 = vsel (!%p137_p2), %vm202_vm0, %v495_v4, 0  ;;  %v169_v8 = vshrl.u32 (!%p137_p2), %v168_v3, 7  ;;  %vm370_vm5 = vcmask (!%p137_p2), 261120  }
   0x8   : > { %461 = vmatprep.subr.bf16.mxu0 (!%p137_p2), %v507_v1  ;;  %469 = vmatprep.subr.bf16.mxu1 (!%p137_p2), %v507_v1  ;;  %v259_v7 = vsel (!%p137_p2), %vm202_vm0, %v496_v5, 0  ;;  %v498_v14 = vld [vmem:[%s584_s1 + $0x20] ss:$0 sps:$4 sm:$0x11] (!%p137_p2)  }
   0x9   : > { %463 = vmatprep.mubr.msk.bf16.mxu0 (!%p137_p2), %vm508_vm1, %v507_v1  ;;  %471 = vmatprep.mubr.msk.bf16.mxu1 (!%p137_p2), %vm508_vm1, %v507_v1  ;;  %vm170_vm3 = vcmp.ge.s32.totalorder (!%p137_p2), %v169_v8, 1  ;;  %vm175_vm4 = vcmp.lt.s32.totalorder (!%p137_p2), %v169_v8, 7  ;;  %v319_v18 = vsel (!%p137_p2), %vm202_vm0, %v498_v14, 0  ;;  %v447_v30 = vld [vmem:[%s585_s2] ss:$0 sm:$0xff] (!%p137_p2) }
   0xb   : > { %462 = vmatpush3.bf16.msra.mxu0 (!%p137_p2), %v204_v6  ;;  %470 = vmatpush3.bf16.msra.mxu1 (!%p137_p2), %v259_v7 }
   0xc   : > { %475 = vmatprep.subr.bf16.mxu0 (!%p137_p2), %v507_v1 }
   0xd   : > { %s588_s13 = smov (!%p158_p3, %s425_s13), 1 }
   0xe   : > { %s430_s22 = sshll.u32 %s588_s13, 3 }
   0xf   : > { %s161_s25 = scalar_lea.vmem %s583_s0, %s430_s22  ;;  %s165_s7 = scalar_lea.vmem %s586_s3, %s430_s22 }
  0x10   : > { %v167_v9 = vld [vmem:[%s161_s25] sm:$0xff] }
  0x11   : > { %v176_v11 = vrot.slane %v167_v9, 1  ;;  %v188_v12 = vpack.c.bf16 %v167_v9, %v167_v9  ;;  %v171_v13 = vrot.slane %v167_v9, 7 }
  0x13   : > { %464 = vmatmul.mubr.msk.bf16.vlgmr.msra.gmra.mrb[0].mxu0 %vm198_vm2, %v188_v12  ;;  %v174_v15 = vsel %vm170_vm3, %v171_v13, 0.0  ;;  %v179_v17 = vsel %vm175_vm4, %v176_v11, 0.0 }
  0x14   : > { %476 = vmatpush3.bf16.msra.mxu0 %v497_v10  ;;  %v183_v16 = vpack.c.bf16 %v174_v15, %v174_v15  ;;  %479 = vmatprep.mubr.msk.bf16.mxu0 %vm508_vm1, %v507_v1  ;;  %v305_v19 = vpack.c.bf16 %v179_v17, %v179_v17 }
  0x15   : > { %477 = vmatprep.subr.bf16.mxu0 %v507_v1 }
  0x16   : > { %472 = vmatmul.mubr.msk.bf16.vlgmr.msra.gmra.mrb[0].mxu1 %vm198_vm2, %v183_v16 }
  0x18   : > { %478 = vmatpush3.bf16.msra.mxu0 %v319_v18 }
  0x1b   : > { %480 = vmatmul.mubr.msk.bf16.vlgmr.msra.gmra.mrb[4].mxu0 %vm198_vm2, %v305_v19 }
  0xe6   : > { %v240_v20 = vpop.f32.mrb[0].mxu0 }
  0xe7   : > { %v465_v21 = vpop.f32.mrb[1].mxu0 }
  0xe8   : > { %v243_v22 = vpop.f32.mrb[2].mxu0 }
  0xe9   : > { %v295_v23 = vpop.f32.mrb[0].mxu1  ;;  %v466_v24 = vpop.f32.mrb[3].mxu0 }
  0xea   : > { %v296_v25 = vadd.f32 %v295_v23, %v240_v20  ;;  %v473_v26 = vpop.f32.mrb[1].mxu1 }
  0xeb   : > { %v298_v27 = vpop.f32.mrb[2].mxu1 }
  0xec   : > { %v474_v28 = vpop.f32.mrb[3].mxu1 }
  0xee   : > { %v355_v29 = vpop.f32.mrb[4].mxu0 }
  0xef   : > { %v361_v31 = vadd.f32 %v355_v29, %v296_v25  ;;  %v481_v32 = vpop.f32.mrb[5].mxu0 }
  0xf0   : > { %v358_v33 = vpop.f32.mrb[6].mxu0 }
  0xf1   : > { %v369_v34 = vadd.f32 %v447_v30, %v361_v31  ;;  %v482_v35 = vpop.f32.mrb[7].mxu0 }
  0xf3   : > { %371 = vst.msk [vmem:[%s165_s7] sm:$0xff] %vm370_vm5, %v369_v34 }
  0xf4 PF: > { %s13_s12 = sadd.s32 1, %s505_s12  }
  0xf5   : > { %p10_p4 = scmp.ge.s32.totalorder %s13_s12, 4  }
  0xf7   :  { %12 = sbr.rel (!%p10_p4) target bundleno = 1 (0x1), region = 64 }

// kernel: style_diffuser_run.15
= control target key start
LH: loop header
LB: loop body
LE: loop exit
PB: predicated region body
PF: predicated region fallthrough
CT: control target
= control target key end

     0   :  { %vm47_vm0 = vcmask 1040384   ;;  %v138_v0 = vmov 0.0   ;;  %vm139_vm1 = vmmov 0   ;;  %vm19_vm2 = vcmask 254976   ;;  %s182_s1 = inlined_call_operand.vmem [shape: bf16[33,32], index: 1, kind: input, shape index: {}]   ;;  %s183_s0 = inlined_call_operand.vmem [shape: bf16[2,33], index: 0, kind: input, shape index: {}]   ;;  %s184_s2 = inlined_call_operand.vmem [shape: f32[1,32], index: 2, kind: input, shape index: {}]   ;;  %s185_s3 = inlined_call_operand.vmem [shape: f32[2,32], index: 3, kind: output, shape index: {}]  }
   0x1   :  { %122 = vmatprep.subr.bf16.mxu0 %v138_v0  ;;  %v135_v1 = vld [vmem:[%s182_s1] sm:$0xff]   ;;  %128 = vmatprep.mubr.msk.bf16.mxu0 %vm139_vm1, %v138_v0  ;;  %v136_v2 = vld [vmem:[%s182_s1 + $0x8] sm:$0xff]   ;;  %v137_v3 = vld [vmem:[%s182_s1 + $0x10] ss:$0 sps:$4 sm:$0x11]   ;;  %v140_v4 = vmov 0  }
   0x2   :  { %123 = vmatpush3.bf16.msra.mxu0 %v135_v1  ;;  %v49_v5 = vsel %vm47_vm0, 65535, %v140_v4  ;;  %20 = vst.msk [vmem:[#allocation2] sm:$0x3] %vm19_vm2, %v138_v0  ;;  %v22_v7 = vld [vmem:[%s183_s0] sm:$0x1]  ;;  %vm43_vm3 = vcmask 269312  }
   0x3   :  { %124 = vmatprep.subr.bf16.mxu0 %v138_v0  ;;  %v51_v6 = vand.u32 %v137_v3, %v49_v5  ;;  %v117_v14 = vld [vmem:[%s184_s2] ss:$0 sm:$0xff] }
   0x6   :  { %125 = vmatpush3.bf16.msra.mxu0 %v136_v2 }
   0x7   :  { %126 = vmatprep.subr.bf16.mxu0 %v138_v0 }
   0x9   :  { %v21_v8 = vld [vmem:[#allocation2] sm:$0x3] }
   0xa   :  { %127 = vmatpush3.bf16.msra.mxu0 %v51_v6 }
   0xd   :  { %129 = vmatmul.mubr.msk.bf16.vlgmr.msra.gmra.mrb[0].mxu0 %vm43_vm3, %v22_v7 }
  0xe0   :  { %v87_v9 = vpop.f32.mrb[0].mxu0 }
  0xe1   :  { %v93_v10 = vadd.f32 %v87_v9, %v21_v8  ;;  %v130_v11 = vpop.f32.mrb[1].mxu0 }
  0xe2   :  { %v90_v12 = vpop.f32.mrb[2].mxu0 }
  0xe3   :  { %95 = vst.msk [vmem:[#allocation2] sm:$0x3] %vm19_vm2, %v93_v10  ;;  %v131_v13 = vpop.f32.mrb[3].mxu0 }
  0xea   :  { %v99_v15 = vld [vmem:[#allocation2] sm:$0x3] }
  0xeb   :  { %v107_v16 = vadd.f32 %v117_v14, %v99_v15 }
  0xed   :  { %108 = vst.msk [vmem:[%s185_s3] sm:$0x3] %vm19_vm2, %v107_v16 }

// kernel: style_diffuser_run.16
= control target key start
LH: loop header
LB: loop body
LE: loop exit
PB: predicated region body
PF: predicated region fallthrough
CT: control target
= control target key end

     0   :  { %vm19_vm0 = vcmask 254976   ;;  %v122_v0 = vmov 0.0   ;;  %vm123_vm1 = vmmov 0   ;;  %vm39_vm2 = vcmask 261120   ;;  %s162_s1 = inlined_call_operand.vmem [shape: bf16[32,32], index: 1, kind: input, shape index: {}]   ;;  %s163_s0 = inlined_call_operand.vmem [shape: bf16[2,32], index: 0, kind: input, shape index: {}]   ;;  %s164_s2 = inlined_call_operand.vmem [shape: f32[1,32], index: 2, kind: input, shape index: {}]   ;;  %s165_s3 = inlined_call_operand.vmem [shape: f32[2,32], index: 3, kind: output, shape index: {}]  }
   0x1   :  { %20 = vst.msk [vmem:[#allocation2] sm:$0x3] %vm19_vm0, %v122_v0  ;;  %110 = vmatprep.subr.bf16.mxu0 %v122_v0  ;;  %v120_v1 = vld [vmem:[%s162_s1] sm:$0xff]   ;;  %114 = vmatprep.mubr.msk.bf16.mxu0 %vm123_vm1, %v122_v0  ;;  %v121_v2 = vld [vmem:[%s162_s1 + $0x8] sm:$0xff]  }
   0x2   :  { %111 = vmatpush3.bf16.msra.mxu0 %v120_v1  ;;  %v22_v3 = vld [vmem:[%s163_s0] sm:$0x1] }
   0x3   :  { %112 = vmatprep.subr.bf16.mxu0 %v122_v0  ;;  %v106_v10 = vld [vmem:[%s164_s2] ss:$0 sm:$0xff] }
   0x6   :  { %113 = vmatpush3.bf16.msra.mxu0 %v121_v2 }
   0x8   :  { %v21_v4 = vld [vmem:[#allocation2] sm:$0x3] }
   0x9   :  { %115 = vmatmul.mubr.msk.bf16.vlgmr.msra.gmra.mrb[0].mxu0 %vm39_vm2, %v22_v3 }
  0xdc   :  { %v77_v5 = vpop.f32.mrb[0].mxu0 }
  0xdd   :  { %v83_v6 = vadd.f32 %v77_v5, %v21_v4  ;;  %v116_v7 = vpop.f32.mrb[1].mxu0 }
  0xde   :  { %v80_v8 = vpop.f32.mrb[2].mxu0 }
  0xdf   :  { %85 = vst.msk [vmem:[#allocation2] sm:$0x3] %vm19_vm0, %v83_v6  ;;  %v117_v9 = vpop.f32.mrb[3].mxu0 }
  0xe6   :  { %v89_v11 = vld [vmem:[#allocation2] sm:$0x3] }
  0xe7   :  { %v97_v12 = vadd.f32 %v106_v10, %v89_v11 }
  0xe9   :  { %98 = vst.msk [vmem:[%s165_s3] sm:$0x3] %vm19_vm0, %v97_v12 }

// kernel: style_diffuser_run.21
= control target key start
LH: loop header
LB: loop body
LE: loop exit
PB: predicated region body
PF: predicated region fallthrough
CT: control target
= control target key end

     0   :  { %s910_s27 = smov 0   ;;  %s912_s28 = smov 0   ;;  %s1010_s0 = inlined_call_operand.vmem [shape: f32[2,24,32], index: 0, kind: input, shape index: {}]   ;;  %s1011_s1 = inlined_call_operand.vmem [shape: f32[2,1,32], index: 1, kind: input, shape index: {}]   ;;  %s1012_s2 = inlined_call_operand.vmem [shape: f32[1,32], index: 2, kind: input, shape index: {}]   ;;  %s1013_s3 = inlined_call_operand.vmem [shape: f32[1,32], index: 3, kind: input, shape index: {}]   ;;  %s1014_s4 = inlined_call_operand.vmem [shape: bf16[32,64], index: 4, kind: input, shape index: {}]   ;;  %s1015_s5 = inlined_call_operand.vmem [shape: f32[1,64], index: 5, kind: input, shape index: {}]   ;;  %s1016_s6 = inlined_call_operand.vmem [shape: bf16[64,32], index: 6, kind: input, shape index: {}]   ;;  %s1017_s7 = inlined_call_operand.vmem [shape: f32[1,32], index: 7, kind: input, shape index: {}]   ;;  %s1018_s8 = inlined_call_operand.vmem [shape: f32[2,24,32], index: 8, kind: output, shape index: {}]  }
   0x1   :  { %s914_s29 = smov 0  }
   0x2 LB: > { %s30_s30 = sadd.s32 1, %s859_s28  ;;  %p739_p0 = scmp.ge.s32.totalorder %s863_s29, 1  ;;  %s863_s29 = sphi %s914_s29, %s18_s29   ;;  %s859_s28 = sphi %s912_s28, %s1020_s28   ;;  %s855_s27 = sphi %s910_s27, %s1019_s27  }
   0x3   : > { %p32_p1 = scmp.ge.s32.totalorder %s30_s30, 2  ;;  %p291_p2 = scmp.lt.s32.totalorder %s863_s29, 3 }
   0x5   : > { %s1022_s30 = smov (%p32_p1, %s30_s30), 0  ;;  %p292_p3 = pnand %p739_p0, %p291_p2 }
   0x6   : > { %p337_p4 = scmp.lt.s32.totalorder (!%p292_p3), %s855_s27, 1  ;;  %vm375_vm0 = vcmask (!%p292_p3), 261120   ;;  %v817_v25 = vld [vmem:[%s1014_s4] sm:$0xff] (!%p292_p3)   ;;  %v818_v26 = vld [vmem:[%s1014_s4 + $0x8] sm:$0xff] (!%p292_p3)   ;;  %v821_v54 = vld [vmem:[%s1016_s6 + $0x10] sm:$0xff] (!%p292_p3)   ;;  %vm575_vm1 = vcmask (!%p292_p3), 523264  }
   0x7   : > { %295 = sbr.rel (%p292_p3) target bundleno = 812 (0x32c), region = 52  ;;  %772 = vmatprep.subr.bf16.mxu0 (!%p292_p3), %v817_v25  ;;  %v743_v38 = vld [vmem:[%s1012_s2] ss:$0 sm:$0xff] (!%p292_p3)  ;;  %v820_v53 = vld [vmem:[%s1016_s6 + $0x8] sm:$0xff] (!%p292_p3)   ;;  %v822_v55 = vld [vmem:[%s1016_s6 + $0x18] sm:$0xff] (!%p292_p3)  }
   0x8   : > { %773 = vmatpush3.bf16.msra.mxu0 (!%p292_p3), %v817_v25  ;;  %v744_v44 = vld [vmem:[%s1013_s3] ss:$0 sm:$0xff] (!%p292_p3) }
   0x9   : > { %774 = vmatprep.subr.bf16.mxu0 (!%p292_p3), %v818_v26  ;;  %v819_v52 = vld [vmem:[%s1016_s6] sm:$0xff] (!%p292_p3)  }
   0xa   : > { %780 = vmatprep.subr.bf16.mxu1 (!%p292_p3), %v819_v52  ;;  %v745_v56 = vld [vmem:[%s1015_s5] ss:$0 sm:$0xff] (!%p292_p3) }
   0xb   : > { %781 = vmatpush3.bf16.msra.mxu1 (!%p292_p3), %v819_v52 }
   0xc   : > { %775 = vmatpush3.bf16.msra.mxu0 (!%p292_p3), %v818_v26  ;;  %782 = vmatprep.subr.bf16.mxu1 (!%p292_p3), %v820_v53 }
   0xe   : > { %s1024_s27 = smov (!%p337_p4, %s855_s27), 1 }
   0xf   : > { %s792_s9 = smul.u32 24, %s1024_s27  ;;  %s348_s12 = scalar_lea.vmem %s1011_s1, %s1024_s27  ;;  %783 = vmatpush3.bf16.msra.mxu1 %v820_v53 }
  0x10   : > { %v742_v0 = vld [vmem:[%s348_s12] ss:$0 sm:$0xff]  ;;  %784 = vmatprep.subr.bf16.mxu1 %v821_v54 }
  0x11   : > { %s344_s15 = scalar_lea.vmem %s1010_s0, %s792_s9  ;;  %s357_s21 = scalar_lea.vmem %s1018_s8, %s792_s9 }
  0x12   : > { %v360_v1 = vld [vmem:[%s344_s15] sm:$0xff]  ;;  %v362_v2 = vld [vmem:[%s344_s15 + $0x10] sm:$0xff]  ;;  %v361_v3 = vld [vmem:[%s344_s15 + $0x8] sm:$0xff] }
  0x13   : > { %v940_v4 = vadd.f32 %v742_v0, %v360_v1  ;;  %v942_v5 = vadd.f32 %v742_v0, %v362_v2  ;;  %v944_v6 = vadd.f32 %v742_v0, %v361_v3  ;;  %785 = vmatpush3.bf16.msra.mxu1 %v821_v54 }
  0x14   : > { %786 = vmatprep.subr.bf16.mxu1 %v822_v55 }
  0x15   : > { %v376_v7 = vsel %vm375_vm0, %v940_v4, 0.0  ;;  %v382_v8 = vsel %vm375_vm0, %v942_v5, 0.0  ;;  %v379_v9 = vsel %vm375_vm0, %v944_v6, 0.0 }
  0x16   : > { %377 = vadd.xlane.f32.xlu0 %v376_v7  ;;  %383 = vadd.xlane.f32.xlu1 %v382_v8 }
  0x17   : > { %787 = vmatpush3.bf16.msra.mxu1 %v822_v55 }
  0x1a   : > { %380 = vadd.xlane.f32.xlu0 %v379_v9 }
  0xa3   : > { %v378_v10 = vpop.xlane.xlu0 %377  ;;  %v384_v11 = vpop.xlane.xlu1 %383 }
  0xa4   : > { %v386_v12 = vmul.f32 0.03125, %v378_v10  ;;  %v388_v13 = vmul.f32 0.03125, %v384_v11 }
  0xa6   : > { %v389_v14 = vsub.f32 %v940_v4, %v386_v12  ;;  %v391_v15 = vsub.f32 %v942_v5, %v388_v13 }
  0xa7   : > { %v381_v16 = vpop.xlane.xlu0 %380 }
  0xa8   : > { %v387_v17 = vmul.f32 0.03125, %v381_v16  ;;  %v392_v18 = vmul.f32 %v389_v14, %v389_v14  ;;  %v394_v19 = vmul.f32 %v391_v15, %v391_v15 }
  0xaa   : > { %v390_v20 = vsub.f32 %v944_v6, %v387_v17  ;;  %v395_v21 = vsel %vm375_vm0, %v392_v18, 0.0  ;;  %v401_v22 = vsel %vm375_vm0, %v394_v19, 0.0 }
  0xab   : > { %396 = vadd.xlane.f32.xlu1 %v395_v21 }
  0xac   : > { %v393_v23 = vmul.f32 %v390_v20, %v390_v20 }
  0xae   : > { %v398_v24 = vsel %vm375_vm0, %v393_v23, 0.0 }
  0xaf   : > { %402 = vadd.xlane.f32.xlu1 %v401_v22  ;;  %399 = vadd.xlane.f32.xlu0 %v398_v24 }
 0x138   : > { %v397_v27 = vpop.xlane.xlu1 %396 }
 0x139   : > { %v404_v28 = vmul.f32 0.03125, %v397_v27 }
 0x13b   : > { %v407_v29 = vadd.f32 1e-05, %v404_v28 }
 0x13c   : > { %v403_v30 = vpop.xlane.xlu1 %402  ;;  %v400_v31 = vpop.xlane.xlu0 %399 }
 0x13d   : > { %823 = vrsqrt.f32 %v407_v29  ;;  %v406_v32 = vmul.f32 0.03125, %v403_v30  ;;  %v405_v33 = vmul.f32 0.03125, %v400_v31 }
 0x13f   : > { %v409_v34 = vadd.f32 1e-05, %v406_v32  ;;  %v408_v35 = vadd.f32 1e-05, %v405_v33 }
 0x141   : > { %825 = vrsqrt.f32 %v409_v34 }
 0x142   : > { %827 = vrsqrt.f32 %v408_v35 }
 0x147   : > { %v824_v36 = vpop.eup %823 }
 0x148   : > { %v413_v37 = vmul.f32 %v824_v36, %v389_v14 }
 0x14a   : > { %v422_v43 = vmul.f32 %v743_v38, %v413_v37 }
 0x14b   : > { %v826_v39 = vpop.eup %825 }
 0x14c   : > { %v828_v40 = vpop.eup %827  ;;  %v415_v41 = vmul.f32 %v826_v39, %v391_v15  ;;  %v431_v48 = vadd.f32 %v744_v44, %v422_v43 }
 0x14d   : > { %v414_v42 = vmul.f32 %v828_v40, %v390_v20  ;;  %v753_v20 = vld [vmem:[%s1017_s7] ss:$0 sm:$0xff] }
 0x14e   : > { %v424_v45 = vmul.f32 %v743_v38, %v415_v41 }
 0x14f   : > { %v423_v46 = vmul.f32 %v743_v38, %v414_v42 }
 0x150   : > { %v433_v47 = vadd.f32 %v744_v44, %v424_v45 }
 0x151   : > { %v432_v49 = vadd.f32 %v744_v44, %v423_v46 }
 0x152   : > { %v439_v50 = vpack.c.bf16 %v433_v47, %v433_v47 }
 0x153   : > { %v438_v51 = vpack.c.bf16 %v432_v49, %v431_v48 }
 0x155   : > { %776 = vmatprep.mubr.msk.bf16.mxu0 %vm375_vm0, %v438_v51 }
 0x156   : > { %777 = vmatmul.mubr.msk.bf16.vlgmr.msra.gmra.mrb[0].mxu0 %vm375_vm0, %v439_v50 }
 0x229   : > { %v778_v57 = vpop.f32.mrb[0].mxu0 }
 0x22a   : > { %v508_v58 = vadd.f32 %v778_v57, %v745_v56  ;;  %v499_v59 = vpop.f32.mrb[1].mxu0 }
 0x22b   : > { %v500_v60 = vadd.f32 %v745_v56, %v499_v59  ;;  %v779_v61 = vpop.f32.mrb[2].mxu0 }
 0x22c   : > { %v752_v62 = vmul.f32 -1.442695, %v508_v58  ;;  %v502_v63 = vpop.f32.mrb[3].mxu0 }
 0x22d   : > { %v750_v0 = vmul.f32 -1.442695, %v500_v60  ;;  %v503_v1 = vadd.f32 %v745_v56, %v502_v63 }
 0x22e   : > { %829 = vpow2.f32 %v752_v62 }
 0x22f   : > { %831 = vpow2.f32 %v750_v0  ;;  %v751_v2 = vmul.f32 -1.442695, %v503_v1 }
 0x231   : > { %833 = vpow2.f32 %v751_v2 }
 0x238   : > { %v830_v3 = vpop.eup %829 }
 0x239   : > { %v832_v7 = vpop.eup %831  ;;  %v524_v8 = vadd.f32 1.0, %v830_v3 }
 0x23a   : > { %v522_v9 = vadd.f32 1.0, %v832_v7 }
 0x23b   : > { %v834_v10 = vpop.eup %833  ;;  %835 = vrcp.f32 %v524_v8 }
 0x23c   : > { %837 = vrcp.f32 %v522_v9  ;;  %v523_v11 = vadd.f32 1.0, %v834_v10 }
 0x23e   : > { %839 = vrcp.f32 %v523_v11 }
 0x245   : > { %v836_v12 = vpop.eup %835 }
 0x246   : > { %v838_v13 = vpop.eup %837  ;;  %v533_v15 = vmul.f32 %v836_v12, %v508_v58 }
 0x247   : > { %v531_v16 = vmul.f32 %v838_v13, %v500_v60 }
 0x248   : > { %v840_v14 = vpop.eup %839  ;;  %v543_v19 = vpack.c.bf16 %v533_v15, %v533_v15 }
 0x249   : > { %v532_v17 = vmul.f32 %v840_v14, %v503_v1 }
 0x24b   : > { %v542_v18 = vpack.c.bf16 %v532_v17, %v531_v16 }
 0x24d   : > { %788 = vmatprep.mubr.msk.bf16.mxu1 %vm575_vm1, %v542_v18 }
 0x24e   : > { %789 = vmatmul.mubr.msk.bf16.vlgmr.msra.gmra.mrb[0].mxu1 %vm575_vm1, %v543_v19 }
 0x321   : > { %v790_v21 = vpop.f32.mrb[0].mxu1 }
 0x322   : > { %v625_v22 = vadd.f32 %v790_v21, %v753_v20  ;;  %v616_v23 = vpop.f32.mrb[1].mxu1 }
 0x323   : > { %v617_v24 = vadd.f32 %v753_v20, %v616_v23  ;;  %v791_v25 = vpop.f32.mrb[2].mxu1 }
 0x324   : > { %v632_v26 = vmul.f32 0.5, %v625_v22  ;;  %v619_v27 = vpop.f32.mrb[3].mxu1 }
 0x325   : > { %v630_v28 = vmul.f32 0.5, %v617_v24  ;;  %v620_v29 = vadd.f32 %v753_v20, %v619_v27 }
 0x326   : > { %v635_v30 = vadd.f32 %v632_v26, %v942_v5 }
 0x327   : > { %v633_v31 = vadd.f32 %v630_v28, %v940_v4  ;;  %v631_v32 = vmul.f32 0.5, %v620_v29 }
 0x328   : > { %638 = vst.msk [vmem:[%s357_s21 + $0x10] sm:$0xff] %vm375_vm0, %v635_v30 }
 0x329   : > { %636 = vst.msk [vmem:[%s357_s21] sm:$0xff] %vm375_vm0, %v633_v31  ;;  %v634_v33 = vadd.f32 %v631_v32, %v944_v6 }
 0x32b   : > { %637 = vst.msk [vmem:[%s357_s21 + $0x8] sm:$0xff] %vm375_vm0, %v634_v33 }
 0x32c PF: > { %s18_s29 = sadd.s32 1, %s863_s29   ;;  %s1019_s27 = smov %s859_s28 }
 0x32d   : > { %p15_p5 = scmp.ge.s32.totalorder %s18_s29, 4   ;;  %s1020_s28 = smov %s1022_s30 }
 0x32f   :  { %17 = sbr.rel (!%p15_p5) target bundleno = 2 (0x2), region = 85 }

// kernel: style_diffuser_run.24
= control target key start
LH: loop header
LB: loop body
LE: loop exit
PB: predicated region body
PF: predicated region fallthrough
CT: control target
= control target key end

     0   :  { %s975_s30 = smov 0   ;;  %s977_s10 = smov 0   ;;  %s1083_s0 = inlined_call_operand.vmem [shape: f32[2,24,32], index: 0, kind: input, shape index: {}]   ;;  %s1084_s1 = inlined_call_operand.vmem [shape: f32[1,32], index: 1, kind: input, shape index: {}]   ;;  %s1085_s2 = inlined_call_operand.vmem [shape: f32[1,32], index: 2, kind: input, shape index: {}]   ;;  %s1086_s3 = inlined_call_operand.vmem [shape: bf16[32,64], index: 3, kind: input, shape index: {}]   ;;  %s1087_s4 = inlined_call_operand.vmem [shape: f32[1,64], index: 4, kind: input, shape index: {}]   ;;  %s1088_s5 = inlined_call_operand.vmem [shape: bf16[64,32], index: 5, kind: input, shape index: {}]   ;;  %s1089_s6 = inlined_call_operand.vmem [shape: f32[1,32], index: 6, kind: input, shape index: {}]   ;;  %s1090_s7 = inlined_call_operand.vmem [shape: f32[1,32], index: 7, kind: input, shape index: {}]   ;;  %s1091_s8 = inlined_call_operand.vmem [shape: f32[1,32], index: 8, kind: input, shape index: {}]   ;;  %s1092_s9 = inlined_call_operand.vmem [shape: f32[2,24,32], index: 9, kind: output, shape index: {}]  }
   0x1   :  { %s979_s11 = smov 0  }
   0x2 LB: > { %s31_s12 = sadd.s32 1, %s919_s10  ;;  %p792_p0 = scmp.ge.s32.totalorder %s923_s11, 1  ;;  %s923_s11 = sphi %s979_s11, %s19_s11   ;;  %s919_s10 = sphi %s977_s10, %s1094_s10   ;;  %s915_s30 = sphi %s975_s30, %s1093_s30  }
   0x3   : > { %p33_p1 = scmp.ge.s32.totalorder %s31_s12, 2  ;;  %p308_p2 = scmp.lt.s32.totalorder %s923_s11, 3 }
   0x5   : > { %s1096_s12 = smov (%p33_p1, %s31_s12), 0  ;;  %p309_p3 = pnand %p792_p0, %p308_p2 }
   0x6   : > { %p353_p4 = scmp.lt.s32.totalorder (!%p309_p3), %s915_s30, 1  ;;  %vm378_vm0 = vcmask (!%p309_p3), 261120   ;;  %v871_v21 = vld [vmem:[%s1086_s3] sm:$0xff] (!%p309_p3)   ;;  %v872_v22 = vld [vmem:[%s1086_s3 + $0x8] sm:$0xff] (!%p309_p3)   ;;  %v875_v50 = vld [vmem:[%s1088_s5 + $0x10] sm:$0xff] (!%p309_p3)   ;;  %vm578_vm1 = vcmask (!%p309_p3), 523264  }
   0x7   : > { %312 = sbr.rel (%p309_p3) target bundleno = 1125 (0x465), region = 56  ;;  %826 = vmatprep.subr.bf16.mxu0 (!%p309_p3), %v871_v21  ;;  %v795_v34 = vld [vmem:[%s1084_s1] ss:$0 sm:$0xff] (!%p309_p3)  ;;  %v874_v49 = vld [vmem:[%s1088_s5 + $0x8] sm:$0xff] (!%p309_p3)   ;;  %v876_v51 = vld [vmem:[%s1088_s5 + $0x18] sm:$0xff] (!%p309_p3)  }
   0x8   : > { %827 = vmatpush3.bf16.msra.mxu0 (!%p309_p3), %v871_v21  ;;  %v796_v40 = vld [vmem:[%s1085_s2] ss:$0 sm:$0xff] (!%p309_p3) }
   0x9   : > { %828 = vmatprep.subr.bf16.mxu0 (!%p309_p3), %v872_v22  ;;  %v873_v48 = vld [vmem:[%s1088_s5] sm:$0xff] (!%p309_p3)  }
   0xa   : > { %834 = vmatprep.subr.bf16.mxu1 (!%p309_p3), %v873_v48  ;;  %v797_v52 = vld [vmem:[%s1087_s4] ss:$0 sm:$0xff] (!%p309_p3) }
   0xb   : > { %835 = vmatpush3.bf16.msra.mxu1 (!%p309_p3), %v873_v48 }
   0xc   : > { %829 = vmatpush3.bf16.msra.mxu0 (!%p309_p3), %v872_v22  ;;  %836 = vmatprep.subr.bf16.mxu1 (!%p309_p3), %v874_v49 }
   0xe   : > { %s1098_s30 = smov (!%p353_p4, %s915_s30), 1 }
   0xf   : > { %s846_s13 = smul.u32 24, %s1098_s30  ;;  %837 = vmatpush3.bf16.msra.mxu1 %v874_v49 }
  0x10   : > { %838 = vmatprep.subr.bf16.mxu1 %v875_v50 }
  0x11   : > { %s360_s16 = scalar_lea.vmem %s1083_s0, %s846_s13  ;;  %s370_s27 = scalar_lea.vmem %s1092_s9, %s846_s13 }
  0x12   : > { %v1001_v0 = vld [vmem:[%s360_s16] sm:$0xff]  ;;  %v1003_v1 = vld [vmem:[%s360_s16 + $0x10] sm:$0xff]  ;;  %v1005_v2 = vld [vmem:[%s360_s16 + $0x8] sm:$0xff] }
  0x13   : > { %v379_v3 = vsel %vm378_vm0, %v1001_v0, 0.0  ;;  %v385_v4 = vsel %vm378_vm0, %v1003_v1, 0.0  ;;  %v382_v5 = vsel %vm378_vm0, %v1005_v2, 0.0  ;;  %839 = vmatpush3.bf16.msra.mxu1 %v875_v50 }
  0x14   : > { %380 = vadd.xlane.f32.xlu0 %v379_v3  ;;  %386 = vadd.xlane.f32.xlu1 %v385_v4 }
  0x15   : > { %840 = vmatprep.subr.bf16.mxu1 %v876_v51 }
  0x17   : > { %841 = vmatpush3.bf16.msra.mxu1 %v876_v51 }
  0x18   : > { %383 = vadd.xlane.f32.xlu0 %v382_v5 }
  0xa1   : > { %v381_v6 = vpop.xlane.xlu0 %380  ;;  %v387_v7 = vpop.xlane.xlu1 %386 }
  0xa2   : > { %v389_v8 = vmul.f32 0.03125, %v381_v6  ;;  %v391_v9 = vmul.f32 0.03125, %v387_v7 }
  0xa4   : > { %v392_v10 = vsub.f32 %v1001_v0, %v389_v8  ;;  %v394_v11 = vsub.f32 %v1003_v1, %v391_v9 }
  0xa5   : > { %v384_v12 = vpop.xlane.xlu0 %383 }
  0xa6   : > { %v390_v13 = vmul.f32 0.03125, %v384_v12  ;;  %v395_v14 = vmul.f32 %v392_v10, %v392_v10  ;;  %v397_v15 = vmul.f32 %v394_v11, %v394_v11 }
  0xa8   : > { %v393_v16 = vsub.f32 %v1005_v2, %v390_v13  ;;  %v398_v17 = vsel %vm378_vm0, %v395_v14, 0.0  ;;  %v404_v18 = vsel %vm378_vm0, %v397_v15, 0.0 }
  0xa9   : > { %399 = vadd.xlane.f32.xlu1 %v398_v17 }
  0xaa   : > { %v396_v19 = vmul.f32 %v393_v16, %v393_v16 }
  0xac   : > { %v401_v20 = vsel %vm378_vm0, %v396_v19, 0.0 }
  0xad   : > { %405 = vadd.xlane.f32.xlu1 %v404_v18  ;;  %402 = vadd.xlane.f32.xlu0 %v401_v20 }
 0x136   : > { %v400_v23 = vpop.xlane.xlu1 %399 }
 0x137   : > { %v407_v24 = vmul.f32 0.03125, %v400_v23 }
 0x139   : > { %v410_v25 = vadd.f32 1e-05, %v407_v24 }
 0x13a   : > { %v406_v26 = vpop.xlane.xlu1 %405  ;;  %v403_v27 = vpop.xlane.xlu0 %402 }
 0x13b   : > { %877 = vrsqrt.f32 %v410_v25  ;;  %v409_v28 = vmul.f32 0.03125, %v406_v26  ;;  %v408_v29 = vmul.f32 0.03125, %v403_v27 }
 0x13d   : > { %v412_v30 = vadd.f32 1e-05, %v409_v28  ;;  %v411_v31 = vadd.f32 1e-05, %v408_v29 }
 0x13f   : > { %879 = vrsqrt.f32 %v412_v30 }
 0x140   : > { %881 = vrsqrt.f32 %v411_v31 }
 0x145   : > { %v878_v32 = vpop.eup %877 }
 0x146   : > { %v416_v33 = vmul.f32 %v878_v32, %v392_v10 }
 0x148   : > { %v425_v39 = vmul.f32 %v795_v34, %v416_v33 }
 0x149   : > { %v880_v35 = vpop.eup %879 }
 0x14a   : > { %v882_v36 = vpop.eup %881  ;;  %v418_v37 = vmul.f32 %v880_v35, %v394_v11  ;;  %v434_v44 = vadd.f32 %v796_v40, %v425_v39 }
 0x14b   : > { %v417_v38 = vmul.f32 %v882_v36, %v393_v16  ;;  %v805_v16 = vld [vmem:[%s1089_s6] ss:$0 sm:$0xff] }
 0x14c   : > { %v427_v41 = vmul.f32 %v795_v34, %v418_v37 }
 0x14d   : > { %v426_v42 = vmul.f32 %v795_v34, %v417_v38 }
 0x14e   : > { %v436_v43 = vadd.f32 %v796_v40, %v427_v41 }
 0x14f   : > { %v435_v45 = vadd.f32 %v796_v40, %v426_v42 }
 0x150   : > { %v442_v46 = vpack.c.bf16 %v436_v43, %v436_v43 }
 0x151   : > { %v441_v47 = vpack.c.bf16 %v435_v45, %v434_v44 }
 0x153   : > { %830 = vmatprep.mubr.msk.bf16.mxu0 %vm378_vm0, %v441_v47 }
 0x154   : > { %831 = vmatmul.mubr.msk.bf16.vlgmr.msra.gmra.mrb[0].mxu0 %vm378_vm0, %v442_v46 }
 0x227   : > { %v832_v53 = vpop.f32.mrb[0].mxu0 }
 0x228   : > { %v511_v54 = vadd.f32 %v832_v53, %v797_v52  ;;  %v502_v55 = vpop.f32.mrb[1].mxu0 }
 0x229   : > { %v503_v56 = vadd.f32 %v797_v52, %v502_v55  ;;  %v833_v57 = vpop.f32.mrb[2].mxu0  ;;  %v812_v55 = vld [vmem:[%s1090_s7] ss:$0 sm:$0xff] }
 0x22a   : > { %v804_v58 = vmul.f32 -1.442695, %v511_v54  ;;  %v505_v59 = vpop.f32.mrb[3].mxu0 }
 0x22b   : > { %v802_v60 = vmul.f32 -1.442695, %v503_v56  ;;  %v506_v61 = vadd.f32 %v797_v52, %v505_v59 }
 0x22c   : > { %883 = vpow2.f32 %v804_v58  ;;  %v813_v58 = vld [vmem:[%s1091_s8] ss:$0 sm:$0xff] }
 0x22d   : > { %885 = vpow2.f32 %v802_v60  ;;  %v803_v62 = vmul.f32 -1.442695, %v506_v61 }
 0x22f   : > { %887 = vpow2.f32 %v803_v62 }
 0x236   : > { %v884_v63 = vpop.eup %883 }
 0x237   : > { %v886_v3 = vpop.eup %885  ;;  %v527_v4 = vadd.f32 1.0, %v884_v63 }
 0x238   : > { %v525_v5 = vadd.f32 1.0, %v886_v3 }
 0x239   : > { %v888_v6 = vpop.eup %887  ;;  %889 = vrcp.f32 %v527_v4 }
 0x23a   : > { %891 = vrcp.f32 %v525_v5  ;;  %v526_v7 = vadd.f32 1.0, %v888_v6 }
 0x23c   : > { %893 = vrcp.f32 %v526_v7 }
 0x243   : > { %v890_v8 = vpop.eup %889 }
 0x244   : > { %v892_v9 = vpop.eup %891  ;;  %v536_v11 = vmul.f32 %v890_v8, %v511_v54 }
 0x245   : > { %v534_v12 = vmul.f32 %v892_v9, %v503_v56 }
 0x246   : > { %v894_v10 = vpop.eup %893  ;;  %v546_v15 = vpack.c.bf16 %v536_v11, %v536_v11 }
 0x247   : > { %v535_v13 = vmul.f32 %v894_v10, %v506_v61 }
 0x249   : > { %v545_v14 = vpack.c.bf16 %v535_v13, %v534_v12 }
 0x24b   : > { %842 = vmatprep.mubr.msk.bf16.mxu1 %vm578_vm1, %v545_v14 }
 0x24c   : > { %843 = vmatmul.mubr.msk.bf16.vlgmr.msra.gmra.mrb[0].mxu1 %vm578_vm1, %v546_v15 }
 0x31f   : > { %v844_v17 = vpop.f32.mrb[0].mxu1 }
 0x320   : > { %v628_v18 = vadd.f32 %v844_v17, %v805_v16  ;;  %v619_v19 = vpop.f32.mrb[1].mxu1 }
 0x321   : > { %v620_v20 = vadd.f32 %v805_v16, %v619_v19  ;;  %v845_v21 = vpop.f32.mrb[2].mxu1 }
 0x322   : > { %v622_v22 = vpop.f32.mrb[3].mxu1  ;;  %v635_v23 = vmul.f32 0.5, %v628_v18 }
 0x323   : > { %v633_v24 = vmul.f32 0.5, %v620_v20  ;;  %v623_v25 = vadd.f32 %v805_v16, %v622_v22 }
 0x324   : > { %v638_v30 = vadd.f32 %v635_v23, %v1003_v1 }
 0x325   : > { %v634_v26 = vmul.f32 0.5, %v623_v25  ;;  %v636_v27 = vadd.f32 %v633_v24, %v1001_v0 }
 0x326   : > { %v647_v32 = vsel %vm378_vm0, %v638_v30, 0.0 }
 0x327   : > { %v641_v28 = vsel %vm378_vm0, %v636_v27, 0.0  ;;  %v637_v29 = vadd.f32 %v634_v26, %v1005_v2 }
 0x328   : > { %642 = vadd.xlane.f32.xlu0 %v641_v28 }
 0x329   : > { %v644_v31 = vsel %vm378_vm0, %v637_v29, 0.0 }
 0x32a   : > { %645 = vadd.xlane.f32.xlu1 %v644_v31 }
 0x32c   : > { %648 = vadd.xlane.f32.xlu0 %v647_v32 }
 0x3b5   : > { %v643_v33 = vpop.xlane.xlu0 %642 }
 0x3b6   : > { %v650_v34 = vmul.f32 0.03125, %v643_v33 }
 0x3b7   : > { %v646_v35 = vpop.xlane.xlu1 %645 }
 0x3b8   : > { %v653_v36 = vsub.f32 %v636_v27, %v650_v34  ;;  %v651_v37 = vmul.f32 0.03125, %v646_v35 }
 0x3b9   : > { %v649_v38 = vpop.xlane.xlu0 %648 }
 0x3ba   : > { %v654_v0 = vsub.f32 %v637_v29, %v651_v37  ;;  %v652_v39 = vmul.f32 0.03125, %v649_v38  ;;  %v656_v40 = vmul.f32 %v653_v36, %v653_v36 }
 0x3bc   : > { %v655_v41 = vsub.f32 %v638_v30, %v652_v39  ;;  %v659_v2 = vsel %vm378_vm0, %v656_v40, 0.0  ;;  %v657_v1 = vmul.f32 %v654_v0, %v654_v0 }
 0x3bd   : > { %660 = vadd.xlane.f32.xlu1 %v659_v2 }
 0x3be   : > { %v662_v42 = vsel %vm378_vm0, %v657_v1, 0.0  ;;  %v658_v43 = vmul.f32 %v655_v41, %v655_v41 }
 0x3bf   : > { %663 = vadd.xlane.f32.xlu0 %v662_v42 }
 0x3c0   : > { %v665_v44 = vsel %vm378_vm0, %v658_v43, 0.0 }
 0x3c1   : > { %666 = vadd.xlane.f32.xlu1 %v665_v44 }
 0x44a   : > { %v661_v45 = vpop.xlane.xlu1 %660 }
 0x44b   : > { %v668_v46 = vmul.f32 0.03125, %v661_v45 }
 0x44c   : > { %v664_v47 = vpop.xlane.xlu0 %663 }
 0x44d   : > { %v671_v48 = vadd.f32 1e-05, %v668_v46  ;;  %v669_v49 = vmul.f32 0.03125, %v664_v47 }
 0x44e   : > { %v667_v50 = vpop.xlane.xlu1 %666 }
 0x44f   : > { %895 = vrsqrt.f32 %v671_v48  ;;  %v672_v51 = vadd.f32 1e-05, %v669_v49  ;;  %v670_v52 = vmul.f32 0.03125, %v667_v50 }
 0x451   : > { %897 = vrsqrt.f32 %v672_v51  ;;  %v673_v53 = vadd.f32 1e-05, %v670_v52 }
 0x453   : > { %899 = vrsqrt.f32 %v673_v53 }
 0x459   : > { %v896_v54 = vpop.eup %895 }
 0x45a   : > { %v677_v56 = vmul.f32 %v896_v54, %v653_v36 }
 0x45b   : > { %v898_v57 = vpop.eup %897 }
 0x45c   : > { %v686_v59 = vmul.f32 %v812_v55, %v677_v56  ;;  %v678_v60 = vmul.f32 %v898_v57, %v654_v0 }
 0x45d   : > { %v900_v61 = vpop.eup %899 }
 0x45e   : > { %v695_v62 = vadd.f32 %v813_v58, %v686_v59  ;;  %v687_v63 = vmul.f32 %v812_v55, %v678_v60  ;;  %v679_v3 = vmul.f32 %v900_v61, %v655_v41 }
 0x460   : > { %698 = vst.msk [vmem:[%s370_s27] sm:$0xff] %vm378_vm0, %v695_v62  ;;  %v696_v4 = vadd.f32 %v813_v58, %v687_v63  ;;  %v688_v5 = vmul.f32 %v812_v55, %v679_v3 }
 0x462   : > { %699 = vst.msk [vmem:[%s370_s27 + $0x8] sm:$0xff] %vm378_vm0, %v696_v4  ;;  %v697_v6 = vadd.f32 %v813_v58, %v688_v5 }
 0x464   : > { %700 = vst.msk [vmem:[%s370_s27 + $0x10] sm:$0xff] %vm378_vm0, %v697_v6 }
 0x465 PF: > { %s19_s11 = sadd.s32 1, %s923_s11   ;;  %s1093_s30 = smov %s919_s10 }
 0x466   : > { %p16_p5 = scmp.ge.s32.totalorder %s19_s11, 4   ;;  %s1094_s10 = smov %s1096_s12 }
 0x468   :  { %18 = sbr.rel (!%p16_p5) target bundleno = 2 (0x2), region = 86 }

// kernel: style_diffuser_run.23
= control target key start
LH: loop header
LB: loop body
LE: loop exit
PB: predicated region body
PF: predicated region fallthrough
CT: control target
= control target key end

     0   :  { %s1478_s17 = smov 0   ;;  %s1919_s0 = inlined_call_operand.vmem [shape: f32[2,24,32], index: 0, kind: input, shape index: {}]   ;;  %s1920_s1 = inlined_call_operand.vmem [shape: f32[1,32], index: 1, kind: input, shape index: {}]   ;;  %s1921_s2 = inlined_call_operand.vmem [shape: f32[1,32], index: 2, kind: input, shape index: {}]   ;;  %s1922_s3 = inlined_call_operand.vmem [shape: bf16[32,64], index: 3, kind: input, shape index: {}]   ;;  %s1923_s4 = inlined_call_operand.vmem [shape: f32[1,64], index: 4, kind: input, shape index: {}]   ;;  %s1924_s5 = inlined_call_operand.vmem [shape: f32[15,32], index: 5, kind: input, shape index: {}]   ;;  %s1925_s6 = inlined_call_operand.vmem [shape: f32[1,32], index: 6, kind: input, shape index: {}]   ;;  %s1926_s7 = inlined_call_operand.vmem [shape: f32[1,32], index: 7, kind: input, shape index: {}]   ;;  %s1927_s8 = inlined_call_operand.vmem [shape: f32[1,32], index: 8, kind: input, shape index: {}]   ;;  %s1928_s9 = inlined_call_operand.vmem [shape: bf16[32,32], index: 9, kind: input, shape index: {}]   ;;  %s1929_s10 = inlined_call_operand.vmem [shape: f32[1,32], index: 10, kind: input, shape index: {}]   ;;  %s1930_s11 = inlined_call_operand.vmem [shape: f32[2,24,32], index: 11, kind: output, shape index: {}]  }
   0x1 LB: > { %s1303_s18 = sadd.s32 4294967295, %s1415_s17   ;;  %p1307_p0 = scmp.ge.s32.totalorder %s1415_s17, 1  ;;  %s1415_s17 = sphi %s1478_s17, %s21_s17  }
   0x2   : > { %p337_p1 = scmp.lt.s32.totalorder %s1415_s17, 3 }
   0x4   : > { %p338_p2 = pnand %p1307_p0, %p337_p1 }
   0x5   : > { %p377_p3 = scmp.lt.s32.totalorder (!%p338_p2), %s1303_s18, 1  ;;  %vm393_vm0 = vcmask (!%p338_p2), 261120   ;;  %v1373_v21 = vld [vmem:[%s1922_s3] sm:$0xff] (!%p338_p2)   ;;  %v1374_v22 = vld [vmem:[%s1922_s3 + $0x8] sm:$0xff] (!%p338_p2)   ;;  %s1417_s14 = smov (!%p338_p2), 96  }
   0x6   : > { %341 = sbr.rel (%p338_p2) target bundleno = 1491 (0x5d3), region = 64  ;;  %1341 = vmatprep.subr.bf16.mxu0 (!%p338_p2), %v1373_v21  ;;  %v1310_v34 = vld [vmem:[%s1920_s1] ss:$0 sm:$0xff] (!%p338_p2) }
   0x7   : > { %1342 = vmatpush3.bf16.msra.mxu0 (!%p338_p2), %v1373_v21  ;;  %v1311_v40 = vld [vmem:[%s1921_s2] ss:$0 sm:$0xff] (!%p338_p2) }
   0x8   : > { %1343 = vmatprep.subr.bf16.mxu0 (!%p338_p2), %v1374_v22  ;;  %v1312_v48 = vld [vmem:[%s1923_s4] ss:$0 sm:$0xff] (!%p338_p2) }
   0xb   : > { %1344 = vmatpush3.bf16.msra.mxu0 (!%p338_p2), %v1374_v22 }
   0xd   : > { %s1932_s18 = smov (!%p377_p3, %s1303_s18), 1 }
   0xe   : > { %s1357_s19 = smul.u32 24, %s1932_s18 }
  0x10   : > { %s381_s22 = scalar_lea.vmem %s1919_s0, %s1357_s19  ;;  %s386_s26 = scalar_lea.vmem %s1930_s11, %s1357_s19 }
  0x11   : > { %v1494_v0 = vld [vmem:[%s381_s22] sm:$0xff]  ;;  %v1496_v1 = vld [vmem:[%s381_s22 + $0x10] sm:$0xff]  ;;  %v1498_v2 = vld [vmem:[%s381_s22 + $0x8] sm:$0xff] }
  0x12   : > { %v394_v3 = vsel %vm393_vm0, %v1494_v0, 0.0  ;;  %v400_v4 = vsel %vm393_vm0, %v1496_v1, 0.0  ;;  %v397_v5 = vsel %vm393_vm0, %v1498_v2, 0.0 }
  0x13   : > { %395 = vadd.xlane.f32.xlu0 %v394_v3  ;;  %401 = vadd.xlane.f32.xlu1 %v400_v4 }
  0x17   : > { %398 = vadd.xlane.f32.xlu0 %v397_v5 }
  0xa0   : > { %v396_v6 = vpop.xlane.xlu0 %395  ;;  %v402_v7 = vpop.xlane.xlu1 %401 }
  0xa1   : > { %v404_v8 = vmul.f32 0.03125, %v396_v6  ;;  %v406_v9 = vmul.f32 0.03125, %v402_v7  ;;  %v566_v7 = vlaneseq }
  0xa3   : > { %v407_v10 = vsub.f32 %v1494_v0, %v404_v8  ;;  %v409_v11 = vsub.f32 %v1496_v1, %v406_v9  ;;  %v1538_v8 = vshrl.u32 %v566_v7, 7 }
  0xa4   : > { %v399_v12 = vpop.xlane.xlu0 %398 }
  0xa5   : > { %v405_v13 = vmul.f32 0.03125, %v399_v12  ;;  %v410_v14 = vmul.f32 %v407_v10, %v407_v10  ;;  %v412_v15 = vmul.f32 %v409_v11, %v409_v11  ;;  %v1541_v9 = vadd.s32 4294967289, %v1538_v8 }
  0xa6   : > { %v638_v12 = vsub.s32 1, %v1538_v8  ;;  %vm573_vm1 = vcmp.lt.s32.totalorder %v1538_v8, 7  ;;  %vm611_vm2 = vcmp.lt.s32.totalorder %v1538_v8, 6  ;;  %v828_v21 = vsub.s32 6, %v1538_v8 }
  0xa7   : > { %v408_v16 = vsub.f32 %v1498_v2, %v405_v13  ;;  %v413_v17 = vsel %vm393_vm0, %v410_v14, 0.0  ;;  %v419_v18 = vsel %vm393_vm0, %v412_v15, 0.0  ;;  %v1549_v13 = vadd.s32 4294967291, %v1538_v8 }
  0xa8   : > { %414 = vadd.xlane.f32.xlu1 %v413_v17  ;;  %v676_v14 = vsub.s32 2, %v1538_v8  ;;  %v1553_v15 = vadd.s32 16, %v1538_v8  ;;  %v752_v17 = vsub.s32 4, %v1538_v8  ;;  %vm580_vm3 = vcmp.ge.s32.totalorder %v1541_v9, 0 }
  0xa9   : > { %v411_v19 = vmul.f32 %v408_v16, %v408_v16  ;;  %vm649_vm5 = vcmp.lt.s32.totalorder %v1538_v8, 5  ;;  %vm656_vm6 = vcmp.ge.s32.totalorder %v1549_v13, 0  ;;  %vm687_vm7 = vcmp.lt.s32.totalorder %v1538_v8, 4 }
  0xaa   : > { %vm725_vm9 = vcmp.lt.s32.totalorder %v1538_v8, 3  ;;  %vm763_vm11 = vcmp.lt.s32.totalorder %v1538_v8, 2  ;;  %vm801_vm13 = vcmp.lt.s32.totalorder %v1538_v8, 1 }
  0xab   : > { %v416_v20 = vsel %vm393_vm0, %v411_v19, 0.0  ;;  %v564_v19 = vld [vmem:[%s1924_s5] sm:$0xff] }
  0xac   : > { %420 = vadd.xlane.f32.xlu1 %v419_v18  ;;  %417 = vadd.xlane.f32.xlu0 %v416_v20  ;;  %v838_v18 = vsub.s32 7, %v1538_v8  ;;  %v790_v20 = vsub.s32 5, %v1538_v8 }
 0x135   : > { %v415_v23 = vpop.xlane.xlu1 %414 }
 0x136   : > { %v422_v24 = vmul.f32 0.03125, %v415_v23  ;;  %v1569_v23 = vrot.slane %v564_v19, %v638_v12 }
 0x138   : > { %v425_v25 = vadd.f32 1e-05, %v422_v24  ;;  %v1573_v24 = vrot.slane %v564_v19, %v676_v14 }
 0x139   : > { %v421_v26 = vpop.xlane.xlu1 %420  ;;  %v418_v27 = vpop.xlane.xlu0 %417 }
 0x13a   : > { %1377 = vrsqrt.f32 %v425_v25  ;;  %v424_v28 = vmul.f32 0.03125, %v421_v26  ;;  %v423_v29 = vmul.f32 0.03125, %v418_v27  ;;  %v1577_v25 = vadd.s32 4294967292, %v1538_v8  ;;  %v1582_v26 = vld [vmem:[%s1924_s5 + $0x8] sm:$0x7f] }
 0x13c   : > { %v427_v30 = vadd.f32 1e-05, %v424_v28  ;;  %v426_v31 = vadd.f32 1e-05, %v423_v29  ;;  %v1587_v28 = vadd.s32 4294967293, %v1538_v8  ;;  %v1591_v29 = vrot.slane %v564_v19, %v752_v17 }
 0x13d   : > { %vm694_vm8 = vcmp.ge.s32.totalorder %v1577_v25, 0 }
 0x13e   : > { %1379 = vrsqrt.f32 %v427_v30  ;;  %v1593_v30 = vrot.slane %v564_v19, %v838_v18  ;;  %vm732_vm10 = vcmp.ge.s32.totalorder %v1587_v28, 0 }
 0x13f   : > { %1381 = vrsqrt.f32 %v426_v31  ;;  %v1596_v31 = vadd.s32 4294967294, %v1538_v8 }
 0x141   : > { %vm770_vm12 = vcmp.ge.s32.totalorder %v1596_v31, 0 }
 0x144   : > { %v1378_v32 = vpop.eup %1377 }
 0x145   : > { %v431_v33 = vmul.f32 %v1378_v32, %v407_v10  ;;  %v600_v10 = vsub.s32 0, %v1538_v8  ;;  %v1600_v32 = vrot.slane %v564_v19, %v790_v20 }
 0x147   : > { %v440_v39 = vmul.f32 %v1310_v34, %v431_v33  ;;  %v1566_v22 = vrot.slane %v564_v19, %v600_v10  ;;  %v1603_v33 = vadd.s32 4294967295, %v1538_v8 }
 0x148   : > { %v1380_v35 = vpop.eup %1379 }
 0x149   : > { %v1382_v36 = vpop.eup %1381  ;;  %v433_v37 = vmul.f32 %v1380_v35, %v409_v11  ;;  %v449_v44 = vadd.f32 %v1311_v40, %v440_v39  ;;  %v1545_v11 = vadd.s32 4294967290, %v1538_v8  ;;  %v1619_v39 = vadd.s32 4, %v1553_v15 }
 0x14a   : > { %v432_v38 = vmul.f32 %v1382_v36, %v408_v16  ;;  %v714_v16 = vsub.s32 3, %v1538_v8  ;;  %v1610_v36 = vadd.s32 1, %v1553_v15  ;;  %vm808_vm14 = vcmp.ge.s32.totalorder %v1603_v33, 0 }
 0x14b   : > { %v442_v41 = vmul.f32 %v1310_v34, %v433_v37  ;;  %vm618_vm4 = vcmp.ge.s32.totalorder %v1545_v11, 0  ;;  %v1613_v37 = vadd.s32 2, %v1553_v15 }
 0x14c   : > { %v441_v42 = vmul.f32 %v1310_v34, %v432_v38  ;;  %v1584_v27 = vrot.slane %v564_v19, %v714_v16  ;;  %v1607_v34 = vrot.slane %v564_v19, %v828_v21  ;;  %v1616_v38 = vadd.s32 3, %v1553_v15 }
 0x14d   : > { %v451_v43 = vadd.f32 %v1311_v40, %v442_v41  ;;  %vm854_vm15 = vcmp.lt.s32.totalorder %v1610_v36, 24 }
 0x14e   : > { %v450_v45 = vadd.f32 %v1311_v40, %v441_v42  ;;  %v1625_v42 = vrot.slane %v1582_v26, %v600_v10 }
 0x14f   : > { %v457_v46 = vpack.c.bf16 %v451_v43, %v451_v43  ;;  %v1628_v43 = vrot.slane %v1582_v26, %v638_v12 }
 0x150   : > { %v456_v47 = vpack.c.bf16 %v450_v45, %v449_v44  ;;  %v1631_v44 = vadd.s32 5, %v1553_v15 }
 0x152   : > { %1345 = vmatprep.mubr.msk.bf16.mxu0 %vm393_vm0, %v456_v47  ;;  %v1641_v47 = vrot.slane %v1582_v26, %v714_v16 }
 0x153   : > { %1346 = vmatmul.mubr.msk.bf16.vlgmr.msra.gmra.mrb[0].mxu0 %vm393_vm0, %v457_v46  ;;  %v1638_v46 = vrot.slane %v1582_v26, %v676_v14 }
 0x226   : > { %v1347_v49 = vpop.f32.mrb[0].mxu0 }
 0x227   : > { %v1529_v50 = vadd.f32 %v1347_v49, %v1312_v48  ;;  %v517_v51 = vpop.f32.mrb[1].mxu0 }
 0x228   : > { %v1531_v52 = vadd.f32 %v1312_v48, %v517_v51  ;;  %v1348_v53 = vpop.f32.mrb[2].mxu0 }
 0x229   : > { %v1319_v54 = vmul.f32 -1.442695, %v1529_v50  ;;  %v520_v55 = vpop.f32.mrb[3].mxu0 }
 0x22a   : > { %v1317_v56 = vmul.f32 -1.442695, %v1531_v52  ;;  %v1535_v57 = vadd.f32 %v1312_v48, %v520_v55  ;;  %v1644_v48 = vadd.s32 6, %v1553_v15 }
 0x22b   : > { %1383 = vpow2.f32 %v1319_v54 }
 0x22c   : > { %1385 = vpow2.f32 %v1317_v56  ;;  %v1318_v58 = vmul.f32 -1.442695, %v1535_v57 }
 0x22e   : > { %1387 = vpow2.f32 %v1318_v58 }
 0x235   : > { %v1384_v59 = vpop.eup %1383 }
 0x236   : > { %v1386_v60 = vpop.eup %1385  ;;  %v542_v61 = vadd.f32 1.0, %v1384_v59 }
 0x237   : > { %v540_v62 = vadd.f32 1.0, %v1386_v60 }
 0x238   : > { %v1388_v63 = vpop.eup %1387  ;;  %1389 = vrcp.f32 %v542_v61 }
 0x239   : > { %1391 = vrcp.f32 %v540_v62  ;;  %v541_v3 = vadd.f32 1.0, %v1388_v63 }
 0x23b   : > { %1393 = vrcp.f32 %v541_v3 }
 0x242   : > { %v1390_v4 = vpop.eup %1389 }
 0x243   : > { %v1392_v5 = vpop.eup %1391  ;;  %556 = vrot.lane.b32.xlu1 %v1390_v4, %s1417_s14 }
 0x244   : > { %552 = vrot.lane.b32.xlu0 %v1392_v5, %s1417_s14 }
 0x245   : > { %v1394_v6 = vpop.eup %1393 }
 0x247   : > { %554 = vrot.lane.b32.xlu1 %v1394_v6, %s1417_s14 }
 0x2b5   : > { %v557_v35 = vpop.permute.xlu1 %556 }
 0x2b6   : > { %v1622_v40 = vmul.f32 %v557_v35, %v1529_v50  ;;  %v553_v41 = vpop.permute.xlu0 %552 }
 0x2b7   : > { %v1634_v45 = vmul.f32 %v553_v41, %v1531_v52 }
 0x2b8   : > { %v572_v49 = vrot.slane %v1622_v40, 1  ;;  %v610_v50 = vrot.slane %v1622_v40, 2  ;;  %v648_v51 = vrot.slane %v1622_v40, 3  ;;  %v686_v52 = vrot.slane %v1622_v40, 4 }
 0x2b9   : > { %v555_v53 = vpop.permute.xlu1 %554  ;;  %v570_v54 = vrot.slane %v1634_v45, 1  ;;  %v608_v55 = vrot.slane %v1634_v45, 2  ;;  %v646_v56 = vrot.slane %v1634_v45, 3  ;;  %v684_v58 = vrot.slane %v1634_v45, 4 }
 0x2ba   : > { %v1656_v59 = vmul.f32 %v555_v53, %v1535_v57  ;;  %v722_v60 = vrot.slane %v1634_v45, 5  ;;  %v724_v61 = vrot.slane %v1622_v40, 5  ;;  %v760_v62 = vrot.slane %v1634_v45, 6 }
 0x2bb   : > { %v1664_v63 = vsel %vm573_vm1, %v572_v49, %v570_v54  ;;  %v1668_v3 = vsel %vm611_vm2, %v610_v50, %v608_v55  ;;  %v1672_v57 = vsel %vm649_vm5, %v648_v51, %v646_v56  ;;  %v1676_v4 = vsel %vm687_vm7, %v686_v52, %v684_v58 }
 0x2bc   : > { %v571_v5 = vrot.slane %v1656_v59, 1  ;;  %v595_v6 = vsel %vm580_vm3, %v1664_v63, 0.0  ;;  %v609_v7 = vrot.slane %v1656_v59, 2  ;;  %v633_v10 = vsel %vm618_vm4, %v1668_v3, 0.0 }
 0x2bd   : > { %v602_v12 = vmul.f32 %v1566_v22, %v595_v6  ;;  %v640_v14 = vmul.f32 %v1569_v23, %v633_v10  ;;  %v647_v16 = vrot.slane %v1656_v59, 3  ;;  %v671_v18 = vsel %vm656_vm6, %v1672_v57, 0.0 }
 0x2be   : > { %v1694_v9 = vsel %vm573_vm1, %v571_v5, %v572_v49  ;;  %v1698_v19 = vsel %vm573_vm1, %v570_v54, %v571_v5  ;;  %v1702_v11 = vsel %vm611_vm2, %v609_v7, %v610_v50  ;;  %v1706_v35 = vsel %vm611_vm2, %v608_v55, %v609_v7 }
 0x2bf   : > { %v603_v13 = vmul.f32 %v1566_v22, %v1698_v19  ;;  %v604_v41 = vmul.f32 %v1566_v22, %v1694_v9  ;;  %v641_v49 = vmul.f32 %v1569_v23, %v1706_v35  ;;  %v642_v53 = vmul.f32 %v1569_v23, %v1702_v11 }
 0x2c0   : > { %v643_v50 = vadd.f32 %v640_v14, %v602_v12  ;;  %v1720_v54 = vsel %vm649_vm5, %v647_v16, %v648_v51  ;;  %v1724_v55 = vsel %vm649_vm5, %v646_v56, %v647_v16  ;;  %v678_v5 = vmul.f32 %v1573_v24, %v671_v18 }
 0x2c1   : > { %v644_v22 = vadd.f32 %v641_v49, %v603_v13  ;;  %v645_v6 = vadd.f32 %v642_v53, %v604_v41  ;;  %v679_v23 = vmul.f32 %v1573_v24, %v1724_v55  ;;  %v680_v7 = vmul.f32 %v1573_v24, %v1720_v54 }
 0x2c2   : > { %v681_v51 = vadd.f32 %v678_v5, %v643_v50  ;;  %v685_v10 = vrot.slane %v1656_v59, 4  ;;  %v709_v56 = vsel %vm694_vm8, %v1676_v4, 0.0  ;;  %v723_v12 = vrot.slane %v1656_v59, 5 }
 0x2c3   : > { %v682_v14 = vadd.f32 %v679_v23, %v644_v22  ;;  %v683_v16 = vadd.f32 %v680_v7, %v645_v6  ;;  %v716_v18 = vmul.f32 %v1584_v27, %v709_v56  ;;  %v1741_v13 = vsel %vm725_vm9, %v724_v61, %v722_v60 }
 0x2c4   : > { %v1746_v24 = vsel %vm687_vm7, %v685_v10, %v686_v52  ;;  %v1750_v25 = vsel %vm687_vm7, %v684_v58, %v685_v10  ;;  %v1754_v41 = vsel %vm725_vm9, %v723_v12, %v724_v61  ;;  %v1758_v49 = vsel %vm725_vm9, %v722_v60, %v723_v12 }
 0x2c5   : > { %v717_v53 = vmul.f32 %v1584_v27, %v1750_v25  ;;  %v718_v50 = vmul.f32 %v1584_v27, %v1746_v24  ;;  %v719_v52 = vadd.f32 %v716_v18, %v681_v51  ;;  %v747_v58 = vsel %vm732_vm10, %v1741_v13, 0.0 }
 0x2c6   : > { %vm885_vm1 = vcmp.lt.s32.totalorder %v1613_v37, 24  ;;  %v754_v61 = vmul.f32 %v1591_v29, %v747_v58  ;;  %v755_v5 = vmul.f32 %v1591_v29, %v1758_v49  ;;  %v756_v60 = vmul.f32 %v1591_v29, %v1754_v41 }
 0x2c7   : > { %v761_v22 = vrot.slane %v1656_v59, 6  ;;  %vm916_vm2 = vcmp.lt.s32.totalorder %v1616_v38, 24  ;;  %v720_v27 = vadd.f32 %v717_v53, %v682_v14  ;;  %v721_v6 = vadd.f32 %v718_v50, %v683_v16 }
 0x2c8   : > { %v762_v23 = vrot.slane %v1622_v40, 6  ;;  %v798_v28 = vrot.slane %v1634_v45, 7  ;;  %v757_v7 = vadd.f32 %v754_v61, %v719_v52  ;;  %v799_v10 = vrot.slane %v1656_v59, 7 }
 0x2c9   : > { %v1781_v51 = vsel %vm763_vm11, %v760_v62, %v761_v22  ;;  %v800_v29 = vrot.slane %v1622_v40, 7  ;;  %vm947_vm3 = vcmp.lt.s32.totalorder %v1619_v39, 24  ;;  %v758_v56 = vadd.f32 %v755_v5, %v720_v27 }
 0x2ca   : > { %v759_v12 = vadd.f32 %v756_v60, %v721_v6  ;;  %v1788_v14 = vsel %vm763_vm11, %v761_v22, %v762_v23  ;;  %v766_v16 = vsel %vm763_vm11, %v762_v23, %v760_v62  ;;  %v793_v53 = vmul.f32 %v1600_v32, %v1781_v51 }
 0x2cb   : > { %v785_v18 = vsel %vm770_vm12, %v766_v16, 0.0  ;;  %v794_v50 = vmul.f32 %v1600_v32, %v1788_v14  ;;  %v1802_v52 = vsel %vm801_vm13, %v799_v10, %v800_v29  ;;  %vm978_vm4 = vcmp.lt.s32.totalorder %v1631_v44, 24 }
 0x2cc   : > { %v792_v58 = vmul.f32 %v1600_v32, %v785_v18  ;;  %v1808_v62 = vsel %vm801_vm13, %v798_v28, %v799_v10  ;;  %v804_v31 = vsel %vm801_vm13, %v800_v29, %v798_v28  ;;  %v832_v61 = vmul.f32 %v1607_v34, %v1802_v52 }
 0x2cd   : > { %v796_v5 = vadd.f32 %v793_v53, %v758_v56  ;;  %v797_v60 = vadd.f32 %v794_v50, %v759_v12  ;;  %v823_v22 = vsel %vm808_vm14, %v804_v31, 0.0  ;;  %v831_v27 = vmul.f32 %v1607_v34, %v1808_v62 }
 0x2ce   : > { %v795_v6 = vadd.f32 %v792_v58, %v757_v7  ;;  %v830_v32 = vmul.f32 %v1607_v34, %v823_v22  ;;  %v841_v23 = vmul.f32 %v1593_v30, %v1656_v59  ;;  %v1034_v10 = vadd.s32 7, %v1553_v15 }
 0x2cf   : > { %v834_v28 = vadd.f32 %v831_v27, %v796_v5  ;;  %v835_v29 = vadd.f32 %v832_v61, %v797_v60  ;;  %v842_v56 = vmul.f32 %v1593_v30, %v1622_v40  ;;  %v866_v33 = vsel %vm854_vm15, %v1664_v63, 0.0 }
 0x2d0   : > { %v833_v12 = vadd.f32 %v830_v32, %v795_v6  ;;  %v840_v7 = vmul.f32 %v1593_v30, %v1634_v45  ;;  %v872_v34 = vmul.f32 %v1625_v42, %v1694_v9  ;;  %v994_v15 = vrot.slane %v1582_v26, %v752_v17 }
 0x2d1   : > { %v844_v59 = vadd.f32 %v841_v23, %v834_v28  ;;  %v845_v18 = vadd.f32 %v842_v56, %v835_v29  ;;  %v873_v53 = vmul.f32 %v1625_v42, %v866_v33  ;;  %v897_v36 = vsel %vm885_vm1, %v1668_v3, 0.0 }
 0x2d2   : > { %v843_v40 = vadd.f32 %v840_v7, %v833_v12  ;;  %v871_v63 = vmul.f32 %v1625_v42, %v1698_v19  ;;  %v928_v30 = vsel %vm916_vm2, %v1672_v57, 0.0  ;;  %vm1009_vm5 = vcmp.lt.s32.totalorder %v1644_v48, 24 }
 0x2d3   : > { %v875_v45 = vadd.f32 %v872_v34, %v844_v59  ;;  %v876_v17 = vadd.f32 %v873_v53, %v845_v18  ;;  %v903_v9 = vmul.f32 %v1628_v43, %v1702_v11  ;;  %v904_v50 = vmul.f32 %v1628_v43, %v897_v36 }
 0x2d4   : > { %v874_v58 = vadd.f32 %v871_v63, %v843_v40  ;;  %v902_v37 = vmul.f32 %v1628_v43, %v1706_v35  ;;  %v959_v42 = vsel %vm947_vm3, %v1676_v4, 0.0  ;;  %v1025_v38 = vrot.slane %v1582_v26, %v790_v20 }
 0x2d5   : > { %v906_v3 = vadd.f32 %v903_v9, %v875_v45  ;;  %v907_v57 = vadd.f32 %v904_v50, %v876_v17  ;;  %v934_v19 = vmul.f32 %v1638_v46, %v1720_v54  ;;  %v935_v11 = vmul.f32 %v1638_v46, %v928_v30 }
 0x2d6   : > { %v905_v61 = vadd.f32 %v902_v37, %v874_v58  ;;  %v933_v5 = vmul.f32 %v1638_v46, %v1724_v55  ;;  %v990_v39 = vsel %vm978_vm4, %v1741_v13, 0.0  ;;  %vm1040_vm6 = vcmp.lt.s32.totalorder %v1034_v10, 24 }
 0x2d7   : > { %v937_v43 = vadd.f32 %v934_v19, %v906_v3  ;;  %v938_v4 = vadd.f32 %v935_v11, %v907_v57  ;;  %v965_v20 = vmul.f32 %v1641_v47, %v1746_v24  ;;  %v966_v35 = vmul.f32 %v1641_v47, %v959_v42 }
 0x2d8   : > { %v936_v60 = vadd.f32 %v933_v5, %v905_v61  ;;  %v964_v54 = vmul.f32 %v1641_v47, %v1750_v25  ;;  %v1021_v22 = vsel %vm1009_vm5, %v766_v16, 0.0  ;;  %v1056_v44 = vrot.slane %v1582_v26, %v828_v21 }
 0x2d9   : > { %v968_v46 = vadd.f32 %v965_v20, %v937_v43  ;;  %v969_v55 = vadd.f32 %v966_v35, %v938_v4  ;;  %v996_v13 = vmul.f32 %v994_v15, %v1754_v41  ;;  %v997_v27 = vmul.f32 %v994_v15, %v990_v39 }
 0x2da   : > { %v967_v6 = vadd.f32 %v964_v54, %v936_v60  ;;  %v995_v24 = vmul.f32 %v994_v15, %v1758_v49  ;;  %v1052_v32 = vsel %vm1040_vm6, %v804_v31, 0.0  ;;  %v1027_v47 = vmul.f32 %v1025_v38, %v1788_v14  ;;  %v1320_v49 = vld [vmem:[%s1925_s6] ss:$0 sm:$0xff]  ;;  %v1376_v54 = vld [vmem:[%s1928_s9 + $0x8] sm:$0xff]  }
 0x2db   : > { %v999_v23 = vadd.f32 %v996_v13, %v968_v46  ;;  %v1000_v10 = vadd.f32 %v997_v27, %v969_v55  ;;  %v1028_v25 = vmul.f32 %v1025_v38, %v1021_v22  ;;  %v1026_v16 = vmul.f32 %v1025_v38, %v1781_v51  ;;  %v1375_v60 = vld [vmem:[%s1928_s9] sm:$0xff]  }
 0x2dc   : > { %v998_v48 = vadd.f32 %v995_v24, %v967_v6  ;;  %v1058_v21 = vmul.f32 %v1056_v44, %v1802_v52  ;;  %v1059_v26 = vmul.f32 %v1056_v44, %v1052_v32  ;;  %v1057_v41 = vmul.f32 %v1056_v44, %v1808_v62  ;;  %1349 = vmatprep.subr.bf16.mxu1 %v1375_v60  ;;  %v1321_v55 = vld [vmem:[%s1926_s7] ss:$0 sm:$0xff] }
 0x2dd   : > { %v1030_v8 = vadd.f32 %v1027_v47, %v999_v23  ;;  %v1031_v28 = vadd.f32 %v1028_v25, %v1000_v10  ;;  %1350 = vmatpush3.bf16.msra.mxu1 %v1375_v60  ;;  %v1322_v24 = vld [vmem:[%s1927_s8] ss:$0 sm:$0xff] }
 0x2de   : > { %v1029_v29 = vadd.f32 %v1026_v16, %v998_v48  ;;  %1351 = vmatprep.subr.bf16.mxu1 %v1376_v54 }
 0x2df   : > { %v1061_v56 = vadd.f32 %v1058_v21, %v1030_v8  ;;  %v1062_v33 = vadd.f32 %v1059_v26, %v1031_v28 }
 0x2e0   : > { %v1060_v31 = vadd.f32 %v1057_v41, %v1029_v29 }
 0x2e1   : > { %v1071_v14 = vadd.f32 %v1320_v49, %v1061_v56  ;;  %v1072_v7 = vadd.f32 %v1320_v49, %v1062_v33  ;;  %1352 = vmatpush3.bf16.msra.mxu1 %v1376_v54 }
 0x2e2   : > { %v1070_v12 = vadd.f32 %v1320_v49, %v1060_v31 }
 0x2e3   : > { %v1074_v51 = vsel %vm393_vm0, %v1071_v14, 0.0  ;;  %v1076_v52 = vsel %vm393_vm0, %v1072_v7, 0.0 }
 0x2e4   : > { %v1073_v34 = vsel %vm393_vm0, %v1070_v12, 0.0 }
 0x2e5   : > { %v1075_v15 = vadd.f32 %v1074_v51, %v1073_v34 }
 0x2e7   : > { %v1077_v59 = vadd.f32 %v1076_v52, %v1075_v15  ;;  %v1326_v52 = vld [vmem:[%s1929_s10] ss:$0 sm:$0xff] }
 0x2e9   : > { %1078 = vadd.xlane.f32.xlu1 %v1077_v59 }
 0x376   : > { %v1079_v62 = vpop.xlane.xlu1 %1078 }
 0x377   : > { %v1080_v18 = vrot.slane %v1079_v62, 4 }
 0x379   : > { %v1081_v53 = vadd.f32 %v1080_v18, %v1079_v62 }
 0x37b   : > { %v1082_v36 = vrot.slane %v1081_v53, 2 }
 0x37d   : > { %v1083_v40 = vadd.f32 %v1082_v36, %v1081_v53 }
 0x37f   : > { %v1084_v63 = vrot.slane %v1083_v40, 1 }
 0x381   : > { %v1085_v30 = vadd.f32 %v1084_v63, %v1083_v40 }
 0x383   : > { %1358 = vpush %v1085_v30 }
 0x3b4   : > { %s1359_s24 = spop %1358 }
 0x3b5   : > { %s1089_s25 = smul.f32 0.0013020834, %s1359_s24 }
 0x3b7   : > { %v1090_v45 = vstv %s1089_s25 }
 0x3b8   : > { %v1091_v17 = vsub.f32 %v1070_v12, %v1090_v45  ;;  %v1092_v9 = vsub.f32 %v1071_v14, %v1090_v45  ;;  %v1093_v50 = vsub.f32 %v1072_v7, %v1090_v45 }
 0x3ba   : > { %v1094_v58 = vmul.f32 %v1091_v17, %v1091_v17  ;;  %v1095_v37 = vmul.f32 %v1092_v9, %v1092_v9  ;;  %v1096_v42 = vmul.f32 %v1093_v50, %v1093_v50 }
 0x3bc   : > { %v1097_v38 = vsel %vm393_vm0, %v1094_v58, 0.0  ;;  %v1098_v3 = vsel %vm393_vm0, %v1095_v37, 0.0  ;;  %v1100_v19 = vsel %vm393_vm0, %v1096_v42, 0.0 }
 0x3bd   : > { %v1099_v57 = vadd.f32 %v1098_v3, %v1097_v38 }
 0x3bf   : > { %v1101_v11 = vadd.f32 %v1100_v19, %v1099_v57 }
 0x3c1   : > { %1102 = vadd.xlane.f32.xlu0 %v1101_v11 }
 0x44e   : > { %v1103_v61 = vpop.xlane.xlu0 %1102 }
 0x44f   : > { %v1104_v5 = vrot.slane %v1103_v61, 4 }
 0x451   : > { %v1105_v39 = vadd.f32 %v1104_v5, %v1103_v61 }
 0x453   : > { %v1106_v43 = vrot.slane %v1105_v39, 2 }
 0x455   : > { %v1107_v4 = vadd.f32 %v1106_v43, %v1105_v39 }
 0x457   : > { %v1108_v20 = vrot.slane %v1107_v4, 1 }
 0x459   : > { %v1109_v35 = vadd.f32 %v1108_v20, %v1107_v4 }
 0x45b   : > { %1360 = vpush %v1109_v35 }
 0x48c   : > { %s1361_s30 = spop %1360 }
 0x48d   : > { %s1113_s12 = smul.f32 0.0013020834, %s1361_s30 }
 0x48f   : > { %s1114_s13 = sadd.f32 1e-05, %s1113_s12 }
 0x491   : > { %v1115_v22 = vstv %s1114_s13 }
 0x492   : > { %1395 = vrsqrt.f32 %v1115_v22 }
 0x49c   : > { %v1396_v44 = vpop.eup %1395 }
 0x49d   : > { %1362 = vpush %v1396_v44 }
 0x4ce   : > { %s1363_s14 = spop %1362 }
 0x4cf   : > { %v1118_v46 = vstv %s1363_s14 }
 0x4d0   : > { %v1119_v13 = vmul.f32 %v1118_v46, %v1091_v17  ;;  %v1120_v27 = vmul.f32 %v1118_v46, %v1092_v9  ;;  %v1121_v6 = vmul.f32 %v1118_v46, %v1093_v50 }
 0x4d2   : > { %v1129_v32 = vmul.f32 %v1321_v55, %v1119_v13  ;;  %v1130_v23 = vmul.f32 %v1321_v55, %v1120_v27  ;;  %v1131_v10 = vmul.f32 %v1321_v55, %v1121_v6 }
 0x4d4   : > { %v1141_v47 = vadd.f32 %v1322_v24, %v1131_v10  ;;  %v1139_v25 = vadd.f32 %v1322_v24, %v1129_v32  ;;  %v1140_v48 = vadd.f32 %v1322_v24, %v1130_v23 }
 0x4d6   : > { %v1325_v16 = vmul.f32 -1.442695, %v1141_v47  ;;  %v1323_v8 = vmul.f32 -1.442695, %v1139_v25  ;;  %v1324_v28 = vmul.f32 -1.442695, %v1140_v48 }
 0x4d8   : > { %1397 = vpow2.f32 %v1325_v16 }
 0x4d9   : > { %1399 = vpow2.f32 %v1323_v8 }
 0x4da   : > { %1401 = vpow2.f32 %v1324_v28 }
 0x4e2   : > { %v1398_v21 = vpop.eup %1397 }
 0x4e3   : > { %v1400_v26 = vpop.eup %1399  ;;  %v1153_v29 = vadd.f32 1.0, %v1398_v21 }
 0x4e4   : > { %v1402_v41 = vpop.eup %1401  ;;  %v1151_v56 = vadd.f32 1.0, %v1400_v26 }
 0x4e5   : > { %1403 = vrcp.f32 %v1153_v29  ;;  %v1152_v33 = vadd.f32 1.0, %v1402_v41 }
 0x4e6   : > { %1405 = vrcp.f32 %v1151_v56 }
 0x4e7   : > { %1407 = vrcp.f32 %v1152_v33 }
 0x4ef   : > { %v1404_v49 = vpop.eup %1403 }
 0x4f0   : > { %v1406_v31 = vpop.eup %1405  ;;  %v1162_v14 = vmul.f32 %v1404_v49, %v1141_v47 }
 0x4f1   : > { %v1408_v12 = vpop.eup %1407  ;;  %v1160_v7 = vmul.f32 %v1406_v31, %v1139_v25 }
 0x4f2   : > { %v1161_v51 = vmul.f32 %v1408_v12, %v1140_v48  ;;  %v1168_v34 = vpack.c.bf16 %v1162_v14, %v1162_v14 }
 0x4f4   : > { %v1167_v15 = vpack.c.bf16 %v1161_v51, %v1160_v7 }
 0x4f6   : > { %1353 = vmatprep.mubr.msk.bf16.mxu1 %vm393_vm0, %v1167_v15 }
 0x4f7   : > { %1354 = vmatmul.mubr.msk.bf16.vlgmr.msra.gmra.mrb[0].mxu1 %vm393_vm0, %v1168_v34 }
 0x5ca   : > { %v1355_v59 = vpop.f32.mrb[0].mxu1 }
 0x5cb   : > { %v1237_v62 = vadd.f32 %v1355_v59, %v1326_v52  ;;  %v1228_v18 = vpop.f32.mrb[1].mxu1 }
 0x5cc   : > { %v1229_v53 = vadd.f32 %v1326_v52, %v1228_v18  ;;  %v1356_v36 = vpop.f32.mrb[2].mxu1 }
 0x5cd   : > { %v1244_v40 = vadd.f32 %v1237_v62, %v1496_v1  ;;  %v1231_v63 = vpop.f32.mrb[3].mxu1 }
 0x5ce   : > { %v1242_v30 = vadd.f32 %v1229_v53, %v1494_v0  ;;  %v1232_v45 = vadd.f32 %v1326_v52, %v1231_v63 }
 0x5cf   : > { %1247 = vst.msk [vmem:[%s386_s26 + $0x10] sm:$0xff] %vm393_vm0, %v1244_v40 }
 0x5d0   : > { %1245 = vst.msk [vmem:[%s386_s26] sm:$0xff] %vm393_vm0, %v1242_v30  ;;  %v1243_v17 = vadd.f32 %v1232_v45, %v1498_v2 }
 0x5d2   : > { %1246 = vst.msk [vmem:[%s386_s26 + $0x8] sm:$0xff] %vm393_vm0, %v1243_v17 }
 0x5d3 PF: > { %s21_s17 = sadd.s32 1, %s1415_s17  }
 0x5d4   : > { %p18_p4 = scmp.ge.s32.totalorder %s21_s17, 4  }
 0x5d6   :  { %20 = sbr.rel (!%p18_p4) target bundleno = 1 (0x1), region = 94 }

// kernel: style_diffuser_run.22
= control target key start
LH: loop header
LB: loop body
LE: loop exit
PB: predicated region body
PF: predicated region fallthrough
CT: control target
= control target key end

     0   :  { %s2267_s0 = inlined_call_operand.vmem [shape: s32[2], index: 0, kind: input, shape index: {}]   ;;  %s2268_s1 = inlined_call_operand.vmem [shape: f32[2,24,32], index: 1, kind: input, shape index: {}]   ;;  %s2269_s2 = inlined_call_operand.vmem [shape: f32[1,32], index: 2, kind: input, shape index: {}]   ;;  %s2270_s3 = inlined_call_operand.vmem [shape: f32[1,32], index: 3, kind: input, shape index: {}]   ;;  %s2271_s4 = inlined_call_operand.vmem [shape: bf16[32,32], index: 4, kind: input, shape index: {}]   ;;  %s2272_s5 = inlined_call_operand.vmem [shape: bf16[32,32], index: 5, kind: input, shape index: {}]   ;;  %s2273_s6 = inlined_call_operand.vmem [shape: bf16[32,32], index: 6, kind: input, shape index: {}]   ;;  %s2274_s7 = inlined_call_operand.vmem [shape: f32[1,32], index: 7, kind: input, shape index: {}]   ;;  %s2275_s8 = inlined_call_operand.vmem [shape: f32[1,32], index: 8, kind: input, shape index: {}]   ;;  %s2276_s9 = inlined_call_operand.vmem [shape: f32[1,32], index: 9, kind: input, shape index: {}]   ;;  %s2277_s10 = inlined_call_operand.vmem [shape: bf16[32,32], index: 10, kind: input, shape index: {}]   ;;  %s2278_s11 = inlined_call_operand.vmem [shape: f32[1,32], index: 11, kind: input, shape index: {}]   ;;  %s2279_s12 = inlined_call_operand.vmem [shape: f32[2,24,32], index: 12, kind: output, shape index: {}]  }
   0x1   :  { %s17_s23 = sshll.u32 %s2267_s0, 4  ;;  %s18_s23 = int_to_ptr.vmem [resolvable:$true] %s17_s23 }
   0x2   :  { %s1858_s24 = scalar_lea.vmem %s18_s23, 16  ;;  %p1863_p1 = scmp.lt.s32.totalorder %s18_s23, %s18_s23 }
   0x3   :  { %p1859_p0 = scmp.ne.s32.totalorder %s18_s23, %s1858_s24  ;;  %p1864_p2 = scmp.lt.s32.totalorder %s1858_s24, %s1858_s24 }
   0x5   :  { %p1865_p3 = por %p1864_p2, %p1863_p1 }
   0x7   :  { %p1866_p4 = pnand %p1865_p3, %p1859_p0 }
   0x9   :  { %1869 = shalt.err (!%p1866_p4)  }
   0xa   :  { %s1880_s25 = smov [#allocation3]  }
   0xb   :  { %20 = dma.vmem_to_smem %s18_s23, 16, %s1880_s25, [#allocation2] }
   0xc   :  { %1874 = dma.done.wait [#allocation2], 16 }
   0xd   :  { %1875 = vsyncadd [#allocation2], 4294967280 }
   0xe   :  { %22 = sfence }
   0xf   :  { %s1955_s26 = smov 0  }
  0x10 LB: > { %s1961_s0 = sadd.s32 4294967295, %s1878_s26   ;;  %p1566_p5 = scmp.ge.s32.totalorder %s1878_s26, 1  ;;  %s1878_s26 = sphi %s1955_s26, %s28_s26  }
  0x11   : > { %p344_p6 = scmp.lt.s32.totalorder %s1878_s26, 3 }
  0x13   : > { %p345_p7 = pnand %p1566_p5, %p344_p6 }
  0x14   : > { %p384_p8 = scmp.lt.s32.totalorder (!%p345_p7), %s1961_s0, 1  ;;  %vm401_vm0 = vcmask (!%p345_p7), 261120   ;;  %v1796_v21 = vld [vmem:[%s2271_s4] sm:$0xff] (!%p345_p7)   ;;  %v1798_v23 = vld [vmem:[%s2271_s4 + $0x8] sm:$0xff] (!%p345_p7)   ;;  %vm691_vm1 = vcmask (!%p345_p7), 64512   ;;  %vm799_vm2 = vcmask (!%p345_p7), 1043456  }
  0x15   : > { %348 = sbr.rel (%p345_p7) target bundleno = 2718 (0xa9e), region = 64  ;;  %v1797_v22 = vld [vmem:[%s2272_s5] sm:$0xff] (!%p345_p7)   ;;  %v1799_v24 = vld [vmem:[%s2272_s5 + $0x8] sm:$0xff] (!%p345_p7)   ;;  %1657 = vmatprep.subr.bf16.mxu0 (!%p345_p7), %v1796_v21  ;;  %s395_s21 = sld [smem:[#allocation3 + %s1961_s0]] (!%p345_p7)  ;;  %vm760_vm4 = vcmask (!%p345_p7), 195584   ;;  %vm1412_vm5 = vcmask (!%p345_p7), 130048  }
  0x16   : > { %1665 = vmatprep.subr.bf16.mxu1 (!%p345_p7), %v1797_v22  ;;  %1658 = vmatpush3.bf16.msra.mxu0 (!%p345_p7), %v1796_v21  ;;  %v1800_v25 = vld [vmem:[%s2273_s6] sm:$0xff] (!%p345_p7)   ;;  %v1801_v51 = vld [vmem:[%s2273_s6 + $0x8] sm:$0xff] (!%p345_p7)   ;;  %s1882_s22 = smov (!%p345_p7), 112   ;;  %s1883_s23 = smov (!%p345_p7), 104  }
  0x17   : > { %1666 = vmatpush3.bf16.msra.mxu1 (!%p345_p7), %v1797_v22  ;;  %1659 = vmatprep.subr.bf16.mxu0 (!%p345_p7), %v1798_v23  ;;  %v1569_v37 = vld [vmem:[%s2269_s2] ss:$0 sm:$0xff] (!%p345_p7)  ;;  %s1884_s24 = smov (!%p345_p7), 8   ;;  %s1885_s25 = smov (!%p345_p7), 16  }
  0x18   : > { %1667 = vmatprep.subr.bf16.mxu1 (!%p345_p7), %v1799_v24  ;;  %v1570_v43 = vld [vmem:[%s2270_s3] ss:$0 sm:$0xff] (!%p345_p7)  ;;  %s1886_s15 = smov (!%p345_p7), 24  }
  0x19   : > { %v1576_v54 = vld [vmem:[%s2275_s8] ss:$0 sm:$0xff] (!%p345_p7) }
  0x1a   : > { %1660 = vmatpush3.bf16.msra.mxu0 (!%p345_p7), %v1798_v23  ;;  %v1571_v55 = vld [vmem:[%s2274_s7] ss:$0 sm:$0xff] (!%p345_p7) }
  0x1b   : > { %1668 = vmatpush3.bf16.msra.mxu1 (!%p345_p7), %v1799_v24  ;;  %1673 = vmatprep.subr.bf16.mxu0 (!%p345_p7), %v1800_v25  ;;  %v681_v24 = vlaneseq (!%p345_p7) }
  0x1c   : > { %s1967_s27 = scalar_select %p384_p8, %s1961_s0, 1 }
  0x1d   : > { %s1881_s0 = smov 120  }
  0x1e   : > { %s1765_s28 = smul.u32 24, %s1967_s27 }
  0x20   : > { %s388_s13 = scalar_lea.vmem %s2268_s1, %s1765_s28  ;;  %s393_s20 = scalar_lea.vmem %s2279_s12, %s1765_s28 }
  0x21   : > { %v1975_v0 = vld [vmem:[%s388_s13] sm:$0xff]  ;;  %v1977_v1 = vld [vmem:[%s388_s13 + $0x10] sm:$0xff]  ;;  %v1979_v2 = vld [vmem:[%s388_s13 + $0x8] sm:$0xff] }
  0x22   : > { %v402_v3 = vsel %vm401_vm0, %v1975_v0, 0.0  ;;  %v408_v4 = vsel %vm401_vm0, %v1977_v1, 0.0  ;;  %v405_v5 = vsel %vm401_vm0, %v1979_v2, 0.0 }
  0x23   : > { %403 = vadd.xlane.f32.xlu0 %v402_v3  ;;  %409 = vadd.xlane.f32.xlu1 %v408_v4 }
  0x27   : > { %406 = vadd.xlane.f32.xlu0 %v405_v5 }
  0xb0   : > { %v404_v6 = vpop.xlane.xlu0 %403  ;;  %v410_v7 = vpop.xlane.xlu1 %409 }
  0xb1   : > { %v412_v8 = vmul.f32 0.03125, %v404_v6  ;;  %v414_v9 = vmul.f32 0.03125, %v410_v7 }
  0xb3   : > { %v415_v10 = vsub.f32 %v1975_v0, %v412_v8  ;;  %v417_v11 = vsub.f32 %v1977_v1, %v414_v9 }
  0xb4   : > { %v407_v12 = vpop.xlane.xlu0 %406 }
  0xb5   : > { %v413_v13 = vmul.f32 0.03125, %v407_v12  ;;  %v418_v14 = vmul.f32 %v415_v10, %v415_v10  ;;  %v420_v15 = vmul.f32 %v417_v11, %v417_v11 }
  0xb7   : > { %v416_v16 = vsub.f32 %v1979_v2, %v413_v13  ;;  %v421_v17 = vsel %vm401_vm0, %v418_v14, 0.0  ;;  %v427_v18 = vsel %vm401_vm0, %v420_v15, 0.0 }
  0xb8   : > { %422 = vadd.xlane.f32.xlu1 %v421_v17 }
  0xb9   : > { %v419_v19 = vmul.f32 %v416_v16, %v416_v16 }
  0xbb   : > { %v424_v20 = vsel %vm401_vm0, %v419_v19, 0.0 }
  0xbc   : > { %428 = vadd.xlane.f32.xlu1 %v427_v18  ;;  %425 = vadd.xlane.f32.xlu0 %v424_v20 }
 0x145   : > { %v423_v26 = vpop.xlane.xlu1 %422 }
 0x146   : > { %v430_v27 = vmul.f32 0.03125, %v423_v26  ;;  %v683_v26 = vstv %s395_s21 }
 0x148   : > { %v433_v28 = vadd.f32 1e-05, %v430_v27 }
 0x149   : > { %v429_v29 = vpop.xlane.xlu1 %428  ;;  %v426_v30 = vpop.xlane.xlu0 %425 }
 0x14a   : > { %1804 = vrsqrt.f32 %v433_v28  ;;  %v432_v31 = vmul.f32 0.03125, %v429_v29  ;;  %v431_v32 = vmul.f32 0.03125, %v426_v30 }
 0x14c   : > { %v435_v33 = vadd.f32 1e-05, %v432_v31  ;;  %v434_v34 = vadd.f32 1e-05, %v431_v32 }
 0x14e   : > { %1806 = vrsqrt.f32 %v435_v33 }
 0x14f   : > { %1808 = vrsqrt.f32 %v434_v34 }
 0x154   : > { %v1805_v35 = vpop.eup %1804 }
 0x155   : > { %v439_v36 = vmul.f32 %v1805_v35, %v415_v10 }
 0x157   : > { %v448_v42 = vmul.f32 %v1569_v37, %v439_v36 }
 0x158   : > { %v1807_v38 = vpop.eup %1806 }
 0x159   : > { %v1809_v39 = vpop.eup %1808  ;;  %v441_v40 = vmul.f32 %v1807_v38, %v417_v11  ;;  %v457_v47 = vadd.f32 %v1570_v43, %v448_v42  ;;  %v1581_v11 = vld [vmem:[%s2276_s9] ss:$0 sm:$0xff] }
 0x15a   : > { %v440_v41 = vmul.f32 %v1809_v39, %v416_v16 }
 0x15b   : > { %v450_v44 = vmul.f32 %v1569_v37, %v441_v40 }
 0x15c   : > { %v449_v45 = vmul.f32 %v1569_v37, %v440_v41 }
 0x15d   : > { %v459_v46 = vadd.f32 %v1570_v43, %v450_v44 }
 0x15e   : > { %v458_v48 = vadd.f32 %v1570_v43, %v449_v45 }
 0x15f   : > { %v461_v49 = vpack.c.bf16 %v459_v46, %v459_v46 }
 0x160   : > { %v460_v50 = vpack.c.bf16 %v458_v48, %v457_v47 }
 0x162   : > { %1661 = vmatprep.mubr.msk.bf16.mxu0 %vm401_vm0, %v460_v50  ;;  %1669 = vmatprep.mubr.msk.bf16.mxu1 %vm401_vm0, %v460_v50 }
 0x163   : > { %1662 = vmatmul.mubr.msk.bf16.vlgmr.msra.gmra.mrb[0].mxu0 %vm401_vm0, %v461_v49  ;;  %1670 = vmatmul.mubr.msk.bf16.vlgmr.msra.gmra.mrb[0].mxu1 %vm401_vm0, %v461_v49 }
 0x164   : > { %1674 = vmatpush3.bf16.msra.mxu0 %v1800_v25  ;;  %1677 = vmatprep.mubr.msk.bf16.mxu0 %vm401_vm0, %v460_v50  ;;  %v682_v25 = vand.u32 127, %v681_v24 }
 0x165   : > { %1675 = vmatprep.subr.bf16.mxu0 %v1801_v51 }
 0x166   : > { %vm2063_vm3 = vcmp.lt.s32.totalorder %v682_v25, %v683_v26 }
 0x168   : > { %1676 = vmatpush3.bf16.msra.mxu0 %v1801_v51 }
 0x16b   : > { %1678 = vmatmul.mubr.msk.bf16.vlgmr.msra.gmra.mrb[4].mxu0 %vm401_vm0, %v461_v49 }
 0x236   : > { %v1663_v52 = vpop.f32.mrb[0].mxu0  ;;  %v1671_v53 = vpop.f32.mrb[0].mxu1 }
 0x237   : > { %v525_v56 = vpop.f32.mrb[1].mxu0  ;;  %v596_v57 = vpop.f32.mrb[1].mxu1  ;;  %v605_v60 = vadd.f32 %v1671_v53, %v1576_v54  ;;  %v534_v21 = vadd.f32 %v1663_v52, %v1571_v55 }
 0x238   : > { %v1664_v58 = vpop.f32.mrb[2].mxu0  ;;  %v1672_v59 = vpop.f32.mrb[2].mxu1  ;;  %v526_v63 = vadd.f32 %v1571_v55, %v525_v56  ;;  %v597_v3 = vadd.f32 %v1576_v54, %v596_v57 }
 0x239   : > { %v528_v61 = vpop.f32.mrb[3].mxu0  ;;  %v599_v62 = vpop.f32.mrb[3].mxu1  ;;  %v2033_v8 = vpack.c.bf16 %v605_v60, %v605_v60  ;;  %v2058_v23 = vpack.c.bf16 %v534_v21, %v534_v21 }
 0x23a   : > { %v529_v4 = vadd.f32 %v1571_v55, %v528_v61  ;;  %v600_v5 = vadd.f32 %v1576_v54, %v599_v62 }
 0x23b   : > { %v702_v20 = vsel %vm691_vm1, %v2033_v8, 0 }
 0x23c   : > { %v2029_v6 = vpack.c.bf16 %v529_v4, %v526_v63  ;;  %v2031_v7 = vpack.c.bf16 %v600_v5, %v597_v3 }
 0x23e   : > { %v1679_v9 = vpop.f32.mrb[4].mxu0  ;;  %1753 = vmatprep.subr.msk.bf16.mxu1 %vm691_vm1, %v2031_v7  ;;  %1685 = vmatprep.mubr.msk.bf16.mxu1 %vm691_vm1, %v2029_v6  ;;  %v699_v10 = vsel %vm691_vm1, %v2031_v7, 0 }
 0x23f   : > { %v667_v12 = vpop.f32.mrb[5].mxu0  ;;  %1682 = vmatpush3.bf16.xpose.msra.mxu1 %v699_v10  ;;  %v676_v15 = vadd.f32 %v1679_v9, %v1581_v11 }
 0x240   : > { %v1680_v13 = vpop.f32.mrb[6].mxu0  ;;  %1754 = vmatprep.subr.msk.bf16.mxu1 %vm691_vm1, %v2033_v8  ;;  %v668_v16 = vadd.f32 %v1581_v11, %v667_v12 }
 0x241   : > { %v670_v14 = vpop.f32.mrb[7].mxu0  ;;  %v2048_v19 = vpack.c.bf16 %v676_v15, %v676_v15 }
 0x242   : > { %v671_v17 = vadd.f32 %v1581_v11, %v670_v14 }
 0x243   : > { %v801_v22 = vsel %vm799_vm2, %v2048_v19, 0 }
 0x244   : > { %v2046_v18 = vpack.c.bf16 %v671_v17, %v668_v16 }
 0x246   : > { %1689 = vmatprep.subr.bf16.mxu0 %v2046_v18 }
 0x247   : > { %1684 = vmatpush3.bf16.xpose.msra.mxu1 %v702_v20  ;;  %1690 = vmatpush3.bf16.msra.mxu0 %v2046_v18 }
 0x248   : > { %1755 = vmatprep.subr.msk.bf16.mxu0 %vm799_vm2, %v2048_v19 }
 0x24b   : > { %1692 = vmatpush3.bf16.msra.mxu0 %v801_v22 }
 0x24e   : > { %1686 = vmatmul.mubr.msk.bf16.vlgmr.msra.gmra.mrb[4].mxu1 %vm691_vm1, %v2058_v23 }
 0x321   : > { %v1687_v27 = vpop.f32.mrb[4].mxu1 }
 0x322   : > { %v738_v28 = vpop.f32.mrb[5].mxu1  ;;  %v754_v30 = vmul.f32 0.35355338, %v1687_v27 }
 0x323   : > { %v752_v31 = vmul.f32 0.35355338, %v738_v28  ;;  %v1688_v32 = vpop.f32.mrb[6].mxu1 }
 0x324   : > { %v741_v33 = vpop.f32.mrb[7].mxu1  ;;  %v759_v38 = vsel %vm2063_vm3, %v754_v30, -1e+30 }
 0x325   : > { %v753_v34 = vmul.f32 0.35355338, %v741_v33  ;;  %v757_v35 = vsel %vm2063_vm3, %v752_v31, -1e+30  ;;  %v767_v40 = vsel %vm760_vm4, %v759_v38, -inf }
 0x326   : > { %v761_v36 = vsel %vm760_vm4, %v757_v35, -inf }
 0x327   : > { %762 = vmax.xlane.f32.xlu0 %v761_v36  ;;  %v758_v37 = vsel %vm2063_vm3, %v753_v34, -1e+30 }
 0x328   : > { %v764_v39 = vsel %vm760_vm4, %v758_v37, -inf }
 0x329   : > { %765 = vmax.xlane.f32.xlu1 %v764_v39 }
 0x32b   : > { %768 = vmax.xlane.f32.xlu0 %v767_v40 }
 0x33a   : > { %862 = vrot.lane.b32.xlu1 %v2031_v7, %s1881_s0 }
 0x33e   : > { %856 = vrot.lane.b32.xlu1 %v2029_v6, %s1881_s0 }
 0x341   : > { %864 = vrot.lane.b32.xlu0 %v2033_v8, %s1881_s0 }
 0x342   : > { %858 = vrot.lane.b32.xlu1 %v2058_v23, %s1881_s0 }
 0x3b4   : > { %v763_v41 = vpop.xlane.xlu0 %762 }
 0x3b5   : > { %v770_v42 = vsub.f32 %v757_v35, %v763_v41 }
 0x3b6   : > { %v766_v43 = vpop.xlane.xlu1 %765 }
 0x3b7   : > { %v773_v44 = vmul.f32 1.442695, %v770_v42  ;;  %v771_v45 = vsub.f32 %v758_v37, %v766_v43 }
 0x3b8   : > { %v769_v46 = vpop.xlane.xlu0 %768 }
 0x3b9   : > { %v775_v47 = vmul.f32 1.442695, %v771_v45  ;;  %v772_v48 = vsub.f32 %v759_v38, %v769_v46  ;;  %1810 = vpow2.f32 %v773_v44 }
 0x3ba   : > { %v863_v49 = vpop.permute.xlu1 %862 }
 0x3bb   : > { %1812 = vpow2.f32 %v775_v47  ;;  %v777_v50 = vmul.f32 1.442695, %v772_v48  ;;  %1756 = vmatprep.subr.msk.bf16.mxu0 %vm691_vm1, %v863_v49  ;;  %v873_v56 = vsel %vm691_vm1, %v863_v49, 0 }
 0x3bc   : > { %v865_v58 = vpop.permute.xlu0 %864 }
 0x3bd   : > { %1814 = vpow2.f32 %v777_v50  ;;  %v876_v59 = vsel %vm691_vm1, %v865_v58, 0 }
 0x3be   : > { %v857_v57 = vpop.permute.xlu1 %856 }
 0x3c2   : > { %v859_v60 = vpop.permute.xlu1 %858 }
 0x3c3   : > { %v2085_v51 = vpop.eup %1810 }
 0x3c5   : > { %v2087_v52 = vpop.eup %1812 }
 0x3c6   : > { %v791_v53 = vpack.c.bf16 %v2087_v52, %v2085_v51 }
 0x3c7   : > { %v2091_v54 = vpop.eup %1814 }
 0x3c8   : > { %1693 = vmatprep.mubr.msk.bf16.mxu0 %vm760_vm4, %v791_v53  ;;  %v792_v55 = vpack.c.bf16 %v2091_v54, %v2091_v54 }
 0x3ca   : > { %1694 = vmatmul.mubr.msk.bf16.vlgmr.msra.gmra.mrb[8].mxu0 %vm760_vm4, %v792_v55 }
 0x3cb   : > { %1698 = vmatpush3.bf16.xpose.msra.mxu0 %v873_v56  ;;  %1701 = vmatprep.mubr.msk.bf16.mxu0 %vm691_vm1, %v857_v57 }
 0x3cc   : > { %1757 = vmatprep.subr.msk.bf16.mxu0 %vm691_vm1, %v865_v58 }
 0x3d3   : > { %1700 = vmatpush3.bf16.xpose.msra.mxu0 %v876_v59 }
 0x3da   : > { %1702 = vmatmul.mubr.msk.bf16.vlgmr.msra.gmra.mrb[12].mxu0 %vm691_vm1, %v859_v60 }
 0x49d   : > { %v2102_v61 = vpop.f32.mrb[8].mxu0 }
 0x49e   : > { %v2104_v62 = vpop.f32.mrb[9].mxu0 }
 0x49f   : > { %v1696_v63 = vpop.f32.mrb[10].mxu0 }
 0x4a0   : > { %v2106_v3 = vpop.f32.mrb[11].mxu0 }
 0x4ad   : > { %v1703_v4 = vpop.f32.mrb[12].mxu0 }
 0x4ae   : > { %v928_v5 = vmul.f32 0.35355338, %v1703_v4  ;;  %v912_v9 = vpop.f32.mrb[13].mxu0 }
 0x4af   : > { %v926_v10 = vmul.f32 0.35355338, %v912_v9  ;;  %v1704_v11 = vpop.f32.mrb[14].mxu0 }
 0x4b0   : > { %v915_v12 = vpop.f32.mrb[15].mxu0  ;;  %v931_v13 = vsel %vm2063_vm3, %v928_v5, -1e+30 }
 0x4b1   : > { %v927_v14 = vmul.f32 0.35355338, %v915_v12  ;;  %v938_v15 = vsel %vm760_vm4, %v931_v13, -inf  ;;  %v929_v16 = vsel %vm2063_vm3, %v926_v10, -1e+30 }
 0x4b2   : > { %939 = vmax.xlane.f32.xlu0 %v938_v15  ;;  %v932_v17 = vsel %vm760_vm4, %v929_v16, -inf }
 0x4b3   : > { %933 = vmax.xlane.f32.xlu1 %v932_v17  ;;  %v930_v20 = vsel %vm2063_vm3, %v927_v14, -1e+30 }
 0x4b4   : > { %v935_v21 = vsel %vm760_vm4, %v930_v20, -inf }
 0x4b6   : > { %936 = vmax.xlane.f32.xlu0 %v935_v21 }
 0x4c4   : > { %968 = vrot.lane.b32.xlu1 %v2048_v19, %s1881_s0 }
 0x4c8   : > { %1035 = vrot.lane.b32.xlu1 %v2031_v7, %s1882_s22 }
 0x4cc   : > { %1037 = vrot.lane.b32.xlu1 %v2033_v8, %s1882_s22  ;;  %966 = vrot.lane.b32.xlu0 %v2046_v18, %s1881_s0 }
 0x4d0   : > { %1033 = vrot.lane.b32.xlu1 %v2058_v23, %s1882_s22  ;;  %1031 = vrot.lane.b32.xlu0 %v2029_v6, %s1882_s22 }
 0x4d4   : > { %1139 = vrot.lane.b32.xlu1 %v2048_v19, %s1882_s22 }
 0x53f   : > { %v940_v22 = vpop.xlane.xlu0 %939 }
 0x540   : > { %v943_v24 = vsub.f32 %v931_v13, %v940_v22  ;;  %v934_v25 = vpop.xlane.xlu1 %933 }
 0x541   : > { %v941_v26 = vsub.f32 %v929_v16, %v934_v25 }
 0x542   : > { %v948_v27 = vmul.f32 1.442695, %v943_v24 }
 0x543   : > { %v944_v28 = vmul.f32 1.442695, %v941_v26  ;;  %v937_v30 = vpop.xlane.xlu0 %936 }
 0x544   : > { %v942_v31 = vsub.f32 %v930_v20, %v937_v30  ;;  %1816 = vpow2.f32 %v948_v27  ;;  %v969_v33 = vpop.permute.xlu1 %968 }
 0x545   : > { %1818 = vpow2.f32 %v944_v28  ;;  %v978_v35 = vsel %vm799_vm2, %v969_v33, 0 }
 0x546   : > { %v946_v32 = vmul.f32 1.442695, %v942_v31 }
 0x547   : > { %v967_v34 = vpop.permute.xlu0 %966 }
 0x548   : > { %1820 = vpow2.f32 %v946_v32  ;;  %1705 = vmatprep.subr.bf16.mxu1 %v967_v34  ;;  %v1036_v36 = vpop.permute.xlu1 %1035 }
 0x549   : > { %1706 = vmatpush3.bf16.msra.mxu1 %v967_v34  ;;  %v1046_v42 = vsel %vm691_vm1, %v1036_v36, 0 }
 0x54a   : > { %1758 = vmatprep.subr.msk.bf16.mxu1 %vm799_vm2, %v969_v33 }
 0x54b   : > { %v1032_v43 = vpop.permute.xlu0 %1031 }
 0x54c   : > { %v1038_v44 = vpop.permute.xlu1 %1037 }
 0x54d   : > { %1708 = vmatpush3.bf16.msra.mxu1 %v978_v35  ;;  %v1049_v45 = vsel %vm691_vm1, %v1038_v44, 0 }
 0x54e   : > { %1759 = vmatprep.subr.msk.bf16.mxu1 %vm691_vm1, %v1036_v36  ;;  %v2134_v37 = vpop.eup %1816 }
 0x54f   : > { %v2136_v38 = vpop.eup %1818  ;;  %v963_v41 = vpack.c.bf16 %v2134_v37, %v2134_v37 }
 0x550   : > { %v1034_v46 = vpop.permute.xlu1 %1033 }
 0x552   : > { %v2138_v39 = vpop.eup %1820 }
 0x553   : > { %v962_v40 = vpack.c.bf16 %v2138_v39, %v2136_v38 }
 0x554   : > { %v1140_v12 = vpop.permute.xlu1 %1139 }
 0x555   : > { %1709 = vmatprep.mubr.msk.bf16.mxu1 %vm760_vm4, %v962_v40 }
 0x556   : > { %1710 = vmatmul.mubr.msk.bf16.vlgmr.msra.gmra.mrb[8].mxu1 %vm760_vm4, %v963_v41 }
 0x557   : > { %1714 = vmatpush3.bf16.xpose.msra.mxu1 %v1046_v42  ;;  %1717 = vmatprep.mubr.msk.bf16.mxu1 %vm691_vm1, %v1032_v43 }
 0x558   : > { %1760 = vmatprep.subr.msk.bf16.mxu1 %vm691_vm1, %v1038_v44 }
 0x55f   : > { %1716 = vmatpush3.bf16.xpose.msra.mxu1 %v1049_v45 }
 0x566   : > { %1718 = vmatmul.mubr.msk.bf16.vlgmr.msra.gmra.mrb[12].mxu1 %vm691_vm1, %v1034_v46 }
 0x629   : > { %v2151_v47 = vpop.f32.mrb[8].mxu1 }
 0x62a   : > { %v2153_v48 = vpop.f32.mrb[9].mxu1 }
 0x62b   : > { %v1712_v49 = vpop.f32.mrb[10].mxu1 }
 0x62c   : > { %v2155_v50 = vpop.f32.mrb[11].mxu1 }
 0x639   : > { %v1719_v53 = vpop.f32.mrb[12].mxu1 }
 0x63a   : > { %v1101_v55 = vmul.f32 0.35355338, %v1719_v53  ;;  %v1085_v56 = vpop.f32.mrb[13].mxu1 }
 0x63b   : > { %v1099_v57 = vmul.f32 0.35355338, %v1085_v56  ;;  %v1720_v58 = vpop.f32.mrb[14].mxu1 }
 0x63c   : > { %v1088_v59 = vpop.f32.mrb[15].mxu1  ;;  %v1104_v60 = vsel %vm2063_vm3, %v1101_v55, -1e+30 }
 0x63d   : > { %v1100_v63 = vmul.f32 0.35355338, %v1088_v59  ;;  %v1111_v4 = vsel %vm760_vm4, %v1104_v60, -inf  ;;  %v1102_v5 = vsel %vm2063_vm3, %v1099_v57, -1e+30 }
 0x63e   : > { %1112 = vmax.xlane.f32.xlu0 %v1111_v4  ;;  %v1105_v11 = vsel %vm760_vm4, %v1102_v5, -inf  ;;  %v953_v4 = vsel %vm760_vm4, %v2138_v39, 0.0 }
 0x63f   : > { %v1103_v9 = vsel %vm2063_vm3, %v1100_v63, -1e+30  ;;  %v950_v63 = vsel %vm760_vm4, %v2136_v38, 0.0 }
 0x640   : > { %v1108_v10 = vsel %vm760_vm4, %v1103_v9, -inf }
 0x641   : > { %1109 = vmax.xlane.f32.xlu1 %v1108_v10 }
 0x642   : > { %1106 = vmax.xlane.f32.xlu0 %v1105_v11 }
 0x652   : > { %1206 = vrot.lane.b32.xlu1 %v2031_v7, %s1883_s23 }
 0x656   : > { %1202 = vrot.lane.b32.xlu1 %v2029_v6, %s1883_s23 }
 0x658   : > { %1137 = vrot.lane.b32.xlu0 %v2046_v18, %s1882_s22 }
 0x65c   : > { %1208 = vrot.lane.b32.xlu0 %v2033_v8, %s1883_s23  ;;  %v1149_v8 = vsel %vm799_vm2, %v1140_v12, 0 }
 0x660   : > { %1204 = vrot.lane.b32.xlu0 %v2058_v23, %s1883_s23 }
 0x6cb   : > { %v1113_v13 = vpop.xlane.xlu0 %1112 }
 0x6cc   : > { %v1116_v14 = vsub.f32 %v1104_v60, %v1113_v13 }
 0x6ce   : > { %v1121_v15 = vmul.f32 1.442695, %v1116_v14  ;;  %v1110_v16 = vpop.xlane.xlu1 %1109 }
 0x6cf   : > { %v1115_v17 = vsub.f32 %v1103_v9, %v1110_v16  ;;  %v1107_v20 = vpop.xlane.xlu0 %1106 }
 0x6d0   : > { %v1114_v7 = vsub.f32 %v1102_v5, %v1107_v20  ;;  %1822 = vpow2.f32 %v1121_v15  ;;  %v956_v5 = vsel %vm760_vm4, %v2134_v37, 0.0 }
 0x6d1   : > { %v1119_v21 = vmul.f32 1.442695, %v1115_v17 }
 0x6d2   : > { %v1117_v6 = vmul.f32 1.442695, %v1114_v7  ;;  %v1207_v23 = vpop.permute.xlu1 %1206 }
 0x6d3   : > { %1824 = vpow2.f32 %v1119_v21  ;;  %v1138_v22 = vpop.permute.xlu0 %1137  ;;  %v1217_v30 = vsel %vm691_vm1, %v1207_v23, 0 }
 0x6d4   : > { %1826 = vpow2.f32 %v1117_v6  ;;  %1721 = vmatprep.subr.bf16.mxu0 %v1138_v22 }
 0x6d5   : > { %1722 = vmatpush3.bf16.msra.mxu0 %v1138_v22 }
 0x6d6   : > { %1761 = vmatprep.subr.msk.bf16.mxu0 %vm799_vm2, %v1140_v12  ;;  %v1203_v31 = vpop.permute.xlu1 %1202 }
 0x6d7   : > { %v1209_v32 = vpop.permute.xlu0 %1208 }
 0x6d8   : > { %v1220_v33 = vsel %vm691_vm1, %v1209_v32, 0 }
 0x6d9   : > { %1724 = vmatpush3.bf16.msra.mxu0 %v1149_v8 }
 0x6da   : > { %1762 = vmatprep.subr.msk.bf16.mxu0 %vm691_vm1, %v1207_v23  ;;  %v1823_v24 = vpop.eup %1822 }
 0x6db   : > { %v1136_v28 = vpack.c.bf16 %v1823_v24, %v1823_v24  ;;  %v1205_v34 = vpop.permute.xlu0 %1204 }
 0x6dd   : > { %v1825_v25 = vpop.eup %1824 }
 0x6de   : > { %v1827_v26 = vpop.eup %1826 }
 0x6df   : > { %v1135_v27 = vpack.c.bf16 %v1825_v25, %v1827_v26  ;;  %v1123_v29 = vsel %vm760_vm4, %v1827_v26, 0.0  ;;  %v782_v26 = vsel %vm760_vm4, %v2087_v52, 0.0 }
 0x6e1   : > { %1725 = vmatprep.mubr.msk.bf16.mxu0 %vm760_vm4, %v1135_v27  ;;  %v785_v27 = vsel %vm760_vm4, %v2091_v54, 0.0 }
 0x6e2   : > { %1726 = vmatmul.mubr.msk.bf16.vlgmr.msra.gmra.mrb[16].mxu0 %vm760_vm4, %v1136_v28 }
 0x6e3   : > { %1730 = vmatpush3.bf16.xpose.msra.mxu0 %v1217_v30  ;;  %1733 = vmatprep.mubr.msk.bf16.mxu0 %vm691_vm1, %v1203_v31 }
 0x6e4   : > { %1763 = vmatprep.subr.msk.bf16.mxu0 %vm691_vm1, %v1209_v32 }
 0x6eb   : > { %1732 = vmatpush3.bf16.xpose.msra.mxu0 %v1220_v33 }
 0x6f2   : > { %1734 = vmatmul.mubr.msk.bf16.vlgmr.msra.gmra.mrb[20].mxu0 %vm691_vm1, %v1205_v34 }
 0x7b5   : > { %v2186_v35 = vpop.f32.mrb[16].mxu0 }
 0x7b6   : > { %v2188_v36 = vpop.f32.mrb[17].mxu0 }
 0x7b7   : > { %v1728_v40 = vpop.f32.mrb[18].mxu0 }
 0x7b8   : > { %v2190_v41 = vpop.f32.mrb[19].mxu0 }
 0x7c5   : > { %v1735_v42 = vpop.f32.mrb[20].mxu0 }
 0x7c6   : > { %v1272_v43 = vmul.f32 0.35355338, %v1735_v42  ;;  %v1256_v44 = vpop.f32.mrb[21].mxu0 }
 0x7c7   : > { %v1270_v45 = vmul.f32 0.35355338, %v1256_v44  ;;  %v1736_v46 = vpop.f32.mrb[22].mxu0 }
 0x7c8   : > { %v1259_v49 = vpop.f32.mrb[23].mxu0  ;;  %v1275_v53 = vsel %vm2063_vm3, %v1272_v43, -1e+30 }
 0x7c9   : > { %v1271_v55 = vmul.f32 0.35355338, %v1259_v49  ;;  %v1282_v56 = vsel %vm760_vm4, %v1275_v53, -inf  ;;  %v1273_v57 = vsel %vm2063_vm3, %v1270_v45, -1e+30 }
 0x7ca   : > { %1283 = vmax.xlane.f32.xlu0 %v1282_v56  ;;  %v1276_v58 = vsel %vm760_vm4, %v1273_v57, -inf }
 0x7cb   : > { %1277 = vmax.xlane.f32.xlu1 %v1276_v58  ;;  %v1274_v59 = vsel %vm2063_vm3, %v1271_v55, -1e+30 }
 0x7cc   : > { %v1279_v60 = vsel %vm760_vm4, %v1274_v59, -inf }
 0x7ce   : > { %1280 = vmax.xlane.f32.xlu0 %v1279_v60 }
 0x7dc   : > { %1310 = vrot.lane.b32.xlu1 %v2048_v19, %s1883_s23  ;;  %v1129_v19 = vsel %vm760_vm4, %v1823_v24, 0.0 }
 0x7e4   : > { %1308 = vrot.lane.b32.xlu0 %v2046_v18, %s1883_s23  ;;  %v1126_v18 = vsel %vm760_vm4, %v1825_v25, 0.0  ;;  %v779_v25 = vsel %vm760_vm4, %v2085_v51, 0.0 }
 0x800   : > { %951 = vadd.xlane.f32.xlu1 %v950_v63 }
 0x803   : > { %954 = vadd.xlane.f32.xlu0 %v953_v4 }
 0x804   : > { %1124 = vadd.xlane.f32.xlu1 %v1123_v29 }
 0x807   : > { %957 = vadd.xlane.f32.xlu0 %v956_v5 }
 0x808   : > { %1130 = vadd.xlane.f32.xlu1 %v1129_v19 }
 0x80b   : > { %1127 = vadd.xlane.f32.xlu0 %v1126_v18 }
 0x857   : > { %v1284_v9 = vpop.xlane.xlu0 %1283 }
 0x858   : > { %v1287_v38 = vsub.f32 %v1275_v53, %v1284_v9  ;;  %v1278_v10 = vpop.xlane.xlu1 %1277 }
 0x859   : > { %v1285_v11 = vsub.f32 %v1273_v57, %v1278_v10 }
 0x85a   : > { %v1292_v12 = vmul.f32 1.442695, %v1287_v38 }
 0x85b   : > { %v1288_v39 = vmul.f32 1.442695, %v1285_v11  ;;  %v1281_v13 = vpop.xlane.xlu0 %1280 }
 0x85c   : > { %v1286_v14 = vsub.f32 %v1274_v59, %v1281_v13  ;;  %v1311_v37 = vpop.permute.xlu1 %1310 }
 0x85d   : > { %1828 = vpow2.f32 %v1288_v39  ;;  %v1320_v17 = vsel %vm799_vm2, %v1311_v37, 0 }
 0x85e   : > { %v1290_v15 = vmul.f32 1.442695, %v1286_v14  ;;  %1830 = vpow2.f32 %v1292_v12 }
 0x85f   : > { %v1309_v16 = vpop.permute.xlu0 %1308 }
 0x860   : > { %1832 = vpow2.f32 %v1290_v15  ;;  %1737 = vmatprep.subr.bf16.mxu1 %v1309_v16 }
 0x861   : > { %1738 = vmatpush3.bf16.msra.mxu1 %v1309_v16 }
 0x862   : > { %1764 = vmatprep.subr.msk.bf16.mxu1 %vm799_vm2, %v1311_v37 }
 0x865   : > { %1740 = vmatpush3.bf16.msra.mxu1 %v1320_v17 }
 0x867   : > { %v1829_v20 = vpop.eup %1828 }
 0x868   : > { %v1294_v7 = vsel %vm760_vm4, %v1829_v20, 0.0  ;;  %v1831_v21 = vpop.eup %1830 }
 0x869   : > { %1295 = vadd.xlane.f32.xlu0 %v1294_v7  ;;  %v1300_v23 = vsel %vm760_vm4, %v1831_v21, 0.0  ;;  %v1307_v24 = vpack.c.bf16 %v1831_v21, %v1831_v21 }
 0x86a   : > { %v1833_v6 = vpop.eup %1832 }
 0x86b   : > { %v1297_v22 = vsel %vm760_vm4, %v1833_v6, 0.0  ;;  %v1306_v8 = vpack.c.bf16 %v1833_v6, %v1829_v20 }
 0x86c   : > { %1298 = vadd.xlane.f32.xlu1 %v1297_v22 }
 0x86d   : > { %1301 = vadd.xlane.f32.xlu0 %v1300_v23  ;;  %1741 = vmatprep.mubr.msk.bf16.mxu1 %vm760_vm4, %v1306_v8 }
 0x86e   : > { %1742 = vmatmul.mubr.msk.bf16.vlgmr.msra.gmra.mrb[16].mxu1 %vm760_vm4, %v1307_v24 }
 0x870   : > { %780 = vadd.xlane.f32.xlu1 %v779_v25 }
 0x871   : > { %783 = vadd.xlane.f32.xlu0 %v782_v26 }
 0x874   : > { %786 = vadd.xlane.f32.xlu1 %v785_v27 }
 0x88d   : > { %v952_v28 = vpop.xlane.xlu1 %951 }
 0x88e   : > { %1834 = vrcp.f32 %v952_v28 }
 0x890   : > { %v955_v30 = vpop.xlane.xlu0 %954 }
 0x891   : > { %1836 = vrcp.f32 %v955_v30  ;;  %v1125_v31 = vpop.xlane.xlu1 %1124 }
 0x894   : > { %v958_v32 = vpop.xlane.xlu0 %957 }
 0x895   : > { %1838 = vrcp.f32 %v958_v32  ;;  %v1131_v51 = vpop.xlane.xlu1 %1130 }
 0x896   : > { %1840 = vrcp.f32 %v1125_v31 }
 0x898   : > { %v1128_v33 = vpop.xlane.xlu0 %1127  ;;  %v1835_v34 = vpop.eup %1834 }
 0x899   : > { %1842 = vrcp.f32 %v1128_v33  ;;  %v1028_v52 = vmul.f32 %v1835_v34, %v2153_v48 }
 0x89a   : > { %1844 = vrcp.f32 %v1131_v51 }
 0x89b   : > { %v1837_v40 = vpop.eup %1836 }
 0x89c   : > { %v1029_v42 = vmul.f32 %v1837_v40, %v2155_v50 }
 0x89e   : > { %v1781_v54 = vpack.i.bf16 %v1029_v42, %v1028_v52  ;;  %v1606_v52 = vld [vmem:[%s2278_s11] ss:$0 sm:$0xff] }
 0x89f   : > { %v1839_v43 = vpop.eup %1838 }
 0x8a0   : > { %1782 = vrot.lane.b32.xlu0 %v1781_v54, %s1884_s24  ;;  %v1030_v44 = vmul.f32 %v1839_v43, %v2151_v47  ;;  %v1841_v45 = vpop.eup %1840  ;;  %v1802_v47 = vld [vmem:[%s2277_s10] sm:$0xff]  }
 0x8a1   : > { %v1199_v49 = vmul.f32 %v1841_v45, %v2188_v36  ;;  %1745 = vmatprep.subr.bf16.mxu1 %v1802_v47  ;;  %v1803_v36 = vld [vmem:[%s2277_s10 + $0x8] sm:$0xff]  }
 0x8a2   : > { %1380 = vrot.lane.b32.xlu1 %v1030_v44, %s1884_s24  ;;  %1746 = vmatpush3.bf16.msra.mxu1 %v1802_v47 }
 0x8a3   : > { %v1843_v46 = vpop.eup %1842  ;;  %1747 = vmatprep.subr.bf16.mxu1 %v1803_v36 }
 0x8a4   : > { %v1200_v53 = vmul.f32 %v1843_v46, %v2190_v41  ;;  %v1845_v56 = vpop.eup %1844 }
 0x8a5   : > { %v1201_v48 = vmul.f32 %v1845_v56, %v2186_v35 }
 0x8a6   : > { %v1786_v55 = vpack.i.bf16 %v1200_v53, %v1199_v49  ;;  %1748 = vmatpush3.bf16.msra.mxu1 %v1803_v36 }
 0x8a8   : > { %1787 = vrot.lane.b32.xlu1 %v1786_v55, %s1885_s25 }
 0x8ac   : > { %1392 = vrot.lane.b32.xlu1 %v1201_v48, %s1885_s25 }
 0x8f6   : > { %v1296_v50 = vpop.xlane.xlu0 %1295 }
 0x8f9   : > { %v1299_v58 = vpop.xlane.xlu1 %1298 }
 0x8fa   : > { %v1302_v57 = vpop.xlane.xlu0 %1301 }
 0x8fb   : > { %1846 = vrcp.f32 %v1302_v57 }
 0x8fc   : > { %1848 = vrcp.f32 %v1296_v50 }
 0x8fd   : > { %1850 = vrcp.f32 %v1299_v58  ;;  %v781_v38 = vpop.xlane.xlu1 %780 }
 0x8fe   : > { %v784_v10 = vpop.xlane.xlu0 %783 }
 0x8ff   : > { %1852 = vrcp.f32 %v784_v10 }
 0x901   : > { %v787_v11 = vpop.xlane.xlu1 %786 }
 0x902   : > { %1854 = vrcp.f32 %v787_v11 }
 0x903   : > { %1856 = vrcp.f32 %v781_v38 }
 0x905   : > { %v1847_v35 = vpop.eup %1846 }
 0x906   : > { %v1849_v63 = vpop.eup %1848 }
 0x907   : > { %v1851_v29 = vpop.eup %1850 }
 0x909   : > { %v1853_v14 = vpop.eup %1852 }
 0x90a   : > { %v852_v7 = vmul.f32 %v1853_v14, %v2106_v3 }
 0x90c   : > { %v1855_v15 = vpop.eup %1854 }
 0x90d   : > { %v1857_v37 = vpop.eup %1856  ;;  %v853_v21 = vmul.f32 %v1855_v15, %v2102_v61 }
 0x90e   : > { %v851_v8 = vmul.f32 %v1857_v37, %v2104_v62 }
 0x912   : > { %v1783_v13 = vpop.permute.xlu0 %1782 }
 0x913   : > { %v1785_v17 = vunpack.i.h.bf16 %v1783_v13  ;;  %v1784_v20 = vunpack.i.l.bf16 %v1783_v13 }
 0x914   : > { %v1381_v12 = vpop.permute.xlu1 %1380 }
 0x915   : > { %v1410_v24 = vsel %vm691_vm1, %v852_v7, %v1785_v17  ;;  %v1411_v25 = vsel %vm691_vm1, %v853_v21, %v1381_v12  ;;  %v1409_v27 = vsel %vm691_vm1, %v851_v8, %v1784_v20 }
 0x91a   : > { %v1788_v39 = vpop.permute.xlu1 %1787 }
 0x91b   : > { %v1790_v6 = vunpack.i.h.bf16 %v1788_v39  ;;  %v1789_v22 = vunpack.i.l.bf16 %v1788_v39 }
 0x91d   : > { %v1413_v3 = vsel %vm1412_vm5, %v1409_v27, %v1789_v22  ;;  %v1414_v32 = vsel %vm1412_vm5, %v1410_v24, %v1790_v6 }
 0x91e   : > { %v1393_v16 = vpop.permute.xlu1 %1392 }
 0x91f   : > { %v1415_v28 = vsel %vm1412_vm5, %v1411_v25, %v1393_v16 }
 0x941   : > { %v1743_v41 = vpop.f32.mrb[16].mxu1 }
 0x942   : > { %v1372_v59 = vmul.f32 %v1847_v35, %v1743_v41  ;;  %v1356_v60 = vpop.f32.mrb[17].mxu1 }
 0x943   : > { %v1744_v4 = vpop.f32.mrb[18].mxu1  ;;  %v1370_v19 = vmul.f32 %v1849_v63, %v1356_v60 }
 0x944   : > { %v1359_v5 = vpop.f32.mrb[19].mxu1  ;;  %1404 = vrot.lane.b32.xlu1 %v1372_v59, %s1886_s15 }
 0x945   : > { %v1371_v18 = vmul.f32 %v1851_v29, %v1359_v5 }
 0x947   : > { %v1791_v9 = vpack.i.bf16 %v1371_v18, %v1370_v19 }
 0x949   : > { %1792 = vrot.lane.b32.xlu0 %v1791_v9, %s1886_s15 }
 0x9b6   : > { %v1405_v23 = vpop.permute.xlu1 %1404 }
 0x9b7   : > { %v1418_v61 = vsel %vm760_vm4, %v1415_v28, %v1405_v23 }
 0x9b8   : > { %v1420_v51 = vpack.c.bf16 %v1418_v61, %v1418_v61 }
 0x9bb   : > { %v1793_v26 = vpop.permute.xlu0 %1792 }
 0x9bc   : > { %v1795_v30 = vunpack.i.h.bf16 %v1793_v26  ;;  %v1794_v31 = vunpack.i.l.bf16 %v1793_v26 }
 0x9be   : > { %v1416_v33 = vsel %vm760_vm4, %v1413_v3, %v1794_v31  ;;  %v1417_v62 = vsel %vm760_vm4, %v1414_v32, %v1795_v30 }
 0x9bf   : > { %v1419_v34 = vpack.c.bf16 %v1417_v62, %v1416_v33 }
 0x9c1   : > { %1749 = vmatprep.mubr.msk.bf16.mxu1 %vm401_vm0, %v1419_v34 }
 0x9c2   : > { %1750 = vmatmul.mubr.msk.bf16.vlgmr.msra.gmra.mrb[20].mxu1 %vm401_vm0, %v1420_v51 }
 0xa95   : > { %v1751_v40 = vpop.f32.mrb[20].mxu1 }
 0xa96   : > { %v1493_v42 = vadd.f32 %v1751_v40, %v1977_v1  ;;  %v1477_v54 = vpop.f32.mrb[21].mxu1 }
 0xa97   : > { %v1491_v43 = vadd.f32 %v1477_v54, %v1975_v0  ;;  %v1752_v44 = vpop.f32.mrb[22].mxu1 }
 0xa98   : > { %v1503_v45 = vadd.f32 %v1606_v52, %v1493_v42  ;;  %v1480_v46 = vpop.f32.mrb[23].mxu1 }
 0xa99   : > { %v1501_v49 = vadd.f32 %v1606_v52, %v1491_v43  ;;  %v1492_v53 = vadd.f32 %v1480_v46, %v1979_v2 }
 0xa9a   : > { %1506 = vst.msk [vmem:[%s393_s20 + $0x10] sm:$0xff] %vm401_vm0, %v1503_v45 }
 0xa9b   : > { %1504 = vst.msk [vmem:[%s393_s20] sm:$0xff] %vm401_vm0, %v1501_v49  ;;  %v1502_v55 = vadd.f32 %v1606_v52, %v1492_v53 }
 0xa9d   : > { %1505 = vst.msk [vmem:[%s393_s20 + $0x8] sm:$0xff] %vm401_vm0, %v1502_v55 }
 0xa9e PF: > { %s28_s26 = sadd.s32 1, %s1878_s26  }
 0xa9f   : > { %p25_p9 = scmp.ge.s32.totalorder %s28_s26, 4  }
 0xaa1   :  { %27 = sbr.rel (!%p25_p9) target bundleno = 16 (0x10), region = 94 }

// kernel: style_diffuser_run.29
= control target key start
LH: loop header
LB: loop body
LE: loop exit
PB: predicated region body
PF: predicated region fallthrough
CT: control target
= control target key end

     0   :  { %v136_v0 = vmov 0.0   ;;  %vm137_vm0 = vmmov 0   ;;  %vm46_vm1 = vcmask 261120   ;;  %s176_s1 = inlined_call_operand.vmem [shape: bf16[32,128], index: 1, kind: input, shape index: {}]   ;;  %s177_s0 = inlined_call_operand.vmem [shape: bf16[16,32], index: 0, kind: input, shape index: {}]   ;;  %s178_s2 = inlined_call_operand.vmem [shape: f32[1,128], index: 2, kind: input, shape index: {}]   ;;  %s179_s3 = inlined_call_operand.vmem [shape: f32[16,128], index: 3, kind: output, shape index: {}]  }
   0x1   :  { %123 = vmatprep.subr.bf16.mxu0 %v136_v0  ;;  %v133_v1 = vld [vmem:[%s176_s1] sm:$0xff]   ;;  %127 = vmatprep.mubr.msk.bf16.mxu0 %vm137_vm0, %v136_v0  ;;  %v134_v2 = vld [vmem:[%s176_s1 + $0x8] sm:$0xff]  }
   0x2   :  { %124 = vmatpush3.bf16.msra.mxu0 %v133_v1  ;;  %v135_v3 = vld [vmem:[%s177_s0] sm:$0xff]  }
   0x3   :  { %125 = vmatprep.subr.bf16.mxu0 %v136_v0  ;;  %v119_v4 = vld [vmem:[%s178_s2] ss:$0 sm:$0xff] }
   0x6   :  { %126 = vmatpush3.bf16.msra.mxu0 %v134_v2 }
   0x9   :  { %128 = vmatmul.mubr.msk.bf16.vlgmr.msra.gmra.mrb[0].mxu0 %vm46_vm1, %v135_v3 }
  0xdc   :  { %v84_v5 = vpop.f32.mrb[0].mxu0 }
  0xdd   :  { %v107_v6 = vadd.f32 %v119_v4, %v84_v5  ;;  %v129_v7 = vpop.f32.mrb[1].mxu0 }
  0xde   :  { %v87_v8 = vpop.f32.mrb[2].mxu0 }
  0xdf   :  { %109 = vst [vmem:[%s179_s3] sm:$0xff] %v107_v6  ;;  %v108_v9 = vadd.f32 %v119_v4, %v87_v8  ;;  %v130_v10 = vpop.f32.mrb[3].mxu0 }
  0xe1   :  { %110 = vst [vmem:[%s179_s3 + $0x8] sm:$0xff] %v108_v9 }

// kernel: style_diffuser_run.27
= control target key start
LH: loop header
LB: loop body
LE: loop exit
PB: predicated region body
PF: predicated region fallthrough
CT: control target
= control target key end

     0   :  { %s1222_s17 = smov 0   ;;  %s1433_s0 = inlined_call_operand.vmem [shape: f32[2,24,32], index: 0, kind: input, shape index: {}]   ;;  %s1434_s1 = inlined_call_operand.vmem [shape: f32[1,32], index: 1, kind: input, shape index: {}]   ;;  %s1435_s2 = inlined_call_operand.vmem [shape: f32[1,32], index: 2, kind: input, shape index: {}]   ;;  %s1436_s3 = inlined_call_operand.vmem [shape: bf16[32,64], index: 3, kind: input, shape index: {}]   ;;  %s1437_s4 = inlined_call_operand.vmem [shape: f32[1,64], index: 4, kind: input, shape index: {}]   ;;  %s1438_s5 = inlined_call_operand.vmem [shape: f32[7,32], index: 5, kind: input, shape index: {}]   ;;  %s1439_s6 = inlined_call_operand.vmem [shape: f32[1,32], index: 6, kind: input, shape index: {}]   ;;  %s1440_s7 = inlined_call_operand.vmem [shape: f32[1,32], index: 7, kind: input, shape index: {}]   ;;  %s1441_s8 = inlined_call_operand.vmem [shape: f32[1,32], index: 8, kind: input, shape index: {}]   ;;  %s1442_s9 = inlined_call_operand.vmem [shape: bf16[32,32], index: 9, kind: input, shape index: {}]   ;;  %s1443_s10 = inlined_call_operand.vmem [shape: f32[1,32], index: 10, kind: input, shape index: {}]   ;;  %s1444_s11 = inlined_call_operand.vmem [shape: f32[2,24,32], index: 11, kind: output, shape index: {}]  }
   0x1 LB: > { %s1047_s18 = sadd.s32 4294967295, %s1159_s17   ;;  %p1051_p0 = scmp.ge.s32.totalorder %s1159_s17, 1  ;;  %s1159_s17 = sphi %s1222_s17, %s21_s17  }
   0x2   : > { %p337_p1 = scmp.lt.s32.totalorder %s1159_s17, 3 }
   0x4   : > { %p338_p2 = pnand %p1051_p0, %p337_p1 }
   0x5   : > { %p377_p3 = scmp.lt.s32.totalorder (!%p338_p2), %s1047_s18, 1  ;;  %vm393_vm0 = vcmask (!%p338_p2), 261120   ;;  %v1117_v21 = vld [vmem:[%s1436_s3] sm:$0xff] (!%p338_p2)   ;;  %v1118_v22 = vld [vmem:[%s1436_s3 + $0x8] sm:$0xff] (!%p338_p2)   ;;  %s1161_s14 = smov (!%p338_p2), 96  }
   0x6   : > { %341 = sbr.rel (%p338_p2) target bundleno = 1473 (0x5c1), region = 64  ;;  %1085 = vmatprep.subr.bf16.mxu0 (!%p338_p2), %v1117_v21  ;;  %v1054_v34 = vld [vmem:[%s1434_s1] ss:$0 sm:$0xff] (!%p338_p2) }
   0x7   : > { %1086 = vmatpush3.bf16.msra.mxu0 (!%p338_p2), %v1117_v21  ;;  %v1055_v40 = vld [vmem:[%s1435_s2] ss:$0 sm:$0xff] (!%p338_p2) }
   0x8   : > { %1087 = vmatprep.subr.bf16.mxu0 (!%p338_p2), %v1118_v22  ;;  %v1056_v48 = vld [vmem:[%s1437_s4] ss:$0 sm:$0xff] (!%p338_p2) }
   0xb   : > { %1088 = vmatpush3.bf16.msra.mxu0 (!%p338_p2), %v1118_v22 }
   0xd   : > { %s1446_s18 = smov (!%p377_p3, %s1047_s18), 1 }
   0xe   : > { %s1101_s19 = smul.u32 24, %s1446_s18 }
  0x10   : > { %s381_s22 = scalar_lea.vmem %s1433_s0, %s1101_s19  ;;  %s386_s24 = scalar_lea.vmem %s1444_s11, %s1101_s19 }
  0x11   : > { %v1238_v0 = vld [vmem:[%s381_s22] sm:$0xff]  ;;  %v1240_v1 = vld [vmem:[%s381_s22 + $0x10] sm:$0xff]  ;;  %v1242_v2 = vld [vmem:[%s381_s22 + $0x8] sm:$0xff] }
  0x12   : > { %v394_v3 = vsel %vm393_vm0, %v1238_v0, 0.0  ;;  %v400_v4 = vsel %vm393_vm0, %v1240_v1, 0.0  ;;  %v397_v5 = vsel %vm393_vm0, %v1242_v2, 0.0 }
  0x13   : > { %395 = vadd.xlane.f32.xlu0 %v394_v3  ;;  %401 = vadd.xlane.f32.xlu1 %v400_v4 }
  0x17   : > { %398 = vadd.xlane.f32.xlu0 %v397_v5 }
  0xa0   : > { %v396_v6 = vpop.xlane.xlu0 %395  ;;  %v402_v7 = vpop.xlane.xlu1 %401 }
  0xa1   : > { %v404_v8 = vmul.f32 0.03125, %v396_v6  ;;  %v406_v9 = vmul.f32 0.03125, %v402_v7  ;;  %v565_v7 = vlaneseq }
  0xa3   : > { %v407_v10 = vsub.f32 %v1238_v0, %v404_v8  ;;  %v409_v11 = vsub.f32 %v1240_v1, %v406_v9  ;;  %v1276_v8 = vshrl.u32 %v565_v7, 7 }
  0xa4   : > { %v399_v12 = vpop.xlane.xlu0 %398 }
  0xa5   : > { %v405_v13 = vmul.f32 0.03125, %v399_v12  ;;  %v410_v14 = vmul.f32 %v407_v10, %v407_v10  ;;  %v412_v15 = vmul.f32 %v409_v11, %v409_v11  ;;  %v568_v9 = vadd.s32 16, %v1276_v8 }
  0xa6   : > { %v685_v12 = vsub.s32 3, %v1276_v8  ;;  %vm572_vm1 = vcmp.lt.s32.totalorder %v1276_v8, 3  ;;  %vm610_vm2 = vcmp.lt.s32.totalorder %v1276_v8, 2  ;;  %vm648_vm5 = vcmp.lt.s32.totalorder %v1276_v8, 1 }
  0xa7   : > { %v408_v16 = vsub.f32 %v1242_v2, %v405_v13  ;;  %v413_v17 = vsel %vm393_vm0, %v410_v14, 0.0  ;;  %v419_v18 = vsel %vm393_vm0, %v412_v15, 0.0  ;;  %v1285_v13 = vld [vmem:[%s1438_s5] sm:$0x7f]  ;;  %v614_v14 = vadd.s32 4294967294, %v1276_v8 }
  0xa8   : > { %414 = vadd.xlane.f32.xlu1 %v413_v17  ;;  %v637_v15 = vsub.s32 1, %v1276_v8  ;;  %v675_v17 = vsub.s32 2, %v1276_v8  ;;  %v686_v21 = vrot.slane %v1285_v13, %v685_v12  ;;  %v1297_v22 = vadd.s32 1, %v568_v9 }
  0xa9   : > { %v411_v19 = vmul.f32 %v408_v16, %v408_v16  ;;  %vm617_vm4 = vcmp.ge.s32.totalorder %v614_v14, 0  ;;  %vm696_vm7 = vcmp.lt.s32.totalorder %v1276_v8, 7  ;;  %vm734_vm9 = vcmp.lt.s32.totalorder %v1276_v8, 6 }
  0xaa   : > { %vm708_vm8 = vcmp.lt.s32.totalorder %v1297_v22, 24  ;;  %vm772_vm11 = vcmp.lt.s32.totalorder %v1276_v8, 5 }
  0xab   : > { %v416_v20 = vsel %vm393_vm0, %v411_v19, 0.0  ;;  %v761_v19 = vsub.s32 5, %v1276_v8 }
  0xac   : > { %420 = vadd.xlane.f32.xlu1 %v419_v18  ;;  %417 = vadd.xlane.f32.xlu0 %v416_v20  ;;  %v723_v18 = vsub.s32 4, %v1276_v8 }
 0x135   : > { %v415_v23 = vpop.xlane.xlu1 %414 }
 0x136   : > { %v422_v24 = vmul.f32 0.03125, %v415_v23 }
 0x138   : > { %v425_v25 = vadd.f32 1e-05, %v422_v24  ;;  %v638_v24 = vrot.slane %v1285_v13, %v637_v15 }
 0x139   : > { %v421_v26 = vpop.xlane.xlu1 %420  ;;  %v418_v27 = vpop.xlane.xlu0 %417 }
 0x13a   : > { %1121 = vrsqrt.f32 %v425_v25  ;;  %v424_v28 = vmul.f32 0.03125, %v421_v26  ;;  %v423_v29 = vmul.f32 0.03125, %v418_v27  ;;  %v676_v27 = vrot.slane %v1285_v13, %v675_v17 }
 0x13c   : > { %v427_v30 = vadd.f32 1e-05, %v424_v28  ;;  %v426_v31 = vadd.f32 1e-05, %v423_v29  ;;  %v1305_v28 = vrot.slane %v1285_v13, %v723_v18  ;;  %v1307_v29 = vadd.s32 2, %v568_v9 }
 0x13e   : > { %1123 = vrsqrt.f32 %v427_v30  ;;  %vm746_vm10 = vcmp.lt.s32.totalorder %v1307_v29, 24 }
 0x13f   : > { %1125 = vrsqrt.f32 %v426_v31  ;;  %v1313_v31 = vrot.slane %v1285_v13, %v761_v19 }
 0x144   : > { %v1122_v32 = vpop.eup %1121 }
 0x145   : > { %v431_v33 = vmul.f32 %v1122_v32, %v407_v10  ;;  %v576_v10 = vadd.s32 4294967293, %v1276_v8  ;;  %v1315_v32 = vadd.s32 3, %v568_v9 }
 0x147   : > { %v440_v39 = vmul.f32 %v1054_v34, %v431_v33  ;;  %vm579_vm3 = vcmp.ge.s32.totalorder %v576_v10, 0  ;;  %v799_v33 = vsub.s32 6, %v1276_v8  ;;  %vm784_vm12 = vcmp.lt.s32.totalorder %v1315_v32, 24 }
 0x148   : > { %v1124_v35 = vpop.eup %1123 }
 0x149   : > { %v1126_v36 = vpop.eup %1125  ;;  %v433_v37 = vmul.f32 %v1124_v35, %v409_v11  ;;  %v449_v44 = vadd.f32 %v1055_v40, %v440_v39  ;;  %v599_v11 = vsub.s32 0, %v1276_v8 }
 0x14a   : > { %v432_v38 = vmul.f32 %v1126_v36, %v408_v16  ;;  %v652_v16 = vadd.s32 4294967295, %v1276_v8 }
 0x14b   : > { %v442_v41 = vmul.f32 %v1054_v34, %v433_v37  ;;  %v600_v20 = vrot.slane %v1285_v13, %v599_v11 }
 0x14c   : > { %v441_v42 = vmul.f32 %v1054_v34, %v432_v38  ;;  %vm655_vm6 = vcmp.ge.s32.totalorder %v652_v16, 0 }
 0x14d   : > { %v451_v43 = vadd.f32 %v1055_v40, %v442_v41 }
 0x14e   : > { %v450_v45 = vadd.f32 %v1055_v40, %v441_v42 }
 0x14f   : > { %v457_v46 = vpack.c.bf16 %v451_v43, %v451_v43 }
 0x150   : > { %v456_v47 = vpack.c.bf16 %v450_v45, %v449_v44 }
 0x152   : > { %1089 = vmatprep.mubr.msk.bf16.mxu0 %vm393_vm0, %v456_v47 }
 0x153   : > { %1090 = vmatmul.mubr.msk.bf16.vlgmr.msra.gmra.mrb[0].mxu0 %vm393_vm0, %v457_v46 }
 0x226   : > { %v1091_v49 = vpop.f32.mrb[0].mxu0 }
 0x227   : > { %v526_v50 = vadd.f32 %v1091_v49, %v1056_v48  ;;  %v517_v51 = vpop.f32.mrb[1].mxu0 }
 0x228   : > { %v518_v52 = vadd.f32 %v1056_v48, %v517_v51  ;;  %v1092_v53 = vpop.f32.mrb[2].mxu0 }
 0x229   : > { %v1063_v54 = vmul.f32 -1.442695, %v526_v50  ;;  %v520_v55 = vpop.f32.mrb[3].mxu0 }
 0x22a   : > { %v1061_v56 = vmul.f32 -1.442695, %v518_v52  ;;  %v1273_v57 = vadd.f32 %v1056_v48, %v520_v55 }
 0x22b   : > { %1127 = vpow2.f32 %v1063_v54 }
 0x22c   : > { %1129 = vpow2.f32 %v1061_v56  ;;  %v1062_v58 = vmul.f32 -1.442695, %v1273_v57 }
 0x22e   : > { %1131 = vpow2.f32 %v1062_v58 }
 0x235   : > { %v1128_v59 = vpop.eup %1127 }
 0x236   : > { %v1130_v60 = vpop.eup %1129  ;;  %v542_v61 = vadd.f32 1.0, %v1128_v59 }
 0x237   : > { %v540_v62 = vadd.f32 1.0, %v1130_v60 }
 0x238   : > { %v1132_v63 = vpop.eup %1131  ;;  %1133 = vrcp.f32 %v542_v61 }
 0x239   : > { %1135 = vrcp.f32 %v540_v62  ;;  %v541_v3 = vadd.f32 1.0, %v1132_v63 }
 0x23b   : > { %1137 = vrcp.f32 %v541_v3 }
 0x242   : > { %v1134_v4 = vpop.eup %1133 }
 0x243   : > { %v1136_v5 = vpop.eup %1135  ;;  %556 = vrot.lane.b32.xlu1 %v1134_v4, %s1161_s14 }
 0x244   : > { %552 = vrot.lane.b32.xlu0 %v1136_v5, %s1161_s14 }
 0x245   : > { %v1138_v6 = vpop.eup %1137 }
 0x247   : > { %554 = vrot.lane.b32.xlu1 %v1138_v6, %s1161_s14 }
 0x2b5   : > { %v557_v23 = vpop.permute.xlu1 %556 }
 0x2b6   : > { %v1301_v25 = vmul.f32 %v557_v23, %v526_v50  ;;  %v553_v26 = vpop.permute.xlu0 %552 }
 0x2b7   : > { %v1309_v30 = vmul.f32 %v553_v26, %v518_v52 }
 0x2b8   : > { %v571_v34 = vrot.slane %v1301_v25, 5  ;;  %v609_v35 = vrot.slane %v1301_v25, 6  ;;  %v647_v36 = vrot.slane %v1301_v25, 7  ;;  %v689_v37 = vmul.f32 %v686_v21, %v1301_v25 }
 0x2b9   : > { %v569_v38 = vrot.slane %v1309_v30, 5  ;;  %v607_v39 = vrot.slane %v1309_v30, 6  ;;  %v555_v40 = vpop.permute.xlu1 %554  ;;  %v645_v41 = vrot.slane %v1309_v30, 7  ;;  %v687_v42 = vmul.f32 %v686_v21, %v1309_v30 }
 0x2ba   : > { %v1328_v43 = vmul.f32 %v555_v40, %v1273_v57  ;;  %v693_v44 = vrot.slane %v1309_v30, 1  ;;  %v695_v45 = vrot.slane %v1301_v25, 1  ;;  %v731_v46 = vrot.slane %v1309_v30, 2 }
 0x2bb   : > { %v575_v47 = vsel %vm572_vm1, %v571_v34, %v569_v38  ;;  %v613_v48 = vsel %vm610_vm2, %v609_v35, %v607_v39  ;;  %v651_v49 = vsel %vm648_vm5, %v647_v36, %v645_v41  ;;  %v733_v50 = vrot.slane %v1301_v25, 2 }
 0x2bc   : > { %v570_v51 = vrot.slane %v1328_v43, 5  ;;  %v594_v52 = vsel %vm579_vm3, %v575_v47, 0.0  ;;  %v608_v53 = vrot.slane %v1328_v43, 6  ;;  %v632_v54 = vsel %vm617_vm4, %v613_v48, 0.0 }
 0x2bd   : > { %v601_v55 = vmul.f32 %v600_v20, %v594_v52  ;;  %v639_v56 = vmul.f32 %v638_v24, %v632_v54  ;;  %v646_v57 = vrot.slane %v1328_v43, 7  ;;  %v670_v58 = vsel %vm655_vm6, %v651_v49, 0.0 }
 0x2be   : > { %v573_v59 = vsel %vm572_vm1, %v570_v51, %v571_v34  ;;  %v574_v60 = vsel %vm572_vm1, %v569_v38, %v570_v51  ;;  %v611_v61 = vsel %vm610_vm2, %v608_v53, %v609_v35  ;;  %v612_v62 = vsel %vm610_vm2, %v607_v39, %v608_v53 }
 0x2bf   : > { %v602_v63 = vmul.f32 %v600_v20, %v574_v60  ;;  %v603_v3 = vmul.f32 %v600_v20, %v573_v59  ;;  %v640_v4 = vmul.f32 %v638_v24, %v612_v62  ;;  %v641_v5 = vmul.f32 %v638_v24, %v611_v61 }
 0x2c0   : > { %v642_v6 = vadd.f32 %v639_v56, %v601_v55  ;;  %v649_v7 = vsel %vm648_vm5, %v646_v57, %v647_v36  ;;  %v650_v9 = vsel %vm648_vm5, %v645_v41, %v646_v57  ;;  %v677_v10 = vmul.f32 %v676_v27, %v670_v58 }
 0x2c1   : > { %v643_v11 = vadd.f32 %v640_v4, %v602_v63  ;;  %v644_v12 = vadd.f32 %v641_v5, %v603_v3  ;;  %v678_v14 = vmul.f32 %v676_v27, %v650_v9  ;;  %v679_v15 = vmul.f32 %v676_v27, %v649_v7 }
 0x2c2   : > { %v680_v16 = vadd.f32 %v677_v10, %v642_v6  ;;  %v688_v17 = vmul.f32 %v686_v21, %v1328_v43  ;;  %v694_v18 = vrot.slane %v1328_v43, 1  ;;  %v699_v19 = vsel %vm696_vm7, %v695_v45, %v693_v44 }
 0x2c3   : > { %v681_v20 = vadd.f32 %v678_v14, %v643_v11  ;;  %v682_v23 = vadd.f32 %v679_v15, %v644_v12  ;;  %v720_v24 = vsel %vm708_vm8, %v699_v19, 0.0  ;;  %v732_v26 = vrot.slane %v1328_v43, 2 }
 0x2c4   : > { %v690_v34 = vadd.f32 %v687_v42, %v680_v16  ;;  %v697_v35 = vsel %vm696_vm7, %v694_v18, %v695_v45  ;;  %v698_v27 = vsel %vm696_vm7, %v693_v44, %v694_v18  ;;  %v727_v21 = vmul.f32 %v1305_v28, %v720_v24 }
 0x2c5   : > { %v691_v36 = vadd.f32 %v688_v17, %v681_v20  ;;  %v692_v38 = vadd.f32 %v689_v37, %v682_v23  ;;  %v725_v39 = vmul.f32 %v1305_v28, %v698_v27  ;;  %v726_v40 = vmul.f32 %v1305_v28, %v697_v35 }
 0x2c6   : > { %v735_v22 = vsel %vm734_vm9, %v732_v26, %v733_v50  ;;  %v736_v41 = vsel %vm734_vm9, %v731_v46, %v732_v26  ;;  %v737_v42 = vsel %vm734_vm9, %v733_v50, %v731_v46  ;;  %v769_v45 = vrot.slane %v1309_v30, 3 }
 0x2c7   : > { %v728_v44 = vadd.f32 %v725_v39, %v690_v34  ;;  %v729_v47 = vadd.f32 %v726_v40, %v691_v36  ;;  %v730_v48 = vadd.f32 %v727_v21, %v692_v38  ;;  %v758_v37 = vsel %vm746_vm10, %v737_v42, 0.0  ;;  %v1120_v42 = vld [vmem:[%s1442_s9 + $0x8] sm:$0xff]  }
 0x2c8   : > { %v763_v49 = vmul.f32 %v1313_v31, %v736_v41  ;;  %v764_v28 = vmul.f32 %v1313_v31, %v735_v22  ;;  %v770_v51 = vrot.slane %v1328_v43, 3  ;;  %v765_v52 = vmul.f32 %v1313_v31, %v758_v37  ;;  %v1064_v31 = vld [vmem:[%s1439_s6] ss:$0 sm:$0xff] }
 0x2c9   : > { %v771_v46 = vrot.slane %v1301_v25, 3  ;;  %v800_v30 = vrot.slane %v1285_v13, %v799_v33  ;;  %v1119_v41 = vld [vmem:[%s1442_s9] sm:$0xff]  }
 0x2ca   : > { %v766_v29 = vadd.f32 %v763_v49, %v728_v44  ;;  %v767_v50 = vadd.f32 %v764_v28, %v729_v47  ;;  %v774_v53 = vsel %vm772_vm11, %v769_v45, %v770_v51  ;;  %v768_v54 = vadd.f32 %v765_v52, %v730_v48  ;;  %1093 = vmatprep.subr.bf16.mxu1 %v1119_v41  ;;  %v1065_v48 = vld [vmem:[%s1440_s7] ss:$0 sm:$0xff] }
 0x2cb   : > { %v773_v55 = vsel %vm772_vm11, %v770_v51, %v771_v46  ;;  %v775_v56 = vsel %vm772_vm11, %v771_v46, %v769_v45  ;;  %v801_v57 = vmul.f32 %v800_v30, %v774_v53  ;;  %1094 = vmatpush3.bf16.msra.mxu1 %v1119_v41  ;;  %v1066_v51 = vld [vmem:[%s1441_s8] ss:$0 sm:$0xff] }
 0x2cc   : > { %v796_v43 = vsel %vm784_vm12, %v775_v56, 0.0  ;;  %v802_v58 = vmul.f32 %v800_v30, %v773_v55  ;;  %1095 = vmatprep.subr.bf16.mxu1 %v1120_v42 }
 0x2cd   : > { %v803_v25 = vmul.f32 %v800_v30, %v796_v43  ;;  %v804_v59 = vadd.f32 %v801_v57, %v766_v29 }
 0x2ce   : > { %v805_v32 = vadd.f32 %v802_v58, %v767_v50 }
 0x2cf   : > { %v806_v60 = vadd.f32 %v803_v25, %v768_v54  ;;  %v814_v8 = vadd.f32 %v1064_v31, %v804_v59  ;;  %1096 = vmatpush3.bf16.msra.mxu1 %v1120_v42 }
 0x2d0   : > { %v815_v61 = vadd.f32 %v1064_v31, %v805_v32 }
 0x2d1   : > { %v816_v13 = vadd.f32 %v1064_v31, %v806_v60  ;;  %v817_v33 = vsel %vm393_vm0, %v814_v8, 0.0 }
 0x2d2   : > { %v818_v62 = vsel %vm393_vm0, %v815_v61, 0.0 }
 0x2d3   : > { %v819_v63 = vadd.f32 %v818_v62, %v817_v33  ;;  %v820_v3 = vsel %vm393_vm0, %v816_v13, 0.0 }
 0x2d5   : > { %v821_v4 = vadd.f32 %v820_v3, %v819_v63  ;;  %v1070_v3 = vld [vmem:[%s1443_s10] ss:$0 sm:$0xff] }
 0x2d7   : > { %822 = vadd.xlane.f32.xlu1 %v821_v4 }
 0x364   : > { %v823_v5 = vpop.xlane.xlu1 %822 }
 0x365   : > { %v824_v6 = vrot.slane %v823_v5, 4 }
 0x367   : > { %v825_v7 = vadd.f32 %v824_v6, %v823_v5 }
 0x369   : > { %v826_v9 = vrot.slane %v825_v7, 2 }
 0x36b   : > { %v827_v10 = vadd.f32 %v826_v9, %v825_v7 }
 0x36d   : > { %v828_v11 = vrot.slane %v827_v10, 1 }
 0x36f   : > { %v829_v12 = vadd.f32 %v828_v11, %v827_v10 }
 0x371   : > { %1102 = vpush %v829_v12 }
 0x3a2   : > { %s1103_s22 = spop %1102 }
 0x3a3   : > { %s833_s23 = smul.f32 0.0013020834, %s1103_s22 }
 0x3a5   : > { %v834_v14 = vstv %s833_s23 }
 0x3a6   : > { %v835_v15 = vsub.f32 %v814_v8, %v834_v14  ;;  %v836_v16 = vsub.f32 %v815_v61, %v834_v14  ;;  %v837_v17 = vsub.f32 %v816_v13, %v834_v14 }
 0x3a8   : > { %v838_v18 = vmul.f32 %v835_v15, %v835_v15  ;;  %v839_v19 = vmul.f32 %v836_v16, %v836_v16  ;;  %v840_v20 = vmul.f32 %v837_v17, %v837_v17 }
 0x3aa   : > { %v841_v23 = vsel %vm393_vm0, %v838_v18, 0.0  ;;  %v842_v24 = vsel %vm393_vm0, %v839_v19, 0.0  ;;  %v844_v34 = vsel %vm393_vm0, %v840_v20, 0.0 }
 0x3ab   : > { %v843_v26 = vadd.f32 %v842_v24, %v841_v23 }
 0x3ad   : > { %v845_v35 = vadd.f32 %v844_v34, %v843_v26 }
 0x3af   : > { %846 = vadd.xlane.f32.xlu0 %v845_v35 }
 0x43c   : > { %v847_v27 = vpop.xlane.xlu0 %846 }
 0x43d   : > { %v848_v21 = vrot.slane %v847_v27, 4 }
 0x43f   : > { %v849_v36 = vadd.f32 %v848_v21, %v847_v27 }
 0x441   : > { %v850_v38 = vrot.slane %v849_v36, 2 }
 0x443   : > { %v851_v39 = vadd.f32 %v850_v38, %v849_v36 }
 0x445   : > { %v852_v40 = vrot.slane %v851_v39, 1 }
 0x447   : > { %v853_v22 = vadd.f32 %v852_v40, %v851_v39 }
 0x449   : > { %1104 = vpush %v853_v22 }
 0x47a   : > { %s1105_s28 = spop %1104 }
 0x47b   : > { %s857_s29 = smul.f32 0.0013020834, %s1105_s28 }
 0x47d   : > { %s858_s30 = sadd.f32 1e-05, %s857_s29 }
 0x47f   : > { %v859_v45 = vstv %s858_s30 }
 0x480   : > { %1139 = vrsqrt.f32 %v859_v45 }
 0x48a   : > { %v1140_v44 = vpop.eup %1139 }
 0x48b   : > { %1106 = vpush %v1140_v44 }
 0x4bc   : > { %s1107_s12 = spop %1106 }
 0x4bd   : > { %v862_v47 = vstv %s1107_s12 }
 0x4be   : > { %v863_v37 = vmul.f32 %v862_v47, %v835_v15  ;;  %v864_v49 = vmul.f32 %v862_v47, %v836_v16  ;;  %v865_v28 = vmul.f32 %v862_v47, %v837_v17 }
 0x4c0   : > { %v873_v52 = vmul.f32 %v1065_v48, %v863_v37  ;;  %v874_v46 = vmul.f32 %v1065_v48, %v864_v49  ;;  %v875_v30 = vmul.f32 %v1065_v48, %v865_v28 }
 0x4c2   : > { %v885_v29 = vadd.f32 %v1066_v51, %v875_v30  ;;  %v883_v50 = vadd.f32 %v1066_v51, %v873_v52  ;;  %v884_v53 = vadd.f32 %v1066_v51, %v874_v46 }
 0x4c4   : > { %v1069_v54 = vmul.f32 -1.442695, %v885_v29  ;;  %v1067_v55 = vmul.f32 -1.442695, %v883_v50  ;;  %v1068_v56 = vmul.f32 -1.442695, %v884_v53 }
 0x4c6   : > { %1141 = vpow2.f32 %v1069_v54 }
 0x4c7   : > { %1143 = vpow2.f32 %v1067_v55 }
 0x4c8   : > { %1145 = vpow2.f32 %v1068_v56 }
 0x4d0   : > { %v1142_v57 = vpop.eup %1141 }
 0x4d1   : > { %v1144_v43 = vpop.eup %1143  ;;  %v897_v58 = vadd.f32 1.0, %v1142_v57 }
 0x4d2   : > { %v1146_v31 = vpop.eup %1145  ;;  %v895_v25 = vadd.f32 1.0, %v1144_v43 }
 0x4d3   : > { %1147 = vrcp.f32 %v897_v58  ;;  %v896_v59 = vadd.f32 1.0, %v1146_v31 }
 0x4d4   : > { %1149 = vrcp.f32 %v895_v25 }
 0x4d5   : > { %1151 = vrcp.f32 %v896_v59 }
 0x4dd   : > { %v1148_v32 = vpop.eup %1147 }
 0x4de   : > { %v1150_v60 = vpop.eup %1149  ;;  %v906_v8 = vmul.f32 %v1148_v32, %v885_v29 }
 0x4df   : > { %v1152_v61 = vpop.eup %1151  ;;  %v904_v13 = vmul.f32 %v1150_v60, %v883_v50 }
 0x4e0   : > { %v905_v33 = vmul.f32 %v1152_v61, %v884_v53  ;;  %v912_v62 = vpack.c.bf16 %v906_v8, %v906_v8 }
 0x4e2   : > { %v911_v63 = vpack.c.bf16 %v905_v33, %v904_v13 }
 0x4e4   : > { %1097 = vmatprep.mubr.msk.bf16.mxu1 %vm393_vm0, %v911_v63 }
 0x4e5   : > { %1098 = vmatmul.mubr.msk.bf16.vlgmr.msra.gmra.mrb[0].mxu1 %vm393_vm0, %v912_v62 }
 0x5b8   : > { %v1099_v4 = vpop.f32.mrb[0].mxu1 }
 0x5b9   : > { %v981_v5 = vadd.f32 %v1099_v4, %v1070_v3  ;;  %v972_v6 = vpop.f32.mrb[1].mxu1 }
 0x5ba   : > { %v973_v7 = vadd.f32 %v1070_v3, %v972_v6  ;;  %v1100_v9 = vpop.f32.mrb[2].mxu1 }
 0x5bb   : > { %v988_v10 = vadd.f32 %v981_v5, %v1240_v1  ;;  %v975_v11 = vpop.f32.mrb[3].mxu1 }
 0x5bc   : > { %v986_v12 = vadd.f32 %v973_v7, %v1238_v0  ;;  %v976_v14 = vadd.f32 %v1070_v3, %v975_v11 }
 0x5bd   : > { %991 = vst.msk [vmem:[%s386_s24 + $0x10] sm:$0xff] %vm393_vm0, %v988_v10 }
 0x5be   : > { %989 = vst.msk [vmem:[%s386_s24] sm:$0xff] %vm393_vm0, %v986_v12  ;;  %v987_v15 = vadd.f32 %v976_v14, %v1242_v2 }
 0x5c0   : > { %990 = vst.msk [vmem:[%s386_s24 + $0x8] sm:$0xff] %vm393_vm0, %v987_v15 }
 0x5c1 PF: > { %s21_s17 = sadd.s32 1, %s1159_s17  }
 0x5c2   : > { %p18_p4 = scmp.ge.s32.totalorder %s21_s17, 4  }
 0x5c4   :  { %20 = sbr.rel (!%p18_p4) target bundleno = 1 (0x1), region = 94 }

</bundles_post_ra>
